<compile_context>
chip_gen: v6e
topology: v6e:2x2x1
jax: 0.10.0
libtpu: 0.0.40
codegen_flags: <defaults>
</compile_context>

<pallas_src>
import functools

import jax
import jax.numpy as jnp
from jax.experimental import pallas as pl
from jax.experimental.pallas import tpu as pltpu

N_EMBD = 384          # matches the module's n_embd
BLOCK_SIZE = 256      # matches the module's block_size (causal mask capacity)
NEG_INF = -1e30       # finite mask sentinel: exp() underflows to exactly 0


def _self_attention_kernel(x_ref, wqkv_ref, o_ref, qkv_ref, *,
                           head_size, q_chunk, lane_dense):
    # x_ref:    (Bb, T, C)                 input tile (Bb batch rows)
    # wqkv_ref: (C, 3H)                    fused [q|k|v] weights (scale in q cols)
    # o_ref:    (Bb, T*H//128, 128)  or  (Bb, T, H)
    # qkv_ref:  (Bb*T, 3H)                 scratch, input dtype
    Bb, T, C = x_ref.shape
    H = head_size
    TQ = q_chunk
    nq = T // TQ
    cdt = x_ref.dtype                      # MXU operand dtype (bf16 fast path)
    odt = o_ref.dtype

    # ---- fused q/k/v projection: one (Bb*T, C) @ (C, 3H) matmul, f32 accum,
    # ---- stored back in the compute dtype (halves scratch + later loads). ----
    x2d = x_ref[...].reshape(Bb * T, C)
    qkv_ref[...] = jnp.dot(x2d, wqkv_ref[...],
                           preferred_element_type=jnp.float32).astype(cdt)

    # Narrow query-row iota, hoisted; per-chunk masks are built from it below.
    row_ids = jax.lax.broadcasted_iota(jnp.int32, (TQ, 1), 0)

    def process_row(b):
        row0 = b * T
        if not isinstance(row0, int):
            # Dynamic batch offset (fori_loop path): alignment hint for loads.
            if T % 128 == 0:
                row0 = pl.multiple_of(row0, 128)
            elif T % 8 == 0:
                row0 = pl.multiple_of(row0, 8)

        # TODO(synk): for 256-wide MXUs (v6e/v7x) the K=H=64 contractions
        # underfill the systolic array; a multi-head variant should pack heads
        # (or batch the dots across Bb with einsum) to reach K,N >= 128.
        for qi in range(nq):               # short, static -> keep unrolled
            qs = qi * TQ
            tk = qs + TQ                    # causal truncation: later keys are masked anyway

            # Slice the scratch Ref directly (no (T, 3H) slab load).
            q_c = qkv_ref[pl.ds(row0 + qs, TQ), 0:H]        # (TQ, H), scale pre-baked
            k_c = qkv_ref[pl.ds(row0, tk), H:2 * H]         # (tk, H)
            v_c = qkv_ref[pl.ds(row0, tk), 2 * H:3 * H]     # (tk, H)

            # Scores: contract the H axes directly ("NT" matmul, no explicit
            # transpose of k), f32 accumulation.
            s = jax.lax.dot_general(
                q_c, k_c,
                dimension_numbers=(((1,), (1,)), ((), ())),
                preferred_element_type=jnp.float32)          # (TQ, tk)

            # Causal mask: only the trailing (TQ, TQ) diagonal block can be
            # masked; the qs prefix columns are always visible.
            col_ids = jax.lax.broadcasted_iota(jnp.int32, (1, tk), 1)
            s = jnp.where(col_ids <= row_ids + qs, s, NEG_INF)

            # Softmax over the truncated key range (f32 elementwise).
            m = jnp.max(s, axis=-1, keepdims=True)
            p = jnp.exp(s - m)
            denom = jnp.sum(p, axis=-1, keepdims=True)

            # dropout: identity (eval mode)
            # TODO(synk): training-mode dropout on the attention weights
            # (pltpu.prng_seed / prng_random_bits) is not implemented.

            # PV matmul first, then normalize the (TQ, H) result: 4x fewer VPU
            # multiplies than scaling the (TQ, tk) probabilities.
            out_c = jnp.dot(p.astype(cdt), v_c,
                            preferred_element_type=jnp.float32)  # (TQ, H) f32
            out_c = out_c * pl.reciprocal(denom, approx=True)

            if lane_dense:
                # Repack (TQ, H<128) -> (TQ*H/128, 128): unmasked, lane-dense
                # stores into the output block (cheap XLU relayout).
                rows = TQ * H // 128
                out_blk = out_c.reshape(rows, 128).astype(odt)
                o_ref[pl.ds(b, 1), pl.ds(qs * H // 128, rows), :] = out_blk[None]
            else:
                o_ref[pl.ds(b, 1), pl.ds(qs, TQ), :] = out_c[None].astype(odt)

    if Bb > 4:
        # fori_loop bounds the per-row live ranges (an unrolled Python loop
        # would keep several (TQ, T) f32 score slabs live at once and spill).
        def body(b, carry):
            process_row(b)
            return carry
        jax.lax.fori_loop(0, Bb, body, 0)
    else:
        for b in range(Bb):
            process_row(b)


def _pick_batch_block(B, max_block=8):
    """Largest divisor of B that is <= max_block.

    Per-step compute dominates the ~0.35us grid-step overhead at realistic T,
    so this mainly sizes the per-step x DMA.  Single-TC chips (v5e/v6e) can use
    larger blocks freely; on v7x prefer a batch_block for which B // batch_block
    is even so both TensorCores get equal work (pass batch_block= explicitly).
    """
    for bb in range(min(max_block, B), 0, -1):
        if B % bb == 0:
            return bb
    return 1


def _attention_call(x, w_qkv, head_size, batch_block, q_chunk, lane_dense):
    B, T, C = x.shape
    H = head_size
    Bb = batch_block

    kernel = functools.partial(_self_attention_kernel, head_size=H,
                               q_chunk=q_chunk, lane_dense=lane_dense)

    if lane_dense:
        # Row-major (B, T*H//128, 128) is bit-identical to row-major (B, T, H),
        # so the wrapper-side reshape below is a pure metadata change.
        out_shape = jax.ShapeDtypeStruct((B, T * H // 128, 128), x.dtype)
        out_spec = pl.BlockSpec((Bb, T * H // 128, 128), lambda b: (b, 0, 0))
    else:
        out_shape = jax.ShapeDtypeStruct((B, T, H), x.dtype)
        out_spec = pl.BlockSpec((Bb, T, H), lambda b: (b, 0, 0))

    itemsize = jnp.dtype(x.dtype).itemsize
    cost = pl.CostEstimate(
        flops=B * (2 * T * C * 3 * H + 2 * T * T * H),   # projection + causal attn
        transcendentals=B * T * T // 2,
        bytes_accessed=(B * T * C * itemsize + C * 3 * H * itemsize
                        + B * T * H * itemsize),
    )

    out = pl.pallas_call(
        kernel,
        out_shape=out_shape,
        grid_spec=pltpu.PrefetchScalarGridSpec(
            num_scalar_prefetch=0,
            grid=(B // Bb,),
            in_specs=[
                pl.BlockSpec((Bb, T, C), lambda b: (b, 0, 0)),   # x: Bb batch rows
                pl.BlockSpec((C, 3 * H), lambda b: (0, 0)),      # fused qkv weight
            ],
            out_specs=out_spec,
            scratch_shapes=[pltpu.VMEM((Bb * T, 3 * H), x.dtype)],
        ),
        compiler_params=pltpu.CompilerParams(
            dimension_semantics=("parallel",),
        ),
        cost_estimate=cost,
    )(x, w_qkv)

    return out.reshape(B, T, H)


def self_attention(x, wq_t, wk_t, wv_t, *, batch_block=None, lane_dense=None):
    """x: (B, T, C); wq_t/wk_t/wv_t: (C, head_size) (already-transposed W.T)."""
    B, T, C = x.shape
    H = wq_t.shape[1]
    assert T <= BLOCK_SIZE, "sequence length exceeds block_size"
    scale = float(C) ** (-0.5)   # the module scales by the embedding dim C

    # Fuse [q|k|v] into one (C, 3H) weight; bake the score scale into the q
    # columns in f32 *before* the single cast to the compute dtype.
    w_qkv = jnp.concatenate(
        [wq_t.astype(jnp.float32) * scale,
         wk_t.astype(jnp.float32),
         wv_t.astype(jnp.float32)], axis=1).astype(x.dtype)

    Bb = batch_block if batch_block is not None else _pick_batch_block(B)
    assert B % Bb == 0, "batch block must divide the batch size"

    TQ = 128 if T % 128 == 0 else T          # query-row chunk size
    if lane_dense is None:
        lane_dense = (H % 128 != 0) and ((TQ * H) % 128 == 0)

    if lane_dense:
        try:
            out = _attention_call(x, w_qkv, H, Bb, TQ, True)
            return jax.block_until_ready(out)
        except Exception:
            # Portability fallback: if this Mosaic build cannot lower the
            # (TQ, H) -> (TQ*H/128, 128) repack, use the plain (masked-store)
            # output layout, which is always valid.
            pass
    return _attention_call(x, w_qkv, H, Bb, TQ, False)


def _reference(x, wq_t, wk_t, wv_t):
    """Pure-JAX f32 reference matching the PyTorch forward semantics."""
    B, T, C = x.shape
    xf = x.astype(jnp.float32)
    q = xf @ wq_t.astype(jnp.float32)
    k = xf @ wk_t.astype(jnp.float32)
    v = xf @ wv_t.astype(jnp.float32)
    wei = (q @ jnp.swapaxes(k, -2, -1)) * (float(C) ** (-0.5))
    tril = jnp.tril(jnp.ones((T, T), dtype=bool))
    wei = jnp.where(tril, wei, -jnp.inf)
    wei = jax.nn.softmax(wei, axis=-1)
    return wei @ v


if __name__ == "__main__":
    # Small but representative shapes: B=2, T=block_size=256, C=n_embd=384.
    B, T, C = 2, BLOCK_SIZE, N_EMBD
    head_size = 64

    key = jax.random.PRNGKey(0)
    kx, kq, kk, kv = jax.random.split(key, 4)

    # bf16 activations/weights: MXU runs at full rate with f32 accumulation.
    x = jax.random.normal(kx, (B, T, C), dtype=jnp.float32).astype(jnp.bfloat16)

    # nn.Linear(n_embd, head_size, bias=False) weights: (head_size, n_embd);
    # pass W.T = (C, head_size), rounded to the activation dtype.
    bound = 1.0 / (C ** 0.5)  # PyTorch default uniform(-1/sqrt(in), 1/sqrt(in))
    wq = jax.random.uniform(kq, (head_size, C), jnp.float32, -bound, bound)
    wk = jax.random.uniform(kk, (head_size, C), jnp.float32, -bound, bound)
    wv = jax.random.uniform(kv, (head_size, C), jnp.float32, -bound, bound)
    wq_t = wq.T.astype(jnp.bfloat16)
    wk_t = wk.T.astype(jnp.bfloat16)
    wv_t = wv.T.astype(jnp.bfloat16)

    out = self_attention(x, wq_t, wk_t, wv_t)
    out = jax.block_until_ready(out)

    ref = _reference(x, wq_t, wk_t, wv_t)
    assert out.shape == (B, T, head_size)
    out_f32 = out.astype(jnp.float32)
    max_err = float(jnp.max(jnp.abs(out_f32 - ref)))
    assert jnp.allclose(out_f32, ref, atol=2e-2, rtol=2e-2), (
        f"mismatch vs reference (max abs err {max_err})")

    print("KERNEL_OK")
</pallas_src>

<mosaic_0001>
module attributes {stable_mosaic.version = 11 : i64} {
  func.func @_self_attention_kernel(%arg0: i32, %arg1: memref<2x256x384xbf16, #tpu.memory_space<vmem>>, %arg2: memref<384x192xbf16, #tpu.memory_space<vmem>>, %arg3: memref<2x128x128xbf16, #tpu.memory_space<vmem>>, %arg4: memref<512x192xbf16, #tpu.memory_space<vmem>>) attributes {dimension_semantics = [#tpu.dimension_semantics<parallel>], iteration_bounds = array<i64: 1>, scalar_prefetch = 0 : i64, scratch_operands = 1 : i64, tpu.core_type = #tpu.core_type<tc>, window_params = [{transform_indices = @transform_0, window_bounds = array<i64: 2, 256, 384>}, {pipeline_mode = #tpu.pipeline_mode<synchronous>, transform_indices = @transform_1, window_bounds = array<i64: 384, 192>}, {transform_indices = @transform_2, window_bounds = array<i64: 2, 128, 128>}]} {
    %c0 = arith.constant 0 : index
    %c0_0 = arith.constant 0 : index
    %c0_1 = arith.constant 0 : index
    %0 = vector.load %arg1[%c0, %c0_0, %c0_1] : memref<2x256x384xbf16, #tpu.memory_space<vmem>>, vector<2x256x384xbf16>
    %1 = vector.shape_cast %0 : vector<2x256x384xbf16> to vector<512x384xbf16>
    %c0_2 = arith.constant 0 : index
    %c0_3 = arith.constant 0 : index
    %2 = vector.load %arg2[%c0_2, %c0_3] : memref<384x192xbf16, #tpu.memory_space<vmem>>, vector<384x192xbf16>
    %cst = arith.constant dense<0.000000e+00> : vector<512x192xf32>
    %3 = tpu.matmul %1, %2, %cst {dimension_numbers = #tpu.dot_dimension_numbers<[1], [0], [0], [1], [0, 0, 1, 1], [], []>} : vector<512x384xbf16>, vector<384x192xbf16>, vector<512x192xf32> -> vector<512x192xf32>
    %4 = arith.truncf %3 : vector<512x192xf32> to vector<512x192xbf16>
    %c0_4 = arith.constant 0 : index
    %c0_5 = arith.constant 0 : index
    %5 = vector.load %arg4[%c0_4, %c0_5] : memref<512x192xbf16, #tpu.memory_space<vmem>>, vector<512x192xbf16>
    tpu.vector_store %arg4[%c0_4, %c0_5], %4 {strides = array<i32>} : memref<512x192xbf16, #tpu.memory_space<vmem>>, vector<512x192xbf16>,
    %6 = tpu.iota {dimensions = array<i32: 0>} : vector<128x1xi32>
    %c0_6 = arith.constant 0 : index
    %c0_7 = arith.constant 0 : index
    %7 = vector.load %arg4[%c0_6, %c0_7] : memref<512x192xbf16, #tpu.memory_space<vmem>>, vector<128x64xbf16>
    %c0_8 = arith.constant 0 : index
    %c64 = arith.constant 64 : index
    %8 = vector.load %arg4[%c0_8, %c64] : memref<512x192xbf16, #tpu.memory_space<vmem>>, vector<128x64xbf16>
    %c0_9 = arith.constant 0 : index
    %c128 = arith.constant 128 : index
    %9 = vector.load %arg4[%c0_9, %c128] : memref<512x192xbf16, #tpu.memory_space<vmem>>, vector<128x64xbf16>
    %cst_10 = arith.constant dense<0.000000e+00> : vector<128x128xf32>
    %10 = tpu.matmul %7, %8, %cst_10 {dimension_numbers = #tpu.dot_dimension_numbers<[1], [1], [0], [0], [0, 0, 1, 0], [], []>} : vector<128x64xbf16>, vector<128x64xbf16>, vector<128x128xf32> -> vector<128x128xf32>
    %11 = tpu.iota {dimensions = array<i32: 1>} : vector<1x128xi32>
    %c0_i32 = arith.constant 0 : i32
    %12 = vector.broadcast %c0_i32 : i32 to vector<128x1xi32>
    %13 = arith.addi %6, %12 : vector<128x1xi32>
    %14 = vector.broadcast %11 : vector<1x128xi32> to vector<128x128xi32>
    %15 = vector.broadcast %13 : vector<128x1xi32> to vector<128x128xi32>
    %16 = arith.cmpi sle, %14, %15 : vector<128x128xi32>
    %cst_11 = arith.constant -1.000000e+30 : f32
    %17 = vector.broadcast %cst_11 : f32 to vector<128x128xf32>
    %18 = arith.select %16, %10, %17 : vector<128x128xi1>, vector<128x128xf32>
    %cst_12 = arith.constant dense<0xFF800000> : vector<128xf32>
    %19 = vector.multi_reduction <maximumf>, %18, %cst_12 [1] : vector<128x128xf32> to vector<128xf32>
    %20 = vector.shape_cast %19 : vector<128xf32> to vector<128x1xf32>
    %21 = vector.broadcast %20 : vector<128x1xf32> to vector<128x128xf32>
    %22 = arith.subf %18, %21 : vector<128x128xf32>
    %23 = math.exp %22 : vector<128x128xf32>
    %cst_13 = arith.constant dense<0.000000e+00> : vector<128xf32>
    %24 = vector.multi_reduction <add>, %23, %cst_13 [1] : vector<128x128xf32> to vector<128xf32>
    %25 = vector.shape_cast %24 : vector<128xf32> to vector<128x1xf32>
    %26 = arith.truncf %23 : vector<128x128xf32> to vector<128x128xbf16>
    %cst_14 = arith.constant dense<0.000000e+00> : vector<128x64xf32>
    %27 = tpu.matmul %26, %9, %cst_14 {dimension_numbers = #tpu.dot_dimension_numbers<[1], [0], [0], [1], [0, 0, 1, 1], [], []>} : vector<128x128xbf16>, vector<128x64xbf16>, vector<128x64xf32> -> vector<128x64xf32>
    %28 = tpu.reciprocal %25 {approx = true} : vector<128x1xf32> -> vector<128x1xf32>
    %29 = vector.broadcast %28 : vector<128x1xf32> to vector<128x64xf32>
    %30 = arith.mulf %27, %29 : vector<128x64xf32>
    %31 = vector.shape_cast %30 : vector<128x64xf32> to vector<64x128xf32>
    %32 = arith.truncf %31 : vector<64x128xf32> to vector<64x128xbf16>
    %33 = vector.shape_cast %32 : vector<64x128xbf16> to vector<1x64x128xbf16>
    %c0_15 = arith.constant 0 : index
    %c0_16 = arith.constant 0 : index
    %c0_17 = arith.constant 0 : index
    %34 = vector.load %arg3[%c0_15, %c0_16, %c0_17] : memref<2x128x128xbf16, #tpu.memory_space<vmem>>, vector<1x64x128xbf16>
    tpu.vector_store %arg3[%c0_15, %c0_16, %c0_17], %33 {strides = array<i32>} : memref<2x128x128xbf16, #tpu.memory_space<vmem>>, vector<1x64x128xbf16>,
    %c128_18 = arith.constant 128 : index
    %c0_19 = arith.constant 0 : index
    %35 = vector.load %arg4[%c128_18, %c0_19] : memref<512x192xbf16, #tpu.memory_space<vmem>>, vector<128x64xbf16>
    %c0_20 = arith.constant 0 : index
    %c64_21 = arith.constant 64 : index
    %36 = vector.load %arg4[%c0_20, %c64_21] : memref<512x192xbf16, #tpu.memory_space<vmem>>, vector<256x64xbf16>
    %c0_22 = arith.constant 0 : index
    %c128_23 = arith.constant 128 : index
    %37 = vector.load %arg4[%c0_22, %c128_23] : memref<512x192xbf16, #tpu.memory_space<vmem>>, vector<256x64xbf16>
    %cst_24 = arith.constant dense<0.000000e+00> : vector<128x256xf32>
    %38 = tpu.matmul %35, %36, %cst_24 {dimension_numbers = #tpu.dot_dimension_numbers<[1], [1], [0], [0], [0, 0, 1, 0], [], []>} : vector<128x64xbf16>, vector<256x64xbf16>, vector<128x256xf32> -> vector<128x256xf32>
    %39 = tpu.iota {dimensions = array<i32: 1>} : vector<1x256xi32>
    %c128_i32 = arith.constant 128 : i32
    %40 = vector.broadcast %c128_i32 : i32 to vector<128x1xi32>
    %41 = arith.addi %6, %40 : vector<128x1xi32>
    %42 = vector.broadcast %39 : vector<1x256xi32> to vector<128x256xi32>
    %43 = vector.broadcast %41 : vector<128x1xi32> to vector<128x256xi32>
    %44 = arith.cmpi sle, %42, %43 : vector<128x256xi32>
    %cst_25 = arith.constant -1.000000e+30 : f32
    %45 = vector.broadcast %cst_25 : f32 to vector<128x256xf32>
    %46 = arith.select %44, %38, %45 : vector<128x256xi1>, vector<128x256xf32>
    %cst_26 = arith.constant dense<0xFF800000> : vector<128xf32>
    %47 = vector.multi_reduction <maximumf>, %46, %cst_26 [1] : vector<128x256xf32> to vector<128xf32>
    %48 = vector.shape_cast %47 : vector<128xf32> to vector<128x1xf32>
    %49 = vector.broadcast %48 : vector<128x1xf32> to vector<128x256xf32>
    %50 = arith.subf %46, %49 : vector<128x256xf32>
    %51 = math.exp %50 : vector<128x256xf32>
    %cst_27 = arith.constant dense<0.000000e+00> : vector<128xf32>
    %52 = vector.multi_reduction <add>, %51, %cst_27 [1] : vector<128x256xf32> to vector<128xf32>
    %53 = vector.shape_cast %52 : vector<128xf32> to vector<128x1xf32>
    %54 = arith.truncf %51 : vector<128x256xf32> to vector<128x256xbf16>
    %cst_28 = arith.constant dense<0.000000e+00> : vector<128x64xf32>
    %55 = tpu.matmul %54, %37, %cst_28 {dimension_numbers = #tpu.dot_dimension_numbers<[1], [0], [0], [1], [0, 0, 1, 1], [], []>} : vector<128x256xbf16>, vector<256x64xbf16>, vector<128x64xf32> -> vector<128x64xf32>
    %56 = tpu.reciprocal %53 {approx = true} : vector<128x1xf32> -> vector<128x1xf32>
    %57 = vector.broadcast %56 : vector<128x1xf32> to vector<128x64xf32>
    %58 = arith.mulf %55, %57 : vector<128x64xf32>
    %59 = vector.shape_cast %58 : vector<128x64xf32> to vector<64x128xf32>
    %60 = arith.truncf %59 : vector<64x128xf32> to vector<64x128xbf16>
    %61 = vector.shape_cast %60 : vector<64x128xbf16> to vector<1x64x128xbf16>
    %c0_29 = arith.constant 0 : index
    %c64_30 = arith.constant 64 : index
    %c0_31 = arith.constant 0 : index
    %62 = vector.load %arg3[%c0_29, %c64_30, %c0_31] : memref<2x128x128xbf16, #tpu.memory_space<vmem>>, vector<1x64x128xbf16>
    tpu.vector_store %arg3[%c0_29, %c64_30, %c0_31], %61 {strides = array<i32>} : memref<2x128x128xbf16, #tpu.memory_space<vmem>>, vector<1x64x128xbf16>,
    %c256 = arith.constant 256 : index
    %c0_32 = arith.constant 0 : index
    %63 = vector.load %arg4[%c256, %c0_32] : memref<512x192xbf16, #tpu.memory_space<vmem>>, vector<128x64xbf16>
    %c256_33 = arith.constant 256 : index
    %c64_34 = arith.constant 64 : index
    %64 = vector.load %arg4[%c256_33, %c64_34] : memref<512x192xbf16, #tpu.memory_space<vmem>>, vector<128x64xbf16>
    %c256_35 = arith.constant 256 : index
    %c128_36 = arith.constant 128 : index
    %65 = vector.load %arg4[%c256_35, %c128_36] : memref<512x192xbf16, #tpu.memory_space<vmem>>, vector<128x64xbf16>
    %cst_37 = arith.constant dense<0.000000e+00> : vector<128x128xf32>
    %66 = tpu.matmul %63, %64, %cst_37 {dimension_numbers = #tpu.dot_dimension_numbers<[1], [1], [0], [0], [0, 0, 1, 0], [], []>} : vector<128x64xbf16>, vector<128x64xbf16>, vector<128x128xf32> -> vector<128x128xf32>
    %67 = tpu.iota {dimensions = array<i32: 1>} : vector<1x128xi32>
    %c0_i32_38 = arith.constant 0 : i32
    %68 = vector.broadcast %c0_i32_38 : i32 to vector<128x1xi32>
    %69 = arith.addi %6, %68 : vector<128x1xi32>
    %70 = vector.broadcast %67 : vector<1x128xi32> to vector<128x128xi32>
    %71 = vector.broadcast %69 : vector<128x1xi32> to vector<128x128xi32>
    %72 = arith.cmpi sle, %70, %71 : vector<128x128xi32>
    %cst_39 = arith.constant -1.000000e+30 : f32
    %73 = vector.broadcast %cst_39 : f32 to vector<128x128xf32>
    %74 = arith.select %72, %66, %73 : vector<128x128xi1>, vector<128x128xf32>
    %cst_40 = arith.constant dense<0xFF800000> : vector<128xf32>
    %75 = vector.multi_reduction <maximumf>, %74, %cst_40 [1] : vector<128x128xf32> to vector<128xf32>
    %76 = vector.shape_cast %75 : vector<128xf32> to vector<128x1xf32>
    %77 = vector.broadcast %76 : vector<128x1xf32> to vector<128x128xf32>
    %78 = arith.subf %74, %77 : vector<128x128xf32>
    %79 = math.exp %78 : vector<128x128xf32>
    %cst_41 = arith.constant dense<0.000000e+00> : vector<128xf32>
    %80 = vector.multi_reduction <add>, %79, %cst_41 [1] : vector<128x128xf32> to vector<128xf32>
    %81 = vector.shape_cast %80 : vector<128xf32> to vector<128x1xf32>
    %82 = arith.truncf %79 : vector<128x128xf32> to vector<128x128xbf16>
    %cst_42 = arith.constant dense<0.000000e+00> : vector<128x64xf32>
    %83 = tpu.matmul %82, %65, %cst_42 {dimension_numbers = #tpu.dot_dimension_numbers<[1], [0], [0], [1], [0, 0, 1, 1], [], []>} : vector<128x128xbf16>, vector<128x64xbf16>, vector<128x64xf32> -> vector<128x64xf32>
    %84 = tpu.reciprocal %81 {approx = true} : vector<128x1xf32> -> vector<128x1xf32>
    %85 = vector.broadcast %84 : vector<128x1xf32> to vector<128x64xf32>
    %86 = arith.mulf %83, %85 : vector<128x64xf32>
    %87 = vector.shape_cast %86 : vector<128x64xf32> to vector<64x128xf32>
    %88 = arith.truncf %87 : vector<64x128xf32> to vector<64x128xbf16>
    %89 = vector.shape_cast %88 : vector<64x128xbf16> to vector<1x64x128xbf16>
    %c1 = arith.constant 1 : index
    %c0_43 = arith.constant 0 : index
    %c0_44 = arith.constant 0 : index
    %90 = vector.load %arg3[%c1, %c0_43, %c0_44] : memref<2x128x128xbf16, #tpu.memory_space<vmem>>, vector<1x64x128xbf16>
    tpu.vector_store %arg3[%c1, %c0_43, %c0_44], %89 {strides = array<i32>} : memref<2x128x128xbf16, #tpu.memory_space<vmem>>, vector<1x64x128xbf16>,
    %c384 = arith.constant 384 : index
    %c0_45 = arith.constant 0 : index
    %91 = vector.load %arg4[%c384, %c0_45] : memref<512x192xbf16, #tpu.memory_space<vmem>>, vector<128x64xbf16>
    %c256_46 = arith.constant 256 : index
    %c64_47 = arith.constant 64 : index
    %92 = vector.load %arg4[%c256_46, %c64_47] : memref<512x192xbf16, #tpu.memory_space<vmem>>, vector<256x64xbf16>
    %c256_48 = arith.constant 256 : index
    %c128_49 = arith.constant 128 : index
    %93 = vector.load %arg4[%c256_48, %c128_49] : memref<512x192xbf16, #tpu.memory_space<vmem>>, vector<256x64xbf16>
    %cst_50 = arith.constant dense<0.000000e+00> : vector<128x256xf32>
    %94 = tpu.matmul %91, %92, %cst_50 {dimension_numbers = #tpu.dot_dimension_numbers<[1], [1], [0], [0], [0, 0, 1, 0], [], []>} : vector<128x64xbf16>, vector<256x64xbf16>, vector<128x256xf32> -> vector<128x256xf32>
    %95 = tpu.iota {dimensions = array<i32: 1>} : vector<1x256xi32>
    %c128_i32_51 = arith.constant 128 : i32
    %96 = vector.broadcast %c128_i32_51 : i32 to vector<128x1xi32>
    %97 = arith.addi %6, %96 : vector<128x1xi32>
    %98 = vector.broadcast %95 : vector<1x256xi32> to vector<128x256xi32>
    %99 = vector.broadcast %97 : vector<128x1xi32> to vector<128x256xi32>
    %100 = arith.cmpi sle, %98, %99 : vector<128x256xi32>
    %cst_52 = arith.constant -1.000000e+30 : f32
    %101 = vector.broadcast %cst_52 : f32 to vector<128x256xf32>
    %102 = arith.select %100, %94, %101 : vector<128x256xi1>, vector<128x256xf32>
    %cst_53 = arith.constant dense<0xFF800000> : vector<128xf32>
    %103 = vector.multi_reduction <maximumf>, %102, %cst_53 [1] : vector<128x256xf32> to vector<128xf32>
    %104 = vector.shape_cast %103 : vector<128xf32> to vector<128x1xf32>
    %105 = vector.broadcast %104 : vector<128x1xf32> to vector<128x256xf32>
    %106 = arith.subf %102, %105 : vector<128x256xf32>
    %107 = math.exp %106 : vector<128x256xf32>
    %cst_54 = arith.constant dense<0.000000e+00> : vector<128xf32>
    %108 = vector.multi_reduction <add>, %107, %cst_54 [1] : vector<128x256xf32> to vector<128xf32>
    %109 = vector.shape_cast %108 : vector<128xf32> to vector<128x1xf32>
    %110 = arith.truncf %107 : vector<128x256xf32> to vector<128x256xbf16>
    %cst_55 = arith.constant dense<0.000000e+00> : vector<128x64xf32>
    %111 = tpu.matmul %110, %93, %cst_55 {dimension_numbers = #tpu.dot_dimension_numbers<[1], [0], [0], [1], [0, 0, 1, 1], [], []>} : vector<128x256xbf16>, vector<256x64xbf16>, vector<128x64xf32> -> vector<128x64xf32>
    %112 = tpu.reciprocal %109 {approx = true} : vector<128x1xf32> -> vector<128x1xf32>
    %113 = vector.broadcast %112 : vector<128x1xf32> to vector<128x64xf32>
    %114 = arith.mulf %111, %113 : vector<128x64xf32>
    %115 = vector.shape_cast %114 : vector<128x64xf32> to vector<64x128xf32>
    %116 = arith.truncf %115 : vector<64x128xf32> to vector<64x128xbf16>
    %117 = vector.shape_cast %116 : vector<64x128xbf16> to vector<1x64x128xbf16>
    %c1_56 = arith.constant 1 : index
    %c64_57 = arith.constant 64 : index
    %c0_58 = arith.constant 0 : index
    %118 = vector.load %arg3[%c1_56, %c64_57, %c0_58] : memref<2x128x128xbf16, #tpu.memory_space<vmem>>, vector<1x64x128xbf16>
    tpu.vector_store %arg3[%c1_56, %c64_57, %c0_58], %117 {strides = array<i32>} : memref<2x128x128xbf16, #tpu.memory_space<vmem>>, vector<1x64x128xbf16>,
    return
  }
  func.func @transform_0(%arg0: i32) -> (i32, i32, i32) {
    %c0_i32 = arith.constant 0 : i32
    %c0_i32_0 = arith.constant 0 : i32
    %c0_i32_1 = arith.constant 0 : i32
    return %arg0, %c0_i32, %c0_i32_0 : i32, i32, i32
  }
  func.func @transform_1(%arg0: i32) -> (i32, i32) {
    %c0_i32 = arith.constant 0 : i32
    %c0_i32_0 = arith.constant 0 : i32
    %c0_i32_1 = arith.constant 0 : i32
    return %c0_i32, %c0_i32_0 : i32, i32
  }
  func.func @transform_2(%arg0: i32) -> (i32, i32, i32) {
    %c0_i32 = arith.constant 0 : i32
    %c0_i32_0 = arith.constant 0 : i32
    %c0_i32_1 = arith.constant 0 : i32
    return %arg0, %c0_i32, %c0_i32_0 : i32, i32, i32
  }
}

module attributes {stable_mosaic.version = 11 : i64} {
  func.func @_self_attention_kernel(%arg0: i32, %arg1: memref<2x256x384xbf16, #tpu.memory_space<vmem>>, %arg2: memref<384x192xbf16, #tpu.memory_space<vmem>>, %arg3: memref<2x256x64xbf16, #tpu.memory_space<vmem>>, %arg4: memref<512x192xbf16, #tpu.memory_space<vmem>>) attributes {dimension_semantics = [#tpu.dimension_semantics<parallel>], iteration_bounds = array<i64: 1>, scalar_prefetch = 0 : i64, scratch_operands = 1 : i64, tpu.core_type = #tpu.core_type<tc>, window_params = [{transform_indices = @transform_0, window_bounds = array<i64: 2, 256, 384>}, {pipeline_mode = #tpu.pipeline_mode<synchronous>, transform_indices = @transform_1, window_bounds = array<i64: 384, 192>}, {transform_indices = @transform_2, window_bounds = array<i64: 2, 256, 64>}]} {
    %c0 = arith.constant 0 : index
    %c0_0 = arith.constant 0 : index
    %c0_1 = arith.constant 0 : index
    %0 = vector.load %arg1[%c0, %c0_0, %c0_1] : memref<2x256x384xbf16, #tpu.memory_space<vmem>>, vector<2x256x384xbf16>
    %1 = vector.shape_cast %0 : vector<2x256x384xbf16> to vector<512x384xbf16>
    %c0_2 = arith.constant 0 : index
    %c0_3 = arith.constant 0 : index
    %2 = vector.load %arg2[%c0_2, %c0_3] : memref<384x192xbf16, #tpu.memory_space<vmem>>, vector<384x192xbf16>
    %cst = arith.constant dense<0.000000e+00> : vector<512x192xf32>
    %3 = tpu.matmul %1, %2, %cst {dimension_numbers = #tpu.dot_dimension_numbers<[1], [0], [0], [1], [0, 0, 1, 1], [], []>} : vector<512x384xbf16>, vector<384x192xbf16>, vector<512x192xf32> -> vector<512x192xf32>
    %4 = arith.truncf %3 : vector<512x192xf32> to vector<512x192xbf16>
    %c0_4 = arith.constant 0 : index
    %c0_5 = arith.constant 0 : index
    %5 = vector.load %arg4[%c0_4, %c0_5] : memref<512x192xbf16, #tpu.memory_space<vmem>>, vector<512x192xbf16>
    tpu.vector_store %arg4[%c0_4, %c0_5], %4 {strides = array<i32>} : memref<512x192xbf16, #tpu.memory_space<vmem>>, vector<512x192xbf16>,
    %6 = tpu.iota {dimensions = array<i32: 0>} : vector<128x1xi32>
    %c0_6 = arith.constant 0 : index
    %c0_7 = arith.constant 0 : index
    %7 = vector.load %arg4[%c0_6, %c0_7] : memref<512x192xbf16, #tpu.memory_space<vmem>>, vector<128x64xbf16>
    %c0_8 = arith.constant 0 : index
    %c64 = arith.constant 64 : index
    %8 = vector.load %arg4[%c0_8, %c64] : memref<512x192xbf16, #tpu.memory_space<vmem>>, vector<128x64xbf16>
    %c0_9 = arith.constant 0 : index
    %c128 = arith.constant 128 : index
    %9 = vector.load %arg4[%c0_9, %c128] : memref<512x192xbf16, #tpu.memory_space<vmem>>, vector<128x64xbf16>
    %cst_10 = arith.constant dense<0.000000e+00> : vector<128x128xf32>
    %10 = tpu.matmul %7, %8, %cst_10 {dimension_numbers = #tpu.dot_dimension_numbers<[1], [1], [0], [0], [0, 0, 1, 0], [], []>} : vector<128x64xbf16>, vector<128x64xbf16>, vector<128x128xf32> -> vector<128x128xf32>
    %11 = tpu.iota {dimensions = array<i32: 1>} : vector<1x128xi32>
    %c0_i32 = arith.constant 0 : i32
    %12 = vector.broadcast %c0_i32 : i32 to vector<128x1xi32>
    %13 = arith.addi %6, %12 : vector<128x1xi32>
    %14 = vector.broadcast %11 : vector<1x128xi32> to vector<128x128xi32>
    %15 = vector.broadcast %13 : vector<128x1xi32> to vector<128x128xi32>
    %16 = arith.cmpi sle, %14, %15 : vector<128x128xi32>
    %cst_11 = arith.constant -1.000000e+30 : f32
    %17 = vector.broadcast %cst_11 : f32 to vector<128x128xf32>
    %18 = arith.select %16, %10, %17 : vector<128x128xi1>, vector<128x128xf32>
    %cst_12 = arith.constant dense<0xFF800000> : vector<128xf32>
    %19 = vector.multi_reduction <maximumf>, %18, %cst_12 [1] : vector<128x128xf32> to vector<128xf32>
    %20 = vector.shape_cast %19 : vector<128xf32> to vector<128x1xf32>
    %21 = vector.broadcast %20 : vector<128x1xf32> to vector<128x128xf32>
    %22 = arith.subf %18, %21 : vector<128x128xf32>
    %23 = math.exp %22 : vector<128x128xf32>
    %cst_13 = arith.constant dense<0.000000e+00> : vector<128xf32>
    %24 = vector.multi_reduction <add>, %23, %cst_13 [1] : vector<128x128xf32> to vector<128xf32>
    %25 = vector.shape_cast %24 : vector<128xf32> to vector<128x1xf32>
    %26 = arith.truncf %23 : vector<128x128xf32> to vector<128x128xbf16>
    %cst_14 = arith.constant dense<0.000000e+00> : vector<128x64xf32>
    %27 = tpu.matmul %26, %9, %cst_14 {dimension_numbers = #tpu.dot_dimension_numbers<[1], [0], [0], [1], [0, 0, 1, 1], [], []>} : vector<128x128xbf16>, vector<128x64xbf16>, vector<128x64xf32> -> vector<128x64xf32>
    %28 = tpu.reciprocal %25 {approx = true} : vector<128x1xf32> -> vector<128x1xf32>
    %29 = vector.broadcast %28 : vector<128x1xf32> to vector<128x64xf32>
    %30 = arith.mulf %27, %29 : vector<128x64xf32>
    %31 = vector.shape_cast %30 : vector<128x64xf32> to vector<1x128x64xf32>
    %32 = arith.truncf %31 : vector<1x128x64xf32> to vector<1x128x64xbf16>
    %c0_15 = arith.constant 0 : index
    %c0_16 = arith.constant 0 : index
    %c0_17 = arith.constant 0 : index
    %33 = vector.load %arg3[%c0_15, %c0_16, %c0_17] : memref<2x256x64xbf16, #tpu.memory_space<vmem>>, vector<1x128x64xbf16>
    tpu.vector_store %arg3[%c0_15, %c0_16, %c0_17], %32 {strides = array<i32>} : memref<2x256x64xbf16, #tpu.memory_space<vmem>>, vector<1x128x64xbf16>,
    %c128_18 = arith.constant 128 : index
    %c0_19 = arith.constant 0 : index
    %34 = vector.load %arg4[%c128_18, %c0_19] : memref<512x192xbf16, #tpu.memory_space<vmem>>, vector<128x64xbf16>
    %c0_20 = arith.constant 0 : index
    %c64_21 = arith.constant 64 : index
    %35 = vector.load %arg4[%c0_20, %c64_21] : memref<512x192xbf16, #tpu.memory_space<vmem>>, vector<256x64xbf16>
    %c0_22 = arith.constant 0 : index
    %c128_23 = arith.constant 128 : index
    %36 = vector.load %arg4[%c0_22, %c128_23] : memref<512x192xbf16, #tpu.memory_space<vmem>>, vector<256x64xbf16>
    %cst_24 = arith.constant dense<0.000000e+00> : vector<128x256xf32>
    %37 = tpu.matmul %34, %35, %cst_24 {dimension_numbers = #tpu.dot_dimension_numbers<[1], [1], [0], [0], [0, 0, 1, 0], [], []>} : vector<128x64xbf16>, vector<256x64xbf16>, vector<128x256xf32> -> vector<128x256xf32>
    %38 = tpu.iota {dimensions = array<i32: 1>} : vector<1x256xi32>
    %c128_i32 = arith.constant 128 : i32
    %39 = vector.broadcast %c128_i32 : i32 to vector<128x1xi32>
    %40 = arith.addi %6, %39 : vector<128x1xi32>
    %41 = vector.broadcast %38 : vector<1x256xi32> to vector<128x256xi32>
    %42 = vector.broadcast %40 : vector<128x1xi32> to vector<128x256xi32>
    %43 = arith.cmpi sle, %41, %42 : vector<128x256xi32>
    %cst_25 = arith.constant -1.000000e+30 : f32
    %44 = vector.broadcast %cst_25 : f32 to vector<128x256xf32>
    %45 = arith.select %43, %37, %44 : vector<128x256xi1>, vector<128x256xf32>
    %cst_26 = arith.constant dense<0xFF800000> : vector<128xf32>
    %46 = vector.multi_reduction <maximumf>, %45, %cst_26 [1] : vector<128x256xf32> to vector<128xf32>
    %47 = vector.shape_cast %46 : vector<128xf32> to vector<128x1xf32>
    %48 = vector.broadcast %47 : vector<128x1xf32> to vector<128x256xf32>
    %49 = arith.subf %45, %48 : vector<128x256xf32>
    %50 = math.exp %49 : vector<128x256xf32>
    %cst_27 = arith.constant dense<0.000000e+00> : vector<128xf32>
    %51 = vector.multi_reduction <add>, %50, %cst_27 [1] : vector<128x256xf32> to vector<128xf32>
    %52 = vector.shape_cast %51 : vector<128xf32> to vector<128x1xf32>
    %53 = arith.truncf %50 : vector<128x256xf32> to vector<128x256xbf16>
    %cst_28 = arith.constant dense<0.000000e+00> : vector<128x64xf32>
    %54 = tpu.matmul %53, %36, %cst_28 {dimension_numbers = #tpu.dot_dimension_numbers<[1], [0], [0], [1], [0, 0, 1, 1], [], []>} : vector<128x256xbf16>, vector<256x64xbf16>, vector<128x64xf32> -> vector<128x64xf32>
    %55 = tpu.reciprocal %52 {approx = true} : vector<128x1xf32> -> vector<128x1xf32>
    %56 = vector.broadcast %55 : vector<128x1xf32> to vector<128x64xf32>
    %57 = arith.mulf %54, %56 : vector<128x64xf32>
    %58 = vector.shape_cast %57 : vector<128x64xf32> to vector<1x128x64xf32>
    %59 = arith.truncf %58 : vector<1x128x64xf32> to vector<1x128x64xbf16>
    %c0_29 = arith.constant 0 : index
    %c128_30 = arith.constant 128 : index
    %c0_31 = arith.constant 0 : index
    %60 = vector.load %arg3[%c0_29, %c128_30, %c0_31] : memref<2x256x64xbf16, #tpu.memory_space<vmem>>, vector<1x128x64xbf16>
    tpu.vector_store %arg3[%c0_29, %c128_30, %c0_31], %59 {strides = array<i32>} : memref<2x256x64xbf16, #tpu.memory_space<vmem>>, vector<1x128x64xbf16>,
    %c256 = arith.constant 256 : index
    %c0_32 = arith.constant 0 : index
    %61 = vector.load %arg4[%c256, %c0_32] : memref<512x192xbf16, #tpu.memory_space<vmem>>, vector<128x64xbf16>
    %c256_33 = arith.constant 256 : index
    %c64_34 = arith.constant 64 : index
    %62 = vector.load %arg4[%c256_33, %c64_34] : memref<512x192xbf16, #tpu.memory_space<vmem>>, vector<128x64xbf16>
    %c256_35 = arith.constant 256 : index
    %c128_36 = arith.constant 128 : index
    %63 = vector.load %arg4[%c256_35, %c128_36] : memref<512x192xbf16, #tpu.memory_space<vmem>>, vector<128x64xbf16>
    %cst_37 = arith.constant dense<0.000000e+00> : vector<128x128xf32>
    %64 = tpu.matmul %61, %62, %cst_37 {dimension_numbers = #tpu.dot_dimension_numbers<[1], [1], [0], [0], [0, 0, 1, 0], [], []>} : vector<128x64xbf16>, vector<128x64xbf16>, vector<128x128xf32> -> vector<128x128xf32>
    %65 = tpu.iota {dimensions = array<i32: 1>} : vector<1x128xi32>
    %c0_i32_38 = arith.constant 0 : i32
    %66 = vector.broadcast %c0_i32_38 : i32 to vector<128x1xi32>
    %67 = arith.addi %6, %66 : vector<128x1xi32>
    %68 = vector.broadcast %65 : vector<1x128xi32> to vector<128x128xi32>
    %69 = vector.broadcast %67 : vector<128x1xi32> to vector<128x128xi32>
    %70 = arith.cmpi sle, %68, %69 : vector<128x128xi32>
    %cst_39 = arith.constant -1.000000e+30 : f32
    %71 = vector.broadcast %cst_39 : f32 to vector<128x128xf32>
    %72 = arith.select %70, %64, %71 : vector<128x128xi1>, vector<128x128xf32>
    %cst_40 = arith.constant dense<0xFF800000> : vector<128xf32>
    %73 = vector.multi_reduction <maximumf>, %72, %cst_40 [1] : vector<128x128xf32> to vector<128xf32>
    %74 = vector.shape_cast %73 : vector<128xf32> to vector<128x1xf32>
    %75 = vector.broadcast %74 : vector<128x1xf32> to vector<128x128xf32>
    %76 = arith.subf %72, %75 : vector<128x128xf32>
    %77 = math.exp %76 : vector<128x128xf32>
    %cst_41 = arith.constant dense<0.000000e+00> : vector<128xf32>
    %78 = vector.multi_reduction <add>, %77, %cst_41 [1] : vector<128x128xf32> to vector<128xf32>
    %79 = vector.shape_cast %78 : vector<128xf32> to vector<128x1xf32>
    %80 = arith.truncf %77 : vector<128x128xf32> to vector<128x128xbf16>
    %cst_42 = arith.constant dense<0.000000e+00> : vector<128x64xf32>
    %81 = tpu.matmul %80, %63, %cst_42 {dimension_numbers = #tpu.dot_dimension_numbers<[1], [0], [0], [1], [0, 0, 1, 1], [], []>} : vector<128x128xbf16>, vector<128x64xbf16>, vector<128x64xf32> -> vector<128x64xf32>
    %82 = tpu.reciprocal %79 {approx = true} : vector<128x1xf32> -> vector<128x1xf32>
    %83 = vector.broadcast %82 : vector<128x1xf32> to vector<128x64xf32>
    %84 = arith.mulf %81, %83 : vector<128x64xf32>
    %85 = vector.shape_cast %84 : vector<128x64xf32> to vector<1x128x64xf32>
    %86 = arith.truncf %85 : vector<1x128x64xf32> to vector<1x128x64xbf16>
    %c1 = arith.constant 1 : index
    %c0_43 = arith.constant 0 : index
    %c0_44 = arith.constant 0 : index
    %87 = vector.load %arg3[%c1, %c0_43, %c0_44] : memref<2x256x64xbf16, #tpu.memory_space<vmem>>, vector<1x128x64xbf16>
    tpu.vector_store %arg3[%c1, %c0_43, %c0_44], %86 {strides = array<i32>} : memref<2x256x64xbf16, #tpu.memory_space<vmem>>, vector<1x128x64xbf16>,
    %c384 = arith.constant 384 : index
    %c0_45 = arith.constant 0 : index
    %88 = vector.load %arg4[%c384, %c0_45] : memref<512x192xbf16, #tpu.memory_space<vmem>>, vector<128x64xbf16>
    %c256_46 = arith.constant 256 : index
    %c64_47 = arith.constant 64 : index
    %89 = vector.load %arg4[%c256_46, %c64_47] : memref<512x192xbf16, #tpu.memory_space<vmem>>, vector<256x64xbf16>
    %c256_48 = arith.constant 256 : index
    %c128_49 = arith.constant 128 : index
    %90 = vector.load %arg4[%c256_48, %c128_49] : memref<512x192xbf16, #tpu.memory_space<vmem>>, vector<256x64xbf16>
    %cst_50 = arith.constant dense<0.000000e+00> : vector<128x256xf32>
    %91 = tpu.matmul %88, %89, %cst_50 {dimension_numbers = #tpu.dot_dimension_numbers<[1], [1], [0], [0], [0, 0, 1, 0], [], []>} : vector<128x64xbf16>, vector<256x64xbf16>, vector<128x256xf32> -> vector<128x256xf32>
    %92 = tpu.iota {dimensions = array<i32: 1>} : vector<1x256xi32>
    %c128_i32_51 = arith.constant 128 : i32
    %93 = vector.broadcast %c128_i32_51 : i32 to vector<128x1xi32>
    %94 = arith.addi %6, %93 : vector<128x1xi32>
    %95 = vector.broadcast %92 : vector<1x256xi32> to vector<128x256xi32>
    %96 = vector.broadcast %94 : vector<128x1xi32> to vector<128x256xi32>
    %97 = arith.cmpi sle, %95, %96 : vector<128x256xi32>
    %cst_52 = arith.constant -1.000000e+30 : f32
    %98 = vector.broadcast %cst_52 : f32 to vector<128x256xf32>
    %99 = arith.select %97, %91, %98 : vector<128x256xi1>, vector<128x256xf32>
    %cst_53 = arith.constant dense<0xFF800000> : vector<128xf32>
    %100 = vector.multi_reduction <maximumf>, %99, %cst_53 [1] : vector<128x256xf32> to vector<128xf32>
    %101 = vector.shape_cast %100 : vector<128xf32> to vector<128x1xf32>
    %102 = vector.broadcast %101 : vector<128x1xf32> to vector<128x256xf32>
    %103 = arith.subf %99, %102 : vector<128x256xf32>
    %104 = math.exp %103 : vector<128x256xf32>
    %cst_54 = arith.constant dense<0.000000e+00> : vector<128xf32>
    %105 = vector.multi_reduction <add>, %104, %cst_54 [1] : vector<128x256xf32> to vector<128xf32>
    %106 = vector.shape_cast %105 : vector<128xf32> to vector<128x1xf32>
    %107 = arith.truncf %104 : vector<128x256xf32> to vector<128x256xbf16>
    %cst_55 = arith.constant dense<0.000000e+00> : vector<128x64xf32>
    %108 = tpu.matmul %107, %90, %cst_55 {dimension_numbers = #tpu.dot_dimension_numbers<[1], [0], [0], [1], [0, 0, 1, 1], [], []>} : vector<128x256xbf16>, vector<256x64xbf16>, vector<128x64xf32> -> vector<128x64xf32>
    %109 = tpu.reciprocal %106 {approx = true} : vector<128x1xf32> -> vector<128x1xf32>
    %110 = vector.broadcast %109 : vector<128x1xf32> to vector<128x64xf32>
    %111 = arith.mulf %108, %110 : vector<128x64xf32>
    %112 = vector.shape_cast %111 : vector<128x64xf32> to vector<1x128x64xf32>
    %113 = arith.truncf %112 : vector<1x128x64xf32> to vector<1x128x64xbf16>
    %c1_56 = arith.constant 1 : index
    %c128_57 = arith.constant 128 : index
    %c0_58 = arith.constant 0 : index
    %114 = vector.load %arg3[%c1_56, %c128_57, %c0_58] : memref<2x256x64xbf16, #tpu.memory_space<vmem>>, vector<1x128x64xbf16>
    tpu.vector_store %arg3[%c1_56, %c128_57, %c0_58], %113 {strides = array<i32>} : memref<2x256x64xbf16, #tpu.memory_space<vmem>>, vector<1x128x64xbf16>,
    return
  }
  func.func @transform_0(%arg0: i32) -> (i32, i32, i32) {
    %c0_i32 = arith.constant 0 : i32
    %c0_i32_0 = arith.constant 0 : i32
    %c0_i32_1 = arith.constant 0 : i32
    return %arg0, %c0_i32, %c0_i32_0 : i32, i32, i32
  }
  func.func @transform_1(%arg0: i32) -> (i32, i32) {
    %c0_i32 = arith.constant 0 : i32
    %c0_i32_0 = arith.constant 0 : i32
    %c0_i32_1 = arith.constant 0 : i32
    return %c0_i32, %c0_i32_0 : i32, i32
  }
  func.func @transform_2(%arg0: i32) -> (i32, i32, i32) {
    %c0_i32 = arith.constant 0 : i32
    %c0_i32_0 = arith.constant 0 : i32
    %c0_i32_1 = arith.constant 0 : i32
    return %arg0, %c0_i32, %c0_i32_0 : i32, i32, i32
  }
}

</mosaic_0001>

<bundles_post_ra>
// kernel: tpu_custom_call.1
= control target key start
LH: loop header
LB: loop body
LE: loop exit
PB: predicated region body
PF: predicated region fallthrough
CT: control target
= control target key end

     0   :  { %7 = vsyncpa [#allocation4], 0  ;;  %s6892_s9 = smov [#allocation3]   ;;  %s9035_s0 = inlined_call_operand.hbm [shape: bf16[2,256,384], index: 0, kind: input, shape index: {}]   ;;  %s9036_s1 = inlined_call_operand.vmem [shape: bf16[384,192], index: 1, kind: input, shape index: {}]   ;;  %s9037_s2 = inlined_call_operand.vmem [shape: bf16[2,256,64], index: 2, kind: output, shape index: {}]  }
   0x1   :  { %s13_s10 = sshll.u32 %s6892_s9, 4  ;;  %s14_s10 = int_to_ptr.vmem [resolvable:$true] %s13_s10 }
   0x2   :  { %s6878_s11 = scalar_lea.vmem %s14_s10, 12288  ;;  %p6883_p1 = scmp.lt.s32.totalorder %s14_s10, %s14_s10 }
   0x3   :  { %p6879_p0 = scmp.ne.s32.totalorder %s14_s10, %s6878_s11  ;;  %p6884_p2 = scmp.lt.s32.totalorder %s6878_s11, %s6878_s11 }
   0x5   :  { %p6885_p3 = por %p6884_p2, %p6883_p1 }
   0x7   :  { %p6886_p4 = pnand %p6885_p3, %p6879_p0 }
   0x9   :  { %6889 = shalt.err (!%p6886_p4)
}
   0xa   :  { %s6893_s12 = smov 192   ;;  %s6894_s13 = smov 12  }
   0xb   :  { %19 = dma.hbm_to_vmem [thread:$0]  %s9035_s0, 12288, %s14_s10, [#allocation4], %s6893_s12, %s6893_s12, %s6894_s13  }
   0xc   :  { %6890 = dma.done.wait [#allocation4], 12288  }
   0xd   :  { %6891 = vsyncadd [#allocation4], 4294955008  ;;  %v6895_v0 = vmov 0   ;;  %v6248_v1 = vld [vmem:[%s9036_s1 + $0x74] ss:$8 sps:$4 sm:$0xff]   ;;  %vm2044_vm0 = vcmask 1043456  }
   0xe   :  { %1339 = vmatprep.mubr.bf16.mxu1 %v6895_v0  ;;  %v6250_v2 = vld [vmem:[%s9036_s1 + $0x174] ss:$8 sps:$4 sm:$0xff]   ;;  %954 = vmatprep.subr.bf16.mxu0 %v6248_v1  ;;  %v6252_v3 = vld [vmem:[%s9036_s1 + $0x70] ss:$8 sps:$4 sm:$0xff]   ;;  %v6254_v5 = vld [vmem:[%s9036_s1 + $0x64] ss:$8 sps:$4 sm:$0xff]  }
   0xf   :  { %v6253_v4 = vld [vmem:[%s9036_s1 + $0x170] ss:$8 sps:$4 sm:$0xff]   ;;  %1307 = vmatprep.subr.bf16.mxu1 %v6250_v2  ;;  %955 = vmatpush1.bf16.msra.mxu0 %v6252_v3  ;;  %v6256_v6 = vld [vmem:[%s9036_s1 + $0x164] ss:$8 sps:$4 sm:$0xff]   ;;  %v6258_v7 = vld [vmem:[%s9036_s1 + $0x60] ss:$8 sps:$4 sm:$0xff]  }
  0x10   :  { %1308 = vmatpush1.bf16.msra.mxu1 %v6253_v4  ;;  %956 = vmatprep.subr.bf16.mxu0 %v6254_v5  ;;  %v6259_v8 = vld [vmem:[%s9036_s1 + $0x160] ss:$8 sps:$4 sm:$0xff]   ;;  %v6260_v9 = vld [vmem:[%s9036_s1 + $0x54] ss:$8 sps:$4 sm:$0xff]   ;;  %v6264_v11 = vld [vmem:[%s9036_s1 + $0x50] ss:$8 sps:$4 sm:$0xff]  }
  0x11   :  { %1309 = vmatprep.subr.bf16.mxu1 %v6256_v6  ;;  %v6262_v10 = vld [vmem:[%s9036_s1 + $0x154] ss:$8 sps:$4 sm:$0xff]   ;;  %v6265_v12 = vld [vmem:[%s9036_s1 + $0x150] ss:$8 sps:$4 sm:$0xff]   ;;  %v6266_v13 = vld [vmem:[%s9036_s1 + $0x44] ss:$8 sps:$4 sm:$0xff]  }
  0x12   :  { %v6268_v14 = vld [vmem:[%s9036_s1 + $0x144] ss:$8 sps:$4 sm:$0xff]   ;;  %v6270_v15 = vld [vmem:[%s9036_s1 + $0x40] ss:$8 sps:$4 sm:$0xff]   ;;  %v6272_v17 = vld [vmem:[%s9036_s1 + $0x34] ss:$8 sps:$4 sm:$0xff]  }
  0x13   :  { %957 = vmatpush1.bf16.msra.mxu0 %v6258_v7  ;;  %v6271_v16 = vld [vmem:[%s9036_s1 + $0x140] ss:$8 sps:$4 sm:$0xff]   ;;  %v6274_v18 = vld [vmem:[%s9036_s1 + $0x134] ss:$8 sps:$4 sm:$0xff]   ;;  %v6276_v19 = vld [vmem:[%s9036_s1 + $0x30] ss:$8 sps:$4 sm:$0xff]  }
  0x14   :  { %1310 = vmatpush1.bf16.msra.mxu1 %v6259_v8  ;;  %958 = vmatprep.subr.bf16.mxu0 %v6260_v9  ;;  %v6277_v20 = vld [vmem:[%s9036_s1 + $0x130] ss:$8 sps:$4 sm:$0xff]   ;;  %v6278_v21 = vld [vmem:[%s9036_s1 + $0x24] ss:$8 sps:$4 sm:$0xff]   ;;  %v6282_v23 = vld [vmem:[%s9036_s1 + $0x20] ss:$8 sps:$4 sm:$0xff]  }
  0x15   :  { %1311 = vmatprep.subr.bf16.mxu1 %v6262_v10  ;;  %v6280_v22 = vld [vmem:[%s9036_s1 + $0x124] ss:$8 sps:$4 sm:$0xff]   ;;  %v6283_v24 = vld [vmem:[%s9036_s1 + $0x120] ss:$8 sps:$4 sm:$0xff]   ;;  %v6284_v25 = vld [vmem:[%s9036_s1 + $0x14] ss:$8 sps:$4 sm:$0xff]  }
  0x16   :  { %v6286_v26 = vld [vmem:[%s9036_s1 + $0x114] ss:$8 sps:$4 sm:$0xff]   ;;  %v6288_v27 = vld [vmem:[%s9036_s1 + $0x10] ss:$8 sps:$4 sm:$0xff]   ;;  %v6290_v29 = vld [vmem:[%s9036_s1 + $0x4] ss:$8 sps:$4 sm:$0xff]  }
  0x17   :  { %959 = vmatpush1.bf16.msra.mxu0 %v6264_v11  ;;  %v6289_v28 = vld [vmem:[%s9036_s1 + $0x110] ss:$8 sps:$4 sm:$0xff]   ;;  %v6292_v30 = vld [vmem:[%s9036_s1 + $0x104] ss:$8 sps:$4 sm:$0xff]   ;;  %v6294_v31 = vld [vmem:[%s9036_s1] ss:$8 sps:$4 sm:$0xff]  }
  0x18   :  { %1312 = vmatpush1.bf16.msra.mxu1 %v6265_v12  ;;  %960 = vmatprep.subr.bf16.mxu0 %v6266_v13  ;;  %v6295_v32 = vld [vmem:[%s9036_s1 + $0x100] ss:$8 sps:$4 sm:$0xff]   ;;  %v6296_v33 = vld [vmem:[%s9036_s1 + $0xf4] ss:$8 sps:$4 sm:$0xff]   ;;  %v6299_v35 = vld [vmem:[%s9036_s1 + $0xf0] ss:$8 sps:$4 sm:$0xff]  }
  0x19   :  { %1313 = vmatprep.subr.bf16.mxu1 %v6268_v14  ;;  %v6298_v34 = vld [vmem:[#allocation3 + $0x8] ss:$12 sps:$4 sm:$0xff]   ;;  %v6300_v36 = vld [vmem:[%s9036_s1 + $0xe4] ss:$8 sps:$4 sm:$0xff]   ;;  %v6306_v41 = vld [vmem:[%s9036_s1 + $0xd0] ss:$8 sps:$4 sm:$0xff]  }
  0x1a   :  { %v6302_v37 = vld [vmem:[%s9036_s1 + $0xe0] ss:$8 sps:$4 sm:$0xff]   ;;  %v6303_v38 = vld [vmem:[%s9036_s1 + $0xd4] ss:$8 sps:$4 sm:$0xff]   ;;  %v6326_v39 = vld [vmem:[#allocation3 + $0x4] ss:$12 sps:$4 sm:$0xff]  }
  0x1b   :  { %961 = vmatpush1.bf16.msra.mxu0 %v6270_v15  ;;  %v6305_v40 = vld [vmem:[#allocation3 + $0x20] ss:$12 sps:$4 sm:$0xff]   ;;  %986 = vmatprep.mubr.bf16.mxu0 %v6326_v39  ;;  %v6310_v44 = vld [vmem:[%s9036_s1 + $0xb4] ss:$8 sps:$4 sm:$0xff]   ;;  %v6312_v45 = vld [vmem:[#allocation3 + $0x38] ss:$12 sps:$4 sm:$0xff]  }
  0x1c   :  { %1314 = vmatpush1.bf16.msra.mxu1 %v6271_v16  ;;  %962 = vmatprep.subr.bf16.mxu0 %v6272_v17  ;;  %v6307_v42 = vld [vmem:[%s9036_s1 + $0xc4] ss:$8 sps:$4 sm:$0xff]   ;;  %v6309_v43 = vld [vmem:[%s9036_s1 + $0xc0] ss:$8 sps:$4 sm:$0xff]   ;;  %v6313_v46 = vld [vmem:[%s9036_s1 + $0xb0] ss:$8 sps:$4 sm:$0xff]  }
  0x1d   :  { %1315 = vmatprep.subr.bf16.mxu1 %v6274_v18  ;;  %v6314_v47 = vld [vmem:[%s9036_s1 + $0xa4] ss:$8 sps:$4 sm:$0xff]   ;;  %v6316_v48 = vld [vmem:[%s9036_s1 + $0xa0] ss:$8 sps:$4 sm:$0xff]   ;;  %v6317_v49 = vld [vmem:[%s9036_s1 + $0x94] ss:$8 sps:$4 sm:$0xff]  }
  0x1e   :  { %v6319_v50 = vld [vmem:[#allocation3 + $0x50] ss:$12 sps:$4 sm:$0xff]   ;;  %v6321_v52 = vld [vmem:[%s9036_s1 + $0x84] ss:$8 sps:$4 sm:$0xff]   ;;  %v6323_v53 = vld [vmem:[%s9036_s1 + $0x80] ss:$8 sps:$4 sm:$0xff]  }
  0x1f   :  { %963 = vmatpush1.bf16.msra.mxu0 %v6276_v19  ;;  %v6320_v51 = vld [vmem:[%s9036_s1 + $0x90] ss:$8 sps:$4 sm:$0xff]   ;;  %v6324_v54 = vld [vmem:[#allocation3] ss:$12 sps:$4 sm:$0xff]   ;;  %v6327_v55 = vld [vmem:[#allocation3 + $0x68] ss:$12 sps:$4 sm:$0xff]  }
  0x20   :  { %1316 = vmatpush1.bf16.msra.mxu1 %v6277_v20  ;;  %964 = vmatprep.subr.bf16.mxu0 %v6278_v21  ;;  %v6328_v56 = vld [vmem:[#allocation3 + $0x1c] ss:$12 sps:$4 sm:$0xff]   ;;  %v6330_v57 = vld [vmem:[#allocation3 + $0x18] ss:$12 sps:$4 sm:$0xff]   ;;  %v6331_v58 = vld [vmem:[#allocation3 + $0x80] ss:$12 sps:$4 sm:$0xff]  }
  0x21   :  { %1317 = vmatprep.subr.bf16.mxu1 %v6280_v22  ;;  %v6332_v59 = vld [vmem:[#allocation3 + $0x34] ss:$12 sps:$4 sm:$0xff]   ;;  %v6334_v60 = vld [vmem:[#allocation3 + $0x30] ss:$12 sps:$4 sm:$0xff]   ;;  %v6335_v61 = vld [vmem:[#allocation3 + $0x98] ss:$12 sps:$4 sm:$0xff]  }
  0x22   :  { %v6336_v62 = vld [vmem:[#allocation3 + $0x4c] ss:$12 sps:$4 sm:$0xff]   ;;  %v6338_v63 = vld [vmem:[#allocation3 + $0x48] ss:$12 sps:$4 sm:$0xff]   ;;  %v6339_v1 = vld [vmem:[#allocation3 + $0xb0] ss:$12 sps:$4 sm:$0xff]  }
  0x23   :  { %965 = vmatpush1.bf16.msra.mxu0 %v6282_v23  ;;  %v6340_v2 = vld [vmem:[#allocation3 + $0x64] ss:$12 sps:$4 sm:$0xff]   ;;  %v6342_v3 = vld [vmem:[#allocation3 + $0x60] ss:$12 sps:$4 sm:$0xff]   ;;  %v6343_v4 = vld [vmem:[#allocation3 + $0xc8] ss:$12 sps:$4 sm:$0xff]  }
  0x24   :  { %1318 = vmatpush1.bf16.msra.mxu1 %v6283_v24  ;;  %966 = vmatprep.subr.bf16.mxu0 %v6284_v25  ;;  %v6344_v5 = vld [vmem:[#allocation3 + $0x7c] ss:$12 sps:$4 sm:$0xff]   ;;  %v6346_v6 = vld [vmem:[#allocation3 + $0x78] ss:$12 sps:$4 sm:$0xff]   ;;  %v6347_v7 = vld [vmem:[#allocation3 + $0xe0] ss:$12 sps:$4 sm:$0xff]  }
  0x25   :  { %1319 = vmatprep.subr.bf16.mxu1 %v6286_v26  ;;  %v6348_v8 = vld [vmem:[#allocation3 + $0x94] ss:$12 sps:$4 sm:$0xff]   ;;  %v6350_v9 = vld [vmem:[#allocation3 + $0x90] ss:$12 sps:$4 sm:$0xff]   ;;  %v6351_v10 = vld [vmem:[#allocation3 + $0xf8] ss:$12 sps:$4 sm:$0xff]  }
  0x26   :  { %v6352_v11 = vld [vmem:[#allocation3 + $0xac] ss:$12 sps:$4 sm:$0xff]   ;;  %v6354_v12 = vld [vmem:[#allocation3 + $0xa8] ss:$12 sps:$4 sm:$0xff]   ;;  %v6355_v13 = vld [vmem:[#allocation3 + $0x110] ss:$12 sps:$4 sm:$0xff]  }
  0x27   :  { %967 = vmatpush1.bf16.msra.mxu0 %v6288_v27  ;;  %v6356_v14 = vld [vmem:[#allocation3 + $0xc4] ss:$12 sps:$4 sm:$0xff]   ;;  %v6358_v15 = vld [vmem:[#allocation3 + $0xc0] ss:$12 sps:$4 sm:$0xff]   ;;  %v6359_v16 = vld [vmem:[#allocation3 + $0x128] ss:$12 sps:$4 sm:$0xff]  }
  0x28   :  { %1320 = vmatpush1.bf16.msra.mxu1 %v6289_v28  ;;  %968 = vmatprep.subr.bf16.mxu0 %v6290_v29  ;;  %v6360_v17 = vld [vmem:[#allocation3 + $0xdc] ss:$12 sps:$4 sm:$0xff]   ;;  %v6362_v18 = vld [vmem:[#allocation3 + $0xd8] ss:$12 sps:$4 sm:$0xff]   ;;  %v6363_v19 = vld [vmem:[#allocation3 + $0x140] ss:$12 sps:$4 sm:$0xff]  }
  0x29   :  { %1321 = vmatprep.subr.bf16.mxu1 %v6292_v30  ;;  %v6364_v20 = vld [vmem:[#allocation3 + $0xf4] ss:$12 sps:$4 sm:$0xff]   ;;  %v6366_v21 = vld [vmem:[#allocation3 + $0xf0] ss:$12 sps:$4 sm:$0xff]   ;;  %v6367_v22 = vld [vmem:[#allocation3 + $0x158] ss:$12 sps:$4 sm:$0xff]  }
  0x2a   :  { %v6368_v23 = vld [vmem:[#allocation3 + $0x10c] ss:$12 sps:$4 sm:$0xff]   ;;  %v6370_v24 = vld [vmem:[#allocation3 + $0x108] ss:$12 sps:$4 sm:$0xff]   ;;  %v6371_v25 = vld [vmem:[#allocation3 + $0x170] ss:$12 sps:$4 sm:$0xff]  }
  0x2b   :  { %969 = vmatpush1.bf16.msra.mxu0 %v6294_v31  ;;  %v6372_v26 = vld [vmem:[#allocation3 + $0x124] ss:$12 sps:$4 sm:$0xff]   ;;  %v6374_v27 = vld [vmem:[#allocation3 + $0x120] ss:$12 sps:$4 sm:$0xff]   ;;  %v6375_v28 = vld [vmem:[#allocation3 + $0x188] ss:$12 sps:$4 sm:$0xff]  }
  0x2c   :  { %1322 = vmatpush1.bf16.msra.mxu1 %v6295_v32  ;;  %970 = vmatprep.subr.bf16.mxu0 %v6296_v33  ;;  %v6376_v29 = vld [vmem:[#allocation3 + $0x13c] ss:$12 sps:$4 sm:$0xff]   ;;  %v6378_v30 = vld [vmem:[#allocation3 + $0x138] ss:$12 sps:$4 sm:$0xff]   ;;  %v6379_v31 = vld [vmem:[#allocation3 + $0x1a0] ss:$12 sps:$4 sm:$0xff]  }
  0x2d   :  { %v6380_v32 = vld [vmem:[#allocation3 + $0x154] ss:$12 sps:$4 sm:$0xff]   ;;  %v6382_v33 = vld [vmem:[#allocation3 + $0x150] ss:$12 sps:$4 sm:$0xff]   ;;  %vm2045_vm1 = vcmask 523268   ;;  %vm2216_vm3 = vcmask 523264  }
  0x2e   :  { %v6388_v39 = vld [vmem:[#allocation3 + $0x1e8] ss:$12 sps:$4 sm:$0xff]   ;;  %vm7107_vm2 = vmor %vm2045_vm1, %vm2044_vm0  ;;  %s6896_s1 = smov 64  }
  0x2f   :  { %1340 = vmatmul.mubr.bf16.vlgmr.msra.gmra.mxu1 %v6298_v34  ;;  %971 = vmatpush2.bf16.msra.mxu0 %v6299_v35  ;;  %v6383_v34 = vld [vmem:[#allocation3 + $0x1b8] ss:$12 sps:$4 sm:$0xff]  }
  0x30   :  { %1349 = vmatprep.mubr.bf16.mxu1 %v6895_v0  ;;  %972 = vmatprep.subr.bf16.mxu0 %v6300_v36  ;;  %v6384_v35 = vld [vmem:[#allocation3 + $0x16c] ss:$12 sps:$4 sm:$0xff]   ;;  %v6386_v36 = vld [vmem:[#allocation3 + $0x168] ss:$12 sps:$4 sm:$0xff]  }
  0x33   :  { %973 = vmatpush2.bf16.msra.mxu0 %v6302_v37  ;;  %v6387_v37 = vld [vmem:[#allocation3 + $0x1d0] ss:$12 sps:$4 sm:$0xff]  }
  0x34   :  { %974 = vmatprep.subr.bf16.mxu0 %v6303_v38  ;;  %v6426_v38 = vld [vmem:[#allocation3 + $0x184] ss:$12 sps:$4 sm:$0xff]  }
  0x37   :  { %1350 = vmatmul.mubr.bf16.gmra.mxu1 %v6305_v40  ;;  %975 = vmatpush2.bf16.msra.mxu0 %v6306_v41  ;;  %v6428_v40 = vld [vmem:[#allocation3 + $0x180] ss:$12 sps:$4 sm:$0xff]   ;;  %v6430_v41 = vld [vmem:[#allocation3 + $0x19c] ss:$12 sps:$4 sm:$0xff]  }
  0x38   :  { %1359 = vmatprep.mubr.bf16.mxu1 %v6895_v0  ;;  %976 = vmatprep.subr.bf16.mxu0 %v6307_v42  ;;  %v6389_v42 = vld [vmem:[#allocation3 + $0x200] ss:$12 sps:$4 sm:$0xff]  }
  0x3b   :  { %977 = vmatpush2.bf16.msra.mxu0 %v6309_v43  ;;  %v6432_v43 = vld [vmem:[#allocation3 + $0x198] ss:$12 sps:$4 sm:$0xff]  }
  0x3c   :  { %978 = vmatprep.subr.bf16.mxu0 %v6310_v44  ;;  %v6434_v44 = vld [vmem:[#allocation3 + $0x1b4] ss:$12 sps:$4 sm:$0xff]  }
  0x3f   :  { %1360 = vmatmul.mubr.bf16.gmra.mxu1 %v6312_v45  ;;  %979 = vmatpush2.bf16.msra.mxu0 %v6313_v46  ;;  %v6390_v45 = vld [vmem:[#allocation3 + $0x218] ss:$12 sps:$4 sm:$0xff]   ;;  %v6436_v46 = vld [vmem:[#allocation3 + $0x1b0] ss:$12 sps:$4 sm:$0xff]  }
  0x40   :  { %1369 = vmatprep.mubr.bf16.mxu1 %v6895_v0  ;;  %980 = vmatprep.subr.bf16.mxu0 %v6314_v47  ;;  %v6438_v47 = vld [vmem:[#allocation3 + $0x1cc] ss:$12 sps:$4 sm:$0xff]  }
  0x43   :  { %981 = vmatpush2.bf16.msra.mxu0 %v6316_v48  ;;  %v6391_v48 = vld [vmem:[#allocation3 + $0x230] ss:$12 sps:$4 sm:$0xff]  }
  0x44   :  { %982 = vmatprep.subr.bf16.mxu0 %v6317_v49  ;;  %v6440_v49 = vld [vmem:[#allocation3 + $0x1c8] ss:$12 sps:$4 sm:$0xff]  }
  0x47   :  { %1370 = vmatmul.mubr.bf16.gmra.mxu1 %v6319_v50  ;;  %983 = vmatpush2.bf16.msra.mxu0 %v6320_v51  ;;  %v6442_v50 = vld [vmem:[#allocation3 + $0x1e4] ss:$12 sps:$4 sm:$0xff]   ;;  %v6392_v51 = vld [vmem:[#allocation3 + $0x248] ss:$12 sps:$4 sm:$0xff]  }
  0x48   :  { %1379 = vmatprep.mubr.bf16.mxu1 %v6895_v0  ;;  %984 = vmatprep.subr.bf16.mxu0 %v6321_v52  ;;  %v6444_v52 = vld [vmem:[#allocation3 + $0x1e0] ss:$12 sps:$4 sm:$0xff]  }
  0x4b   :  { %985 = vmatpush2.bf16.msra.mxu0 %v6323_v53  ;;  %v6446_v53 = vld [vmem:[#allocation3 + $0x1fc] ss:$12 sps:$4 sm:$0xff]  }
  0x4e   :  { %987 = vmatmul.mubr.bf16.vlgmr.msra.gmra.mxu0 %v6324_v54 }
  0x4f   :  { %1380 = vmatmul.mubr.bf16.gmra.mxu1 %v6327_v55  ;;  %996 = vmatprep.mubr.bf16.mxu0 %v6328_v56  ;;  %v6393_v56 = vld [vmem:[#allocation3 + $0x260] ss:$12 sps:$4 sm:$0xff]  }
  0x50   :  { %1389 = vmatprep.mubr.bf16.mxu1 %v6895_v0 }
  0x56   :  { %997 = vmatmul.mubr.bf16.gmra.mxu0 %v6330_v57 }
  0x57   :  { %1390 = vmatmul.mubr.bf16.gmra.mxu1 %v6331_v58  ;;  %1006 = vmatprep.mubr.bf16.mxu0 %v6332_v59  ;;  %v6448_v58 = vld [vmem:[#allocation3 + $0x1f8] ss:$12 sps:$4 sm:$0xff]   ;;  %v6450_v59 = vld [vmem:[#allocation3 + $0x214] ss:$12 sps:$4 sm:$0xff]  }
  0x58   :  { %1399 = vmatprep.mubr.bf16.mxu1 %v6895_v0 }
  0x5e   :  { %1007 = vmatmul.mubr.bf16.gmra.mxu0 %v6334_v60 }
  0x5f   :  { %1400 = vmatmul.mubr.bf16.gmra.mxu1 %v6335_v61  ;;  %1016 = vmatprep.mubr.bf16.mxu0 %v6336_v62 }
  0x60   :  { %1409 = vmatprep.mubr.bf16.mxu1 %v6895_v0 }
  0x66   :  { %1017 = vmatmul.mubr.bf16.gmra.mxu0 %v6338_v63  ;;  %v6394_v63 = vld [vmem:[#allocation3 + $0x278] ss:$12 sps:$4 sm:$0xff]  }
  0x67   :  { %1410 = vmatmul.mubr.bf16.gmra.mxu1 %v6339_v1  ;;  %1026 = vmatprep.mubr.bf16.mxu0 %v6340_v2  ;;  %v6452_v2 = vld [vmem:[#allocation3 + $0x210] ss:$12 sps:$4 sm:$0xff]  }
  0x68   :  { %1419 = vmatprep.mubr.bf16.mxu1 %v6895_v0 }
  0x6e   :  { %1027 = vmatmul.mubr.bf16.gmra.mxu0 %v6342_v3  ;;  %v6453_v3 = vld [vmem:[#allocation3 + $0x22c] ss:$12 sps:$4 sm:$0xff]  }
  0x6f   :  { %1420 = vmatmul.mubr.bf16.gmra.mxu1 %v6343_v4  ;;  %1036 = vmatprep.mubr.bf16.mxu0 %v6344_v5 }
  0x70   :  { %1429 = vmatprep.mubr.bf16.mxu1 %v6895_v0 }
  0x76   :  { %1037 = vmatmul.mubr.bf16.gmra.mxu0 %v6346_v6 }
  0x77   :  { %1430 = vmatmul.mubr.bf16.gmra.mxu1 %v6347_v7  ;;  %1046 = vmatprep.mubr.bf16.mxu0 %v6348_v8  ;;  %v6395_v7 = vld [vmem:[#allocation3 + $0x290] ss:$12 sps:$4 sm:$0xff]  }
  0x78   :  { %1439 = vmatprep.mubr.bf16.mxu1 %v6895_v0 }
  0x7e   :  { %1047 = vmatmul.mubr.bf16.gmra.mxu0 %v6350_v9  ;;  %v6455_v9 = vld [vmem:[#allocation3 + $0x228] ss:$12 sps:$4 sm:$0xff]  }
  0x7f   :  { %1440 = vmatmul.mubr.bf16.gmra.mxu1 %v6351_v10  ;;  %1056 = vmatprep.mubr.bf16.mxu0 %v6352_v11 }
  0x80   :  { %1449 = vmatprep.mubr.bf16.mxu1 %v6895_v0 }
  0x86   :  { %1057 = vmatmul.mubr.bf16.gmra.mxu0 %v6354_v12 }
  0x87   :  { %1450 = vmatmul.mubr.bf16.gmra.mxu1 %v6355_v13  ;;  %1066 = vmatprep.mubr.bf16.mxu0 %v6356_v14  ;;  %v6396_v13 = vld [vmem:[#allocation3 + $0x2a8] ss:$12 sps:$4 sm:$0xff]  }
  0x88   :  { %1459 = vmatprep.mubr.bf16.mxu1 %v6895_v0 }
  0x8e   :  { %1067 = vmatmul.mubr.bf16.gmra.mxu0 %v6358_v15 }
  0x8f   :  { %1460 = vmatmul.mubr.bf16.gmra.mxu1 %v6359_v16  ;;  %1076 = vmatprep.mubr.bf16.mxu0 %v6360_v17 }
  0x90   :  { %1469 = vmatprep.mubr.bf16.mxu1 %v6895_v0 }
  0x96   :  { %1077 = vmatmul.mubr.bf16.gmra.mxu0 %v6362_v18 }
  0x97   :  { %1470 = vmatmul.mubr.bf16.gmra.mxu1 %v6363_v19  ;;  %1086 = vmatprep.mubr.bf16.mxu0 %v6364_v20 }
  0x98   :  { %1479 = vmatprep.mubr.bf16.mxu1 %v6895_v0 }
  0x9e   :  { %1087 = vmatmul.mubr.bf16.gmra.mxu0 %v6366_v21 }
  0x9f   :  { %1480 = vmatmul.mubr.bf16.gmra.mxu1 %v6367_v22  ;;  %1096 = vmatprep.mubr.bf16.mxu0 %v6368_v23 }
  0xa0   :  { %1489 = vmatprep.mubr.bf16.mxu1 %v6895_v0 }
  0xa6   :  { %1097 = vmatmul.mubr.bf16.gmra.mxu0 %v6370_v24  ;;  %v6397_v24 = vld [vmem:[#allocation3 + $0x2c0] ss:$12 sps:$4 sm:$0xff]  }
  0xa7   :  { %1490 = vmatmul.mubr.bf16.gmra.mxu1 %v6371_v25  ;;  %1106 = vmatprep.mubr.bf16.mxu0 %v6372_v26 }
  0xa8   :  { %1499 = vmatprep.mubr.bf16.mxu1 %v6895_v0 }
  0xae   :  { %1107 = vmatmul.mubr.bf16.gmra.mxu0 %v6374_v27 }
  0xaf   :  { %1500 = vmatmul.mubr.bf16.gmra.mxu1 %v6375_v28  ;;  %1116 = vmatprep.mubr.bf16.mxu0 %v6376_v29 }
  0xb0   :  { %1509 = vmatprep.mubr.bf16.mxu1 %v6895_v0 }
  0xb6   :  { %1117 = vmatmul.mubr.bf16.gmra.mxu0 %v6378_v30 }
  0xb7   :  { %1510 = vmatmul.mubr.bf16.gmra.mxu1 %v6379_v31  ;;  %1126 = vmatprep.mubr.bf16.mxu0 %v6380_v32 }
  0xb8   :  { %1519 = vmatprep.mubr.bf16.mxu1 %v6895_v0 }
  0xbe   :  { %1127 = vmatmul.mubr.bf16.gmra.mxu0 %v6382_v33 }
  0xbf   :  { %1520 = vmatmul.mubr.bf16.gmra.mxu1 %v6383_v34  ;;  %1136 = vmatprep.mubr.bf16.mxu0 %v6384_v35 }
  0xc0   :  { %1529 = vmatprep.mubr.bf16.mxu1 %v6895_v0 }
  0xc6   :  { %1137 = vmatmul.mubr.bf16.gmra.mxu0 %v6386_v36 }
  0xc7   :  { %1530 = vmatmul.mubr.bf16.gmra.mxu1 %v6387_v37  ;;  %1146 = vmatprep.mubr.bf16.mxu0 %v6426_v38 }
  0xc8   :  { %1539 = vmatprep.mubr.bf16.mxu1 %v6895_v0 }
  0xce   :  { %1147 = vmatmul.mubr.bf16.gmra.mxu0 %v6428_v40 }
  0xcf   :  { %1540 = vmatmul.mubr.bf16.gmra.mxu1 %v6388_v39  ;;  %1156 = vmatprep.mubr.bf16.mxu0 %v6430_v41  ;;  %v6398_v39 = vld [vmem:[#allocation3 + $0x2d8] ss:$12 sps:$4 sm:$0xff]  }
  0xd0   :  { %1549 = vmatprep.mubr.bf16.mxu1 %v6895_v0 }
  0xd6   :  { %1157 = vmatmul.mubr.bf16.gmra.mxu0 %v6432_v43 }
  0xd7   :  { %1550 = vmatmul.mubr.bf16.gmra.mxu1 %v6389_v42  ;;  %1166 = vmatprep.mubr.bf16.mxu0 %v6434_v44 }
  0xd8   :  { %1559 = vmatprep.mubr.bf16.mxu1 %v6895_v0 }
  0xde   :  { %1167 = vmatmul.mubr.bf16.gmra.mxu0 %v6436_v46 }
  0xdf   :  { %1560 = vmatmul.mubr.bf16.gmra.mxu1 %v6390_v45  ;;  %1176 = vmatprep.mubr.bf16.mxu0 %v6438_v47 }
  0xe0   :  { %1569 = vmatprep.mubr.bf16.mxu1 %v6895_v0 }
  0xe6   :  { %1177 = vmatmul.mubr.bf16.gmra.mxu0 %v6440_v49 }
  0xe7   :  { %1570 = vmatmul.mubr.bf16.gmra.mxu1 %v6391_v48  ;;  %1186 = vmatprep.mubr.bf16.mxu0 %v6442_v50 }
  0xe8   :  { %1579 = vmatprep.mubr.bf16.mxu1 %v6895_v0 }
  0xee   :  { %1187 = vmatmul.mubr.bf16.gmra.mxu0 %v6444_v52 }
  0xef   :  { %1580 = vmatmul.mubr.bf16.gmra.mxu1 %v6392_v51  ;;  %v1341_v54 = vpop.f32.mrf.mxu1  ;;  %1196 = vmatprep.mubr.bf16.mxu0 %v6446_v53 }
  0xf0   :  { %1589 = vmatprep.mubr.bf16.mxu1 %v6895_v0 }
  0xf1   :  { %v1343_v55 = vpop.f32.mrf.mxu1 }
  0xf3   :  { %v1345_v57 = vpop.f32.mrf.mxu1 }
  0xf5   :  { %v1347_v60 = vpop.f32.mrf.mxu1 }
  0xf6   :  { %1197 = vmatmul.mubr.bf16.gmra.mxu0 %v6448_v58 }
  0xf7   :  { %1590 = vmatmul.mubr.bf16.gmra.mxu1 %v6393_v56  ;;  %v1351_v61 = vpop.f32.mrf.mxu1  ;;  %1206 = vmatprep.mubr.bf16.mxu0 %v6450_v59 }
  0xf8   :  { %1599 = vmatprep.mubr.bf16.mxu1 %v6895_v0 }
  0xf9   :  { %v1353_v62 = vpop.f32.mrf.mxu1 }
  0xfb   :  { %v1355_v1 = vpop.f32.mrf.mxu1 }
  0xfd   :  { %v1357_v4 = vpop.f32.mrf.mxu1 }
  0xfe   :  { %1207 = vmatmul.mubr.bf16.gmra.mxu0 %v6452_v2 }
  0xff   :  { %1600 = vmatmul.mubr.bf16.gmra.mxu1 %v6394_v63  ;;  %v7086_v5 = vpop.f32.mrf.mxu1  ;;  %1216 = vmatprep.mubr.bf16.mxu0 %v6453_v3 }
 0x100   :  { %1609 = vmatprep.mubr.bf16.mxu1 %v6895_v0 }
 0x101   :  { %v1363_v6 = vpop.f32.mrf.mxu1 }
 0x103   :  { %v7089_v8 = vpop.f32.mrf.mxu1 }
 0x105   :  { %v7091_v10 = vpop.f32.mrf.mxu1 }
 0x106   :  { %1217 = vmatmul.mubr.bf16.gmra.mxu0 %v6455_v9 }
 0x107   :  { %1610 = vmatmul.mubr.bf16.gmra.mxu1 %v6395_v7  ;;  %v7093_v11 = vpop.f32.mrf.mxu1 }
 0x108   :  { %1619 = vmatprep.mubr.bf16.mxu1 %v6895_v0 }
 0x109   :  { %v7096_v12 = vpop.f32.mrf.mxu1 }
 0x10b   :  { %v7098_v14 = vpop.f32.mrf.mxu1 }
 0x10d   :  { %v7100_v15 = vpop.f32.mrf.mxu1 }
 0x10e   :  { %v988_v16 = vpop.f32.mrf.mxu0 }
 0x10f   :  { %1620 = vmatmul.mubr.bf16.gmra.mxu1 %v6396_v13  ;;  %v7102_v17 = vpop.f32.mrf.mxu1  ;;  %v1342_v20 = vadd.f32 %v1341_v54, %v988_v16  ;;  %v6399_v54 = vld [vmem:[#allocation3 + $0x2f0] ss:$12 sps:$4 sm:$0xff]  }
 0x110   :  { %1629 = vmatprep.mubr.bf16.mxu1 %v6895_v0  ;;  %v990_v18 = vpop.f32.mrf.mxu0 }
 0x111   :  { %v7105_v19 = vpop.f32.mrf.mxu1  ;;  %v1344_v21 = vadd.f32 %v1343_v55, %v990_v18 }
 0x112   :  { %v992_v23 = vpop.f32.mrf.mxu0 }
 0x113   :  { %v7111_v25 = vpop.f32.mrf.mxu1  ;;  %v5699_v26 = vpack.c.bf16 %v1344_v21, %v1342_v20  ;;  %v1346_v29 = vadd.f32 %v1345_v57, %v992_v23 }
 0x114   :  { %v994_v27 = vpop.f32.mrf.mxu0 }
 0x115   :  { %v7113_v28 = vpop.f32.mrf.mxu1  ;;  %2047 = vst.msk [vmem:[#allocation2] sm:$0xff] %vm7107_vm2, %v5699_v26  ;;  %v1348_v30 = vadd.f32 %v1347_v60, %v994_v27 }
 0x116   :  { %v998_v31 = vpop.f32.mrf.mxu0 }
 0x117   :  { %1630 = vmatmul.mubr.bf16.gmra.mxu1 %v6397_v24  ;;  %v7117_v32 = vpop.f32.mrf.mxu1  ;;  %v5700_v33 = vpack.c.bf16 %v1348_v30, %v1346_v29  ;;  %v1352_v36 = vadd.f32 %v1351_v61, %v998_v31 }
 0x118   :  { %1639 = vmatprep.mubr.bf16.mxu1 %v6895_v0  ;;  %v1000_v34 = vpop.f32.mrf.mxu0 }
 0x119   :  { %v7120_v35 = vpop.f32.mrf.mxu1  ;;  %2048 = vst.msk [vmem:[#allocation2 + $0x8] sm:$0xff] %vm7107_vm2, %v5700_v33  ;;  %v1354_v37 = vadd.f32 %v1353_v62, %v1000_v34 }
 0x11a   :  { %v1002_v38 = vpop.f32.mrf.mxu0 }
 0x11b   :  { %v7124_v40 = vpop.f32.mrf.mxu1  ;;  %v5701_v41 = vpack.c.bf16 %v1354_v37, %v1352_v36  ;;  %v1356_v44 = vadd.f32 %v1355_v1, %v1002_v38 }
 0x11c   :  { %v1004_v42 = vpop.f32.mrf.mxu0 }
 0x11d   :  { %v7126_v43 = vpop.f32.mrf.mxu1  ;;  %2049 = vst.msk [vmem:[#allocation2 + $0x10] sm:$0xff] %vm7107_vm2, %v5701_v41  ;;  %v1358_v45 = vadd.f32 %v1357_v4, %v1004_v42 }
 0x11e   :  { %v1008_v46 = vpop.f32.mrf.mxu0 }
 0x11f   :  { %1640 = vmatmul.mubr.bf16.gmra.mxu1 %v6398_v39  ;;  %v7130_v47 = vpop.f32.mrf.mxu1  ;;  %v5702_v48 = vpack.c.bf16 %v1358_v45, %v1356_v44  ;;  %v1362_v51 = vadd.f32 %v7086_v5, %v1008_v46 }
 0x120   :  { %1649 = vmatprep.mubr.bf16.mxu1 %v6895_v0  ;;  %v1010_v49 = vpop.f32.mrf.mxu0  ;;  %v7146_v60 = vld [vmem:[#allocation2] ss:$8 sps:$4 sm:$0xff]  }
 0x121   :  { %v7133_v50 = vpop.f32.mrf.mxu1  ;;  %2050 = vst.msk [vmem:[#allocation2 + $0x18] sm:$0xff] %vm7107_vm2, %v5702_v48  ;;  %v1364_v52 = vadd.f32 %v1363_v6, %v1010_v49 }
 0x122   :  { %v1012_v53 = vpop.f32.mrf.mxu0 }
 0x123   :  { %v7138_v55 = vpop.f32.mrf.mxu1  ;;  %v5703_v56 = vpack.c.bf16 %v1364_v52, %v1362_v51  ;;  %v1366_v0 = vadd.f32 %v7089_v8, %v1012_v53 }
 0x124   :  { %v1014_v57 = vpop.f32.mrf.mxu0 }
 0x125   :  { %v7140_v58 = vpop.f32.mrf.mxu1  ;;  %2051 = vst.msk [vmem:[#allocation2 + $0x20] sm:$0xff] %vm7107_vm2, %v5703_v56  ;;  %v1368_v59 = vadd.f32 %v7091_v10, %v1014_v57 }
 0x126   :  { %v1018_v61 = vpop.f32.mrf.mxu0 }
 0x127   :  { %1650 = vmatmul.mubr.bf16.gmra.mxu1 %v6399_v54  ;;  %v7148_v62 = vpop.f32.mrf.mxu1  ;;  %v5704_v63 = vpack.c.bf16 %v1368_v59, %v1366_v0  ;;  %v1372_v3 = vadd.f32 %v7093_v11, %v1018_v61  ;;  %v6457_v0 = vld [vmem:[#allocation3 + $0x244] ss:$12 sps:$4 sm:$0xff]  }
 0x128   :  { %6099 = vmatprep.mubr.msk.bf16.mxu1 %vm2216_vm3, %v7146_v60  ;;  %v1020_v1 = vpop.f32.mrf.mxu0  ;;  %1226 = vmatprep.mubr.bf16.mxu0 %v6457_v0  ;;  %v6468_v0 = vld [vmem:[#allocation3 + $0x288] ss:$12 sps:$4 sm:$0xff]  }
 0x129   :  { %v7152_v2 = vpop.f32.mrf.mxu1  ;;  %2052 = vst.msk [vmem:[#allocation2 + $0x28] sm:$0xff] %vm7107_vm2, %v5704_v63  ;;  %v1374_v4 = vadd.f32 %v7096_v12, %v1020_v1 }
 0x12a   :  { %v1022_v5 = vpop.f32.mrf.mxu0 }
 0x12b   :  { %v7158_v6 = vpop.f32.mrf.mxu1  ;;  %v5705_v7 = vpack.c.bf16 %v1374_v4, %v1372_v3  ;;  %v1376_v10 = vadd.f32 %v7098_v14, %v1022_v5 }
 0x12c   :  { %v1024_v8 = vpop.f32.mrf.mxu0 }
 0x12d   :  { %v7160_v9 = vpop.f32.mrf.mxu1  ;;  %2053 = vst.msk [vmem:[#allocation2 + $0x30] sm:$0xff] %vm7107_vm2, %v5705_v7  ;;  %v1378_v13 = vadd.f32 %v7100_v15, %v1024_v8 }
 0x12e   :  { %v1028_v16 = vpop.f32.mrf.mxu0 }
 0x12f   :  { %v7166_v18 = vpop.f32.mrf.mxu1  ;;  %v5706_v11 = vpack.c.bf16 %v1378_v13, %v1376_v10  ;;  %v1382_v21 = vadd.f32 %v7102_v17, %v1028_v16 }
 0x130   :  { %v1030_v20 = vpop.f32.mrf.mxu0 }
 0x131   :  { %v7168_v12 = vpop.f32.mrf.mxu1  ;;  %2054 = vst.msk [vmem:[#allocation2 + $0x38] sm:$0xff] %vm7107_vm2, %v5706_v11  ;;  %v1384_v23 = vadd.f32 %v7105_v19, %v1030_v20  ;;  %v6460_v11 = vld [vmem:[#allocation3 + $0x25c] ss:$12 sps:$4 sm:$0xff]  }
 0x132   :  { %v1032_v24 = vpop.f32.mrf.mxu0 }
 0x133   :  { %v7174_v26 = vpop.f32.mrf.mxu1  ;;  %v5707_v14 = vpack.c.bf16 %v1384_v23, %v1382_v21  ;;  %v1386_v29 = vadd.f32 %v7111_v25, %v1032_v24  ;;  %v6462_v21 = vld [vmem:[#allocation3 + $0x258] ss:$12 sps:$4 sm:$0xff]  }
 0x134   :  { %v1034_v27 = vpop.f32.mrf.mxu0 }
 0x135   :  { %v7176_v15 = vpop.f32.mrf.mxu1  ;;  %2055 = vst.msk [vmem:[#allocation2 + $0x40] sm:$0xff] %vm7107_vm2, %v5707_v14  ;;  %v1388_v30 = vadd.f32 %v7113_v28, %v1034_v27  ;;  %v7235_v27 = vld [vmem:[#allocation2 + $0x20] ss:$8 sps:$4 sm:$0xff]  }
 0x136   :  { %v1038_v31 = vpop.f32.mrf.mxu0  ;;  %9141 = vst [vmem:[#allocation6_spill] sm:$0xff] %v7235_v27 }
 0x137   :  { %v7182_v33 = vpop.f32.mrf.mxu1  ;;  %v5708_v17 = vpack.c.bf16 %v1388_v30, %v1386_v29  ;;  %v1392_v36 = vadd.f32 %v7117_v32, %v1038_v31 }
 0x138   :  { %v1040_v34 = vpop.f32.mrf.mxu0 }
 0x139   :  { %v7184_v19 = vpop.f32.mrf.mxu1  ;;  %2056 = vst.msk [vmem:[#allocation2 + $0x48] sm:$0xff] %vm7107_vm2, %v5708_v17  ;;  %v1394_v37 = vadd.f32 %v7120_v35, %v1040_v34 }
 0x13a   :  { %v1042_v38 = vpop.f32.mrf.mxu0 }
 0x13b   :  { %v7190_v39 = vpop.f32.mrf.mxu1  ;;  %v5709_v25 = vpack.c.bf16 %v1394_v37, %v1392_v36  ;;  %v1396_v42 = vadd.f32 %v7124_v40, %v1042_v38  ;;  %v6463_v37 = vld [vmem:[#allocation3 + $0x274] ss:$12 sps:$4 sm:$0xff]  }
 0x13c   :  { %v1044_v41 = vpop.f32.mrf.mxu0 }
 0x13d   :  { %v7192_v28 = vpop.f32.mrf.mxu1  ;;  %2057 = vst.msk [vmem:[#allocation2 + $0x50] sm:$0xff] %vm7107_vm2, %v5709_v25  ;;  %v1398_v44 = vadd.f32 %v7126_v43, %v1044_v41  ;;  %v6465_v25 = vld [vmem:[#allocation3 + $0x270] ss:$12 sps:$4 sm:$0xff]  }
 0x13e   :  { %v1048_v45 = vpop.f32.mrf.mxu0 }
 0x13f   :  { %v7198_v46 = vpop.f32.mrf.mxu1  ;;  %v5710_v32 = vpack.c.bf16 %v1398_v44, %v1396_v42  ;;  %v1402_v49 = vadd.f32 %v7130_v47, %v1048_v45  ;;  %v6459_v47 = vld [vmem:[#allocation3 + $0x240] ss:$12 sps:$4 sm:$0xff]  }
 0x140   :  { %v1050_v48 = vpop.f32.mrf.mxu0  ;;  %1227 = vmatmul.mubr.bf16.gmra.mxu0 %v6459_v47  ;;  %v6402_v8 = vld [vmem:[#allocation2 + $0x40] ss:$8 sps:$4 sm:$0xff]  }
 0x141   :  { %v7200_v35 = vpop.f32.mrf.mxu1  ;;  %2058 = vst.msk [vmem:[#allocation2 + $0x58] sm:$0xff] %vm7107_vm2, %v5710_v32  ;;  %v1404_v51 = vadd.f32 %v7133_v50, %v1050_v48  ;;  %1236 = vmatprep.mubr.bf16.mxu0 %v6460_v11  ;;  %v6469_v11 = vld [vmem:[#allocation3 + $0x2a0] ss:$12 sps:$4 sm:$0xff]  }
 0x142   :  { %v1052_v52 = vpop.f32.mrf.mxu0 }
 0x143   :  { %v7206_v53 = vpop.f32.mrf.mxu1  ;;  %v5711_v40 = vpack.c.bf16 %v1404_v51, %v1402_v49  ;;  %v1406_v56 = vadd.f32 %v7138_v55, %v1052_v52 }
 0x144   :  { %v1054_v54 = vpop.f32.mrf.mxu0 }
 0x145   :  { %v7208_v43 = vpop.f32.mrf.mxu1  ;;  %2059 = vst.msk [vmem:[#allocation2 + $0x60] sm:$0xff] %vm7107_vm2, %v5711_v40  ;;  %v1408_v57 = vadd.f32 %v7140_v58, %v1054_v54  ;;  %v6466_v54 = vld [vmem:[#allocation3 + $0x28c] ss:$12 sps:$4 sm:$0xff]  }
 0x146   :  { %v1058_v59 = vpop.f32.mrf.mxu0 }
 0x147   :  { %v7214_v61 = vpop.f32.mrf.mxu1  ;;  %v5712_v50 = vpack.c.bf16 %v1408_v57, %v1406_v56  ;;  %v1412_v4 = vadd.f32 %v7148_v62, %v1058_v59 }
 0x148   :  { %v1060_v63 = vpop.f32.mrf.mxu0  ;;  %v6401_v1 = vld [vmem:[#allocation2 + $0x50] ss:$8 sps:$4 sm:$0xff]   ;;  %1237 = vmatmul.mubr.bf16.gmra.mxu0 %v6462_v21  ;;  %v6408_v57 = vld [vmem:[#allocation2 + $0x54] ss:$8 sps:$4 sm:$0xff]  }
 0x149   :  { %v7216_v3 = vpop.f32.mrf.mxu1  ;;  %2060 = vst.msk [vmem:[#allocation2 + $0x68] sm:$0xff] %vm7107_vm2, %v5712_v50  ;;  %v1414_v55 = vadd.f32 %v7152_v2, %v1060_v63  ;;  %2210 = vrot.lane.b32.xlu1 %v6401_v1, %s6896_s1  ;;  %1246 = vmatprep.mubr.bf16.mxu0 %v6463_v37 }
 0x14a   :  { %v1062_v58 = vpop.f32.mrf.mxu0 }
 0x14b   :  { %v7223_v5 = vpop.f32.mrf.mxu1  ;;  %v5713_v7 = vpack.c.bf16 %v1414_v55, %v1412_v4  ;;  %v1416_v16 = vadd.f32 %v7158_v6, %v1062_v58  ;;  %v6410_v4 = vld [vmem:[#allocation2 + $0x44] ss:$8 sps:$4 sm:$0xff]  }
 0x14c   :  { %v1064_v10 = vpop.f32.mrf.mxu0 }
 0x14d   :  { %v7225_v13 = vpop.f32.mrf.mxu1  ;;  %2061 = vst.msk [vmem:[#allocation2 + $0x70] sm:$0xff] %vm7107_vm2, %v5713_v7  ;;  %v1418_v62 = vadd.f32 %v7160_v9, %v1064_v10  ;;  %2208 = vrot.lane.b32.xlu1 %v6402_v8, %s6896_s1  ;;  %v7289_v8 = vld [vmem:[#allocation2 + $0x10] ss:$8 sps:$4 sm:$0xff]  }
 0x14e   :  { %v1068_v2 = vpop.f32.mrf.mxu0  ;;  %9144 = vst [vmem:[#allocation9_spill] sm:$0xff] %v7289_v8  ;;  %v6471_v10 = vld [vmem:[#allocation3 + $0x2a4] ss:$12 sps:$4 sm:$0xff]  }
 0x14f   :  { %v7232_v20 = vpop.f32.mrf.mxu1  ;;  %v5714_v23 = vpack.c.bf16 %v1418_v62, %v1416_v16  ;;  %v1422_v24 = vadd.f32 %v7166_v18, %v1068_v2  ;;  %v6412_v62 = vld [vmem:[#allocation2 + $0x34] ss:$8 sps:$4 sm:$0xff]  }
 0x150   :  { %v1070_v14 = vpop.f32.mrf.mxu0  ;;  %1247 = vmatmul.mubr.bf16.gmra.mxu0 %v6465_v25  ;;  %v6472_v25 = vld [vmem:[#allocation3 + $0x2b8] ss:$12 sps:$4 sm:$0xff]  }
 0x151   :  { %v7237_v29 = vpop.f32.mrf.mxu1  ;;  %2062 = vst.msk [vmem:[#allocation2 + $0x78] sm:$0xff] %vm7107_vm2, %v5714_v23  ;;  %v1424_v6 = vadd.f32 %v7168_v12, %v1070_v14  ;;  %2204 = vrot.lane.b32.xlu1 %v7235_v27, %s6896_s1  ;;  %1256 = vmatprep.mubr.bf16.mxu0 %v6466_v54  ;;  %v6475_v54 = vld [vmem:[#allocation3 + $0x2d0] ss:$12 sps:$4 sm:$0xff]  }
 0x152   :  { %v1072_v9 = vpop.f32.mrf.mxu0 }
 0x153   :  { %v7244_v30 = vpop.f32.mrf.mxu1  ;;  %v5715_v31 = vpack.c.bf16 %v1424_v6, %v1422_v24  ;;  %v1426_v34 = vadd.f32 %v7174_v26, %v1072_v9  ;;  %v6414_v6 = vld [vmem:[#allocation2 + $0x24] ss:$8 sps:$4 sm:$0xff]  }
 0x154   :  { %v1074_v18 = vpop.f32.mrf.mxu0 }
 0x155   :  { %v7246_v17 = vpop.f32.mrf.mxu1  ;;  %2063 = vst.msk [vmem:[#allocation2 + $0x80] sm:$0xff] %vm7107_vm2, %v5715_v31  ;;  %v1428_v36 = vadd.f32 %v7176_v15, %v1074_v18  ;;  %2200 = vrot.lane.b32.xlu1 %v7146_v60, %s6896_s1  ;;  %v6406_v60 = vld [vmem:[#allocation2 + $0x64] ss:$8 sps:$4 sm:$0xff]  }
 0x156   :  { %v1078_v38 = vpop.f32.mrf.mxu0 }
 0x157   :  { %v7254_v12 = vpop.f32.mrf.mxu1  ;;  %v5716_v41 = vpack.c.bf16 %v1428_v36, %v1426_v34  ;;  %v1432_v42 = vadd.f32 %v7182_v33, %v1078_v38  ;;  %v6474_v36 = vld [vmem:[#allocation3 + $0x2bc] ss:$12 sps:$4 sm:$0xff]  }
 0x158   :  { %v1080_v44 = vpop.f32.mrf.mxu0  ;;  %v6404_v45 = vld [vmem:[#allocation2 + $0x74] ss:$8 sps:$4 sm:$0xff]   ;;  %v6405_v15 = vld [vmem:[#allocation2 + $0x70] ss:$8 sps:$4 sm:$0xff]   ;;  %1257 = vmatmul.mubr.bf16.gmra.mxu0 %v6468_v0 }
 0x159   :  { %v7257_v32 = vpop.f32.mrf.mxu1  ;;  %2064 = vst.msk [vmem:[#allocation2 + $0x88] sm:$0xff] %vm7107_vm2, %v5716_v41  ;;  %v1434_v26 = vadd.f32 %v7184_v19, %v1080_v44  ;;  %6115 = vmatprep.subr.bf16.mxu0 %v6404_v45  ;;  %2214 = vrot.lane.b32.xlu0 %v6405_v15, %s6896_s1  ;;  %v7269_v19 = vld [vmem:[#allocation2 + $0x60] ss:$8 sps:$4 sm:$0xff]   ;;  %v6416_v38 = vld [vmem:[#allocation2 + $0x14] ss:$8 sps:$4 sm:$0xff]  }
 0x15a   :  { %v1082_v48 = vpop.f32.mrf.mxu0  ;;  %6116 = vmatpush3.bf16.msra.mxu0 %v6404_v45  ;;  %9142 = vst [vmem:[#allocation7_spill] sm:$0xff] %v7269_v19  ;;  %1266 = vmatprep.mubr.bf16.mxu0 %v6471_v10  ;;  %v6418_v15 = vld [vmem:[#allocation2 + $0x4] ss:$8 sps:$4 sm:$0xff]  }
 0x15b   :  { %v5717_v49 = vpack.c.bf16 %v1434_v26, %v1432_v42  ;;  %6117 = vmatprep.subr.bf16.mxu0 %v6406_v60  ;;  %v7263_v51 = vpop.f32.mrf.mxu1  ;;  %v1436_v52 = vadd.f32 %v7190_v39, %v1082_v48 }
 0x15c   :  { %v1084_v33 = vpop.f32.mrf.mxu0 }
 0x15d   :  { %2065 = vst.msk [vmem:[#allocation2 + $0x90] sm:$0xff] %vm7107_vm2, %v5717_v49  ;;  %v1438_v40 = vadd.f32 %v7192_v28, %v1084_v33  ;;  %2212 = vrot.lane.b32.xlu0 %v7269_v19, %s6896_s1  ;;  %v7274_v63 = vpop.f32.mrf.mxu1  ;;  %v7279_v28 = vld [vmem:[#allocation2 + $0x30] ss:$8 sps:$4 sm:$0xff]  }
 0x15e   :  { %v1088_v56 = vpop.f32.mrf.mxu0  ;;  %6118 = vmatpush3.bf16.msra.mxu0 %v6406_v60  ;;  %9143 = vst [vmem:[#allocation8_spill] sm:$0xff] %v7279_v28 }
 0x15f   :  { %v5718_v59 = vpack.c.bf16 %v1438_v40, %v1436_v52  ;;  %v1442_v47 = vadd.f32 %v7198_v46, %v1088_v56  ;;  %6119 = vmatprep.subr.bf16.mxu0 %v6408_v57  ;;  %v7283_v58 = vpop.f32.mrf.mxu1  ;;  %v6419_v52 = vld [vmem:[#allocation2 + $0x40] ss:$8 sps:$4 sm:$0xff]  }
 0x160   :  { %v1090_v50 = vpop.f32.mrf.mxu0  ;;  %1267 = vmatmul.mubr.bf16.gmra.mxu0 %v6469_v11 }
 0x161   :  { %2066 = vst.msk [vmem:[#allocation2 + $0x98] sm:$0xff] %vm7107_vm2, %v5718_v59  ;;  %v1444_v39 = vadd.f32 %v7200_v35, %v1090_v50  ;;  %2206 = vrot.lane.b32.xlu0 %v7279_v28, %s6896_s1  ;;  %v7294_v24 = vpop.f32.mrf.mxu1  ;;  %1276 = vmatprep.mubr.bf16.mxu0 %v6474_v36 }
 0x162   :  { %v1092_v1 = vpop.f32.mrf.mxu0  ;;  %6120 = vmatpush3.bf16.msra.mxu0 %v6408_v57 }
 0x163   :  { %v5719_v46 = vpack.c.bf16 %v1444_v39, %v1442_v47  ;;  %6121 = vmatprep.subr.bf16.mxu0 %v6410_v4  ;;  %v1446_v7 = vadd.f32 %v7206_v53, %v1092_v1  ;;  %v7300_v31 = vpop.f32.mrf.mxu1  ;;  %v6420_v47 = vld [vmem:[#allocation2 + $0x30] ss:$8 sps:$4 sm:$0xff]  }
 0x164   :  { %v1094_v55 = vpop.f32.mrf.mxu0 }
 0x165   :  { %2067 = vst.msk [vmem:[#allocation2 + $0xa0] sm:$0xff] %vm7107_vm2, %v5719_v46  ;;  %v1448_v35 = vadd.f32 %v7208_v43, %v1094_v55  ;;  %2202 = vrot.lane.b32.xlu0 %v7289_v8, %s6896_s1  ;;  %v6413_v43 = vld [vmem:[#allocation2 + $0x70] ss:$8 sps:$4 sm:$0xff]   ;;  %v1487_v45 = vpop.f32.mrf.mxu1  ;;  %v6421_v46 = vld [vmem:[#allocation2 + $0x20] ss:$8 sps:$4 sm:$0xff]  }
 0x166   :  { %v1098_v16 = vpop.f32.mrf.mxu0  ;;  %6122 = vmatpush3.bf16.msra.mxu0 %v6410_v4  ;;  %v6481_v55 = vld [vmem:[#allocation3 + $0x2ec] ss:$12 sps:$4 sm:$0xff]  }
 0x167   :  { %v5720_v2 = vpack.c.bf16 %v1448_v35, %v1446_v7  ;;  %v1452_v21 = vadd.f32 %v7214_v61, %v1098_v16  ;;  %6123 = vmatprep.subr.bf16.mxu0 %v6412_v62  ;;  %v1491_v60 = vpop.f32.mrf.mxu1  ;;  %v6479_v35 = vld [vmem:[#allocation3 + $0x2e8] ss:$12 sps:$4 sm:$0xff]  }
 0x168   :  { %v1100_v23 = vpop.f32.mrf.mxu0  ;;  %1277 = vmatmul.mubr.bf16.gmra.mxu0 %v6472_v25 }
 0x169   :  { %2068 = vst.msk [vmem:[#allocation2 + $0xa8] sm:$0xff] %vm7107_vm2, %v5720_v2  ;;  %v1454_v53 = vadd.f32 %v7216_v3, %v1100_v23  ;;  %2932 = vrot.lane.b32.xlu0 %v6413_v43, %s6896_s1  ;;  %v6415_v3 = vld [vmem:[#allocation2 + $0x60] ss:$8 sps:$4 sm:$0xff]   ;;  %v1493_v59 = vpop.f32.mrf.mxu1 }
 0x16a   :  { %v1102_v14 = vpop.f32.mrf.mxu0  ;;  %6124 = vmatpush3.bf16.msra.mxu0 %v6412_v62 }
 0x16b   :  { %v5721_v9 = vpack.c.bf16 %v1454_v53, %v1452_v21  ;;  %6125 = vmatprep.subr.bf16.mxu0 %v6414_v6  ;;  %v1456_v18 = vadd.f32 %v7223_v5, %v1102_v14  ;;  %v1495_v1 = vpop.f32.mrf.mxu1  ;;  %v6423_v14 = vld [vmem:[#allocation2] ss:$8 sps:$4 sm:$0xff]  }
 0x16c   :  { %v1104_v61 = vpop.f32.mrf.mxu0 }
 0x16d   :  { %2069 = vst.msk [vmem:[#allocation2 + $0xb0] sm:$0xff] %vm7107_vm2, %v5721_v9  ;;  %v1458_v34 = vadd.f32 %v7225_v13, %v1104_v61  ;;  %2930 = vrot.lane.b32.xlu0 %v6415_v3, %s6896_s1  ;;  %v6417_v13 = vld [vmem:[#allocation2 + $0x50] ss:$8 sps:$4 sm:$0xff]   ;;  %v1497_v62 = vpop.f32.mrf.mxu1 }
 0x16e   :  { %v1108_v37 = vpop.f32.mrf.mxu0  ;;  %6126 = vmatpush3.bf16.msra.mxu0 %v6414_v6 }
 0x16f   :  { %v5722_v41 = vpack.c.bf16 %v1458_v34, %v1456_v18  ;;  %v1462_v42 = vadd.f32 %v7232_v20, %v1108_v37  ;;  %6127 = vmatprep.subr.bf16.mxu0 %v6416_v38  ;;  %v7331_v2 = vpop.f32.mrf.mxu1 }
 0x170   :  { %v1110_v44 = vpop.f32.mrf.mxu0 }
 0x171   :  { %2070 = vst.msk [vmem:[#allocation2 + $0xb8] sm:$0xff] %vm7107_vm2, %v5722_v41  ;;  %v1464_v5 = vadd.f32 %v7237_v29, %v1110_v44  ;;  %2928 = vrot.lane.b32.xlu0 %v6417_v13, %s6896_s1  ;;  %v6477_v29 = vld [vmem:[#allocation3 + $0x2d4] ss:$12 sps:$4 sm:$0xff]  }
 0x172   :  { %v1112_v26 = vpop.f32.mrf.mxu0  ;;  %6128 = vmatpush3.bf16.msra.mxu0 %v6416_v38  ;;  %1286 = vmatprep.mubr.bf16.mxu0 %v6477_v29 }
 0x173   :  { %v5723_v48 = vpack.c.bf16 %v1464_v5, %v1462_v42  ;;  %6129 = vmatprep.subr.bf16.mxu0 %v6418_v15  ;;  %v1466_v49 = vadd.f32 %v7244_v30, %v1112_v26  ;;  %1287 = vmatmul.mubr.bf16.gmra.mxu0 %v6475_v54 }
 0x174   :  { %v1114_v20 = vpop.f32.mrf.mxu0  ;;  %1296 = vmatprep.mubr.bf16.mxu0 %v6481_v55 }
 0x175   :  { %2071 = vst.msk [vmem:[#allocation2 + $0xc0] sm:$0xff] %vm7107_vm2, %v5723_v48  ;;  %v1468_v33 = vadd.f32 %v7246_v17, %v1114_v20  ;;  %2926 = vrot.lane.b32.xlu0 %v6419_v52, %s6896_s1 }
 0x176   :  { %v1118_v40 = vpop.f32.mrf.mxu0  ;;  %6130 = vmatpush3.bf16.msra.mxu0 %v6418_v15 }
 0x177   :  { %v5724_v56 = vpack.c.bf16 %v1468_v33, %v1466_v49  ;;  %v1472_v57 = vadd.f32 %v7254_v12, %v1118_v40 }
 0x178   :  { %v1120_v0 = vpop.f32.mrf.mxu0 }
 0x179   :  { %2072 = vst.msk [vmem:[#allocation2 + $0xc8] sm:$0xff] %vm7107_vm2, %v5724_v56  ;;  %v1474_v30 = vadd.f32 %v7257_v32, %v1120_v0  ;;  %2924 = vrot.lane.b32.xlu0 %v6420_v47, %s6896_s1 }
 0x17a   :  { %v1122_v17 = vpop.f32.mrf.mxu0 }
 0x17b   :  { %v5725_v50 = vpack.c.bf16 %v1474_v30, %v1472_v57  ;;  %v1476_v12 = vadd.f32 %v7263_v51, %v1122_v17  ;;  %v6422_v51 = vld [vmem:[#allocation2 + $0x10] ss:$8 sps:$4 sm:$0xff]   ;;  %1297 = vmatmul.mubr.bf16.gmra.mxu0 %v6479_v35 }
 0x17c   :  { %v1124_v39 = vpop.f32.mrf.mxu0 }
 0x17d   :  { %2073 = vst.msk [vmem:[#allocation2 + $0xd0] sm:$0xff] %vm7107_vm2, %v5725_v50  ;;  %v1478_v4 = vadd.f32 %v7274_v63, %v1124_v39  ;;  %2922 = vrot.lane.b32.xlu0 %v6421_v46, %s6896_s1 }
 0x17e   :  { %v1128_v7 = vpop.f32.mrf.mxu0 }
 0x17f   :  { %v5726_v32 = vpack.c.bf16 %v1478_v4, %v1476_v12  ;;  %v1482_v10 = vadd.f32 %v7283_v58, %v1128_v7  ;;  %v7334_v58 = vpop.f32.mrf.mxu1 }
 0x180   :  { %v1130_v16 = vpop.f32.mrf.mxu0  ;;  %v7410_v46 = vld [vmem:[#allocation2 + $0xc0] ss:$8 sps:$4 sm:$0xff]  }
 0x181   :  { %2074 = vst.msk [vmem:[#allocation2 + $0xd8] sm:$0xff] %vm7107_vm2, %v5726_v32  ;;  %v1484_v11 = vadd.f32 %v7294_v24, %v1130_v16  ;;  %2920 = vrot.lane.b32.xlu0 %v6422_v51, %s6896_s1  ;;  %v7339_v24 = vpop.f32.mrf.mxu1  ;;  %9157 = vst [vmem:[#allocation22_spill] sm:$0xff] %v7410_v46 }
 0x182   :  { %v1132_v63 = vpop.f32.mrf.mxu0 }
 0x183   :  { %v5727_v21 = vpack.c.bf16 %v1484_v11, %v1482_v10  ;;  %v1486_v53 = vadd.f32 %v7300_v31, %v1132_v63  ;;  %v7342_v34 = vpop.f32.mrf.mxu1  ;;  %v7420_v10 = vld [vmem:[#allocation2 + $0xb0] ss:$8 sps:$4 sm:$0xff]   ;;  %v7428_v63 = vld [vmem:[#allocation2 + $0xa0] ss:$8 sps:$4 sm:$0xff]  }
 0x184   :  { %v1134_v23 = vpop.f32.mrf.mxu0  ;;  %9158 = vst [vmem:[#allocation23_spill] sm:$0xff] %v7420_v10  ;;  %9159 = vst [vmem:[#allocation24_spill] sm:$0xff] %v7428_v63 }
 0x185   :  { %2075 = vst.msk [vmem:[#allocation2 + $0xe0] sm:$0xff] %vm7107_vm2, %v5727_v21  ;;  %v1488_v43 = vadd.f32 %v1487_v45, %v1134_v23  ;;  %2918 = vrot.lane.b32.xlu0 %v6423_v14, %s6896_s1  ;;  %v7346_v37 = vpop.f32.mrf.mxu1  ;;  %v7434_v14 = vld [vmem:[#allocation2 + $0x90] ss:$8 sps:$4 sm:$0xff]  }
 0x186   :  { %v1138_v6 = vpop.f32.mrf.mxu0  ;;  %9145 = vst [vmem:[#allocation10_spill] sm:$0xff] %v7346_v37  ;;  %9160 = vst [vmem:[#allocation25_spill] sm:$0xff] %v7434_v14 }
 0x187   :  { %v5728_v9 = vpack.c.bf16 %v1488_v43, %v1486_v53  ;;  %v1492_v61 = vadd.f32 %v1491_v60, %v1138_v6  ;;  %v7348_v25 = vpop.f32.mrf.mxu1 }
 0x188   :  { %v1140_v18 = vpop.f32.mrf.mxu0  ;;  %9146 = vst [vmem:[#allocation11_spill] sm:$0xff] %v7348_v25  ;;  %v7398_v50 = vld [vmem:[#allocation2 + $0xd0] ss:$8 sps:$4 sm:$0xff]  }
 0x189   :  { %2076 = vst.msk [vmem:[#allocation2 + $0xe8] sm:$0xff] %vm7107_vm2, %v5728_v9  ;;  %v1494_v3 = vadd.f32 %v1493_v59, %v1140_v18  ;;  %v7352_v44 = vpop.f32.mrf.mxu1  ;;  %9156 = vst [vmem:[#allocation21_spill] sm:$0xff] %v7398_v50 }
 0x18a   :  { %v1142_v36 = vpop.f32.mrf.mxu0  ;;  %9147 = vst [vmem:[#allocation12_spill] sm:$0xff] %v7352_v44 }
 0x18b   :  { %v5729_v31 = vpack.c.bf16 %v1494_v3, %v1492_v61  ;;  %v1496_v41 = vadd.f32 %v1495_v1, %v1142_v36  ;;  %v7356_v13 = vpop.f32.mrf.mxu1  ;;  %v7438_v3 = vld [vmem:[#allocation2 + $0x80] ss:$8 sps:$4 sm:$0xff]  }
 0x18c   :  { %v1144_v38 = vpop.f32.mrf.mxu0  ;;  %9148 = vst [vmem:[#allocation13_spill] sm:$0xff] %v7356_v13  ;;  %9161 = vst [vmem:[#allocation26_spill] sm:$0xff] %v7438_v3 }
 0x18d   :  { %2077 = vst.msk [vmem:[#allocation2 + $0xf0] sm:$0xff] %vm7107_vm2, %v5729_v31  ;;  %v1498_v42 = vadd.f32 %v1497_v62, %v1144_v38  ;;  %v7362_v15 = vpop.f32.mrf.mxu1 }
 0x18e   :  { %v7354_v45 = vpop.f32.mrf.mxu0 }
 0x18f   :  { %v5730_v5 = vpack.c.bf16 %v1498_v42, %v1496_v41  ;;  %v7366_v20 = vpop.f32.mrf.mxu1 }
 0x190   :  { %v7358_v26 = vpop.f32.mrf.mxu0  ;;  %v7386_v0 = vld [vmem:[#allocation2 + $0xe0] ss:$8 sps:$4 sm:$0xff]  }
 0x191   :  { %2078 = vst.msk [vmem:[#allocation2 + $0xf8] sm:$0xff] %vm7107_vm2, %v5730_v5  ;;  %v7370_v49 = vpop.f32.mrf.mxu1  ;;  %9154 = vst [vmem:[#allocation19_spill] sm:$0xff] %v7386_v0 }
 0x192   :  { %v7364_v48 = vpop.f32.mrf.mxu0 }
 0x193   :  { %v7376_v29 = vpop.f32.mrf.mxu1 }
 0x194   :  { %v7368_v60 = vpop.f32.mrf.mxu0  ;;  %9151 = vst [vmem:[#allocation16_spill] sm:$0xff] %v7376_v29 }
 0x195   :  { %v7382_v56 = vpop.f32.mrf.mxu1 }
 0x196   :  { %v7372_v33 = vpop.f32.mrf.mxu0 }
 0x197   :  { %9149 = vst [vmem:[#allocation14_spill] sm:$0xff] %v7372_v33  ;;  %v7388_v59 = vpop.f32.mrf.mxu1 }
 0x198   :  { %v7374_v52 = vld [vmem:[#allocation2 + $0xf0] ss:$8 sps:$4 sm:$0xff]   ;;  %v7378_v40 = vpop.f32.mrf.mxu0  ;;  %v6456_v54 = vld [vmem:[#allocation2 + $0xf4] ss:$8 sps:$4 sm:$0xff]  }
 0x199   :  { %9150 = vst [vmem:[#allocation15_spill] sm:$0xff] %v7374_v52  ;;  %9152 = vst [vmem:[#allocation17_spill] sm:$0xff] %v7378_v40  ;;  %2948 = vrot.lane.b32.xlu1 %v7374_v52, %s6896_s1  ;;  %5891 = vmatprep.subr.bf16.mxu0 %v6456_v54  ;;  %v7394_v47 = vpop.f32.mrf.mxu1 }
 0x19a   :  { %v7384_v57 = vpop.f32.mrf.mxu0 }
 0x19b   :  { %9153 = vst [vmem:[#allocation18_spill] sm:$0xff] %v7384_v57  ;;  %v7400_v39 = vpop.f32.mrf.mxu1 }
 0x19c   :  { %v7390_v30 = vpop.f32.mrf.mxu0 }
 0x19d   :  { %9155 = vst [vmem:[#allocation20_spill] sm:$0xff] %v7390_v30  ;;  %2946 = vrot.lane.b32.xlu1 %v7386_v0, %s6896_s1  ;;  %v7406_v12 = vpop.f32.mrf.mxu1 }
 0x19e   :  { %v7396_v17 = vpop.f32.mrf.mxu0 }
 0x19f   :  { %v7412_v55 = vpop.f32.mrf.mxu1 }
 0x1a0   :  { %v7402_v1 = vpop.f32.mrf.mxu0 }
 0x1a1   :  { %2944 = vrot.lane.b32.xlu1 %v7398_v50, %s6896_s1  ;;  %v1545_v35 = vpop.f32.mrf.mxu1 }
 0x1a2   :  { %v7408_v4 = vpop.f32.mrf.mxu0 }
 0x1a3   :  { %v1547_v16 = vpop.f32.mrf.mxu1 }
 0x1a4   :  { %v7414_v7 = vpop.f32.mrf.mxu0 }
 0x1a5   :  { %2942 = vrot.lane.b32.xlu1 %v7410_v46, %s6896_s1  ;;  %v1551_v11 = vpop.f32.mrf.mxu1 }
 0x1a6   :  { %v7418_v32 = vpop.f32.mrf.mxu0 }
 0x1a7   :  { %v1553_v21 = vpop.f32.mrf.mxu1 }
 0x1a8   :  { %v7422_v62 = vpop.f32.mrf.mxu0 }
 0x1a9   :  { %2940 = vrot.lane.b32.xlu1 %v7420_v10, %s6896_s1  ;;  %v1555_v53 = vpop.f32.mrf.mxu1 }
 0x1aa   :  { %v7426_v51 = vpop.f32.mrf.mxu0 }
 0x1ab   :  { %v1557_v6 = vpop.f32.mrf.mxu1 }
 0x1ac   :  { %v7430_v23 = vpop.f32.mrf.mxu0 }
 0x1ad   :  { %2938 = vrot.lane.b32.xlu1 %v7428_v63, %s6896_s1  ;;  %v1561_v61 = vpop.f32.mrf.mxu1 }
 0x1ae   :  { %v1188_v43 = vpop.f32.mrf.mxu0 }
 0x1af   :  { %v1563_v36 = vpop.f32.mrf.mxu1 }
 0x1b0   :  { %v1190_v9 = vpop.f32.mrf.mxu0 }
 0x1b1   :  { %2936 = vrot.lane.b32.xlu1 %v7434_v14, %s6896_s1  ;;  %v1565_v41 = vpop.f32.mrf.mxu1 }
 0x1b2   :  { %v1192_v18 = vpop.f32.mrf.mxu0 }
 0x1b3   :  { %v1567_v54 = vpop.f32.mrf.mxu1 }
 0x1b4   :  { %v1194_v31 = vpop.f32.mrf.mxu0 }
 0x1b5   :  { %2934 = vrot.lane.b32.xlu1 %v7438_v3, %s6896_s1  ;;  %v1571_v0 = vpop.f32.mrf.mxu1 }
 0x1b6   :  { %v1198_v38 = vpop.f32.mrf.mxu0 }
 0x1b7   :  { %v1573_v10 = vpop.f32.mrf.mxu1  ;;  %v1552_v25 = vadd.f32 %v1551_v11, %v1198_v38  ;;  %v1548_v11 = vadd.f32 %v1547_v16, %v1194_v31  ;;  %v1532_v16 = vadd.f32 %v7382_v56, %v7418_v32  ;;  %v9162_v56 = vld [vmem:[#allocation16_spill] sm:$0xff] }
 0x1b8   :  { %v1200_v42 = vpop.f32.mrf.mxu0 }
 0x1b9   :  { %v1575_v13 = vpop.f32.mrf.mxu1  ;;  %v1554_v40 = vadd.f32 %v1553_v21, %v1200_v42  ;;  %v9170_v21 = vld [vmem:[#allocation13_spill] sm:$0xff] }
 0x1ba   :  { %v1202_v5 = vpop.f32.mrf.mxu0 }
 0x1bb   :  { %v1556_v37 = vadd.f32 %v1555_v53, %v1202_v5 }
 0x1bc   :  { %v1204_v52 = vpop.f32.mrf.mxu0 }
 0x1bd   :  { %v1558_v29 = vadd.f32 %v1557_v6, %v1204_v52 }
 0x1be   :  { %v1208_v50 = vpop.f32.mrf.mxu0 }
 0x1bf   :  { %v1562_v14 = vadd.f32 %v1561_v61, %v1208_v50  ;;  %v5742_v61 = vpack.c.bf16 %v1558_v29, %v1556_v37  ;;  %v1506_v29 = vadd.f32 %v7339_v24, %v7364_v48  ;;  %v1538_v24 = vadd.f32 %v7400_v39, %v7430_v23  ;;  %v2211_v39 = vpop.permute.xlu1 %2210 }
 0x1c0   :  { %v1210_v46 = vpop.f32.mrf.mxu0  ;;  %v1524_v48 = vadd.f32 %v7366_v20, %v7402_v1  ;;  %v9165_v20 = vld [vmem:[#allocation17_spill] sm:$0xff]  ;;  %v9166_v1 = vld [vmem:[#allocation11_spill] sm:$0xff] }
 0x1c1   :  { %v1564_v19 = vadd.f32 %v1563_v36, %v1210_v46  ;;  %v1577_v46 = vpop.f32.mrf.mxu1  ;;  %2090 = vst.msk [vmem:[#allocation2 + $0x158] sm:$0xff] %vm7107_vm2, %v5742_v61 }
 0x1c2   :  { %v1212_v63 = vpop.f32.mrf.mxu0 }
 0x1c3   :  { %v1566_v28 = vadd.f32 %v1565_v41, %v1212_v63  ;;  %v5743_v30 = vpack.c.bf16 %v1564_v19, %v1562_v14  ;;  %v5741_v63 = vpack.c.bf16 %v1554_v40, %v1552_v25  ;;  %v1502_v25 = vadd.f32 %v7331_v2, %v7354_v45 }
 0x1c4   :  { %v1214_v27 = vpop.f32.mrf.mxu0  ;;  %v1508_v40 = vadd.f32 %v7342_v34, %v7368_v60  ;;  %v1534_v2 = vadd.f32 %v7388_v59, %v7422_v62  ;;  %v1526_v60 = vadd.f32 %v7370_v49, %v7408_v4  ;;  %v1528_v59 = vadd.f32 %v9162_v56, %v7414_v7  ;;  %v9167_v49 = vld [vmem:[#allocation18_spill] sm:$0xff]  ;;  %v9168_v4 = vld [vmem:[#allocation12_spill] sm:$0xff] }
 0x1c5   :  { %v1568_v8 = vadd.f32 %v1567_v54, %v1214_v27  ;;  %2091 = vst.msk [vmem:[#allocation2 + $0x160] sm:$0xff] %vm7107_vm2, %v5743_v30  ;;  %2089 = vst.msk [vmem:[#allocation2 + $0x150] sm:$0xff] %vm7107_vm2, %v5741_v63  ;;  %v1514_v62 = vadd.f32 %v9166_v1, %v9165_v20  ;;  %v9169_v7 = vld [vmem:[#allocation20_spill] sm:$0xff]  ;;  %v1581_v63 = vpop.f32.mrf.mxu1  ;;  %v6864_v56 = vld [vmem:[#allocation2 + $0x40] ss:$8 sps:$4 sm:$0xff]  }
 0x1c6   :  { %v1218_v44 = vpop.f32.mrf.mxu0  ;;  %v5737_v34 = vpack.c.bf16 %v1534_v2, %v1532_v16  ;;  %v1518_v23 = vadd.f32 %v9170_v21, %v9169_v7 }
 0x1c7   :  { %v5744_v3 = vpack.c.bf16 %v1568_v8, %v1566_v28  ;;  %v1572_v57 = vadd.f32 %v1571_v0, %v1218_v44  ;;  %v1542_v8 = vadd.f32 %v7406_v12, %v1188_v43  ;;  %v1544_v44 = vadd.f32 %v7412_v55, %v1190_v9  ;;  %v1583_v61 = vpop.f32.mrf.mxu1 }
 0x1c8   :  { %v1220_v33 = vpop.f32.mrf.mxu0  ;;  %v1546_v0 = vadd.f32 %v1545_v35, %v1192_v18  ;;  %2085 = vst.msk [vmem:[#allocation2 + $0x130] sm:$0xff] %vm7107_vm2, %v5737_v34  ;;  %v5736_v43 = vpack.c.bf16 %v1528_v59, %v1526_v60  ;;  %v2257_v18 = vsel %vm2216_vm3, %v2211_v39, 0 }
 0x1c9   :  { %2092 = vst.msk [vmem:[#allocation2 + $0x168] sm:$0xff] %vm7107_vm2, %v5744_v3  ;;  %v1574_v50 = vadd.f32 %v1573_v10, %v1220_v33  ;;  %v5732_v10 = vpack.c.bf16 %v1508_v40, %v1506_v29  ;;  %v2209_v3 = vpop.permute.xlu1 %2208 }
 0x1ca   :  { %v1222_v27 = vpop.f32.mrf.mxu0  ;;  %v5740_v30 = vpack.c.bf16 %v1548_v11, %v1546_v0  ;;  %2084 = vst.msk [vmem:[#allocation2 + $0x128] sm:$0xff] %vm7107_vm2, %v5736_v43  ;;  %v2254_v36 = vsel %vm2216_vm3, %v2209_v3, 0  ;;  %v6865_v43 = vld [vmem:[#allocation2 + $0x50] ss:$8 sps:$4 sm:$0xff]  }
 0x1cb   :  { %v5745_v19 = vpack.c.bf16 %v1574_v50, %v1572_v57  ;;  %v1576_v14 = vadd.f32 %v1575_v13, %v1222_v27  ;;  %v2215_v28 = vpop.permute.xlu0 %2214  ;;  %v1504_v13 = vadd.f32 %v7334_v58, %v7358_v26  ;;  %v5739_v57 = vpack.c.bf16 %v1544_v44, %v1542_v8  ;;  %2080 = vst.msk [vmem:[#allocation2 + $0x108] sm:$0xff] %vm7107_vm2, %v5732_v10 }
 0x1cc   :  { %v1224_v52 = vpop.f32.mrf.mxu0  ;;  %6211 = vmatprep.subr.msk.bf16.mxu1 %vm2216_vm3, %v2215_v28  ;;  %v2263_v33 = vsel %vm2216_vm3, %v2215_v28, 0  ;;  %v1536_v58 = vadd.f32 %v7394_v47, %v7426_v51  ;;  %2088 = vst.msk [vmem:[#allocation2 + $0x148] sm:$0xff] %vm7107_vm2, %v5740_v30  ;;  %v1522_v26 = vadd.f32 %v7362_v15, %v7396_v17  ;;  %v9163_v15 = vld [vmem:[#allocation14_spill] sm:$0xff]  ;;  %v1516_v51 = vadd.f32 %v9168_v4, %v9167_v49 }
 0x1cd   :  { %2093 = vst.msk [vmem:[#allocation2 + $0x170] sm:$0xff] %vm7107_vm2, %v5745_v19  ;;  %v1578_v37 = vadd.f32 %v1577_v46, %v1224_v52  ;;  %6084 = vmatpush3.bf16.xpose.msra.mxu1 %v2263_v33  ;;  %v5731_v35 = vpack.c.bf16 %v1504_v13, %v1502_v25  ;;  %2087 = vst.msk [vmem:[#allocation2 + $0x140] sm:$0xff] %vm7107_vm2, %v5739_v57  ;;  %v9164_v17 = vld [vmem:[#allocation10_spill] sm:$0xff]  ;;  %v2205_v41 = vpop.permute.xlu1 %2204  ;;  %v9171_v33 = vld [vmem:[#allocation9_spill] sm:$0xff] }
 0x1ce   :  { %v5738_v45 = vpack.c.bf16 %v1538_v24, %v1536_v58  ;;  %v1512_v32 = vadd.f32 %v9164_v17, %v9163_v15  ;;  %v5735_v53 = vpack.c.bf16 %v1524_v48, %v1522_v26  ;;  %v5734_v9 = vpack.c.bf16 %v1518_v23, %v1516_v51  ;;  %v9172_v25 = vld [vmem:[#allocation6_spill] sm:$0xff]  ;;  %v9173_v48 = vld [vmem:[#allocation8_spill] sm:$0xff] }
 0x1cf   :  { %v5746_v12 = vpack.c.bf16 %v1578_v37, %v1576_v14  ;;  %v2213_v55 = vpop.permute.xlu0 %2212  ;;  %2079 = vst.msk [vmem:[#allocation2 + $0x100] sm:$0xff] %vm7107_vm2, %v5731_v35  ;;  %v2248_v42 = vsel %vm2216_vm3, %v2205_v41, 0  ;;  %v1585_v14 = vpop.f32.mrf.mxu1 }
 0x1d0   :  { %6212 = vmatprep.subr.msk.bf16.mxu1 %vm2216_vm3, %v2213_v55  ;;  %v2260_v47 = vsel %vm2216_vm3, %v2213_v55, 0  ;;  %2086 = vst.msk [vmem:[#allocation2 + $0x138] sm:$0xff] %vm7107_vm2, %v5738_v45  ;;  %v5733_v6 = vpack.c.bf16 %v1514_v62, %v1512_v32  ;;  %2083 = vst.msk [vmem:[#allocation2 + $0x120] sm:$0xff] %vm7107_vm2, %v5735_v53 }
 0x1d1   :  { %2094 = vst.msk [vmem:[#allocation2 + $0x178] sm:$0xff] %vm7107_vm2, %v5746_v12  ;;  %2082 = vst.msk [vmem:[#allocation2 + $0x118] sm:$0xff] %vm7107_vm2, %v5734_v9  ;;  %v2201_v50 = vpop.permute.xlu1 %2200  ;;  %v1587_v0 = vpop.f32.mrf.mxu1  ;;  %v9174_v9 = vld [vmem:[#allocation7_spill] sm:$0xff] }
 0x1d2   :  { %2081 = vst.msk [vmem:[#allocation2 + $0x110] sm:$0xff] %vm7107_vm2, %v5733_v6  ;;  %v2242_v46 = vsel %vm2216_vm3, %v2201_v50, 0 }
 0x1d3   :  { %v2207_v31 = vpop.permute.xlu0 %2206  ;;  %v1591_v37 = vpop.f32.mrf.mxu1 }
 0x1d4   :  { %v2251_v38 = vsel %vm2216_vm3, %v2207_v31, 0 }
 0x1d5   :  { %6086 = vmatpush3.bf16.xpose.msra.mxu1 %v2260_v47  ;;  %v1593_v12 = vpop.f32.mrf.mxu1 }
 0x1d6   :  { %6213 = vmatprep.subr.msk.bf16.mxu1 %vm2216_vm3, %v2211_v39 }
 0x1d7   :  { %v2203_v5 = vpop.permute.xlu0 %2202  ;;  %v1595_v16 = vpop.f32.mrf.mxu1  ;;  %v6488_v22 = vld [vmem:[#allocation2 + $0x134] ss:$8 sps:$4 sm:$0xff]  }
 0x1d8   :  { %v2245_v54 = vsel %vm2216_vm3, %v2203_v5, 0  ;;  %v6478_v27 = vld [vmem:[#allocation2 + $0x170] ss:$8 sps:$4 sm:$0xff]  }
 0x1d9   :  { %3815 = vrot.lane.b32.xlu1 %v6478_v27, %s6896_s1  ;;  %v1597_v34 = vpop.f32.mrf.mxu1 }
 0x1db   :  { %v2933_v8 = vpop.permute.xlu0 %2932  ;;  %v1601_v60 = vpop.f32.mrf.mxu1 }
 0x1dc   :  { %v2996_v52 = vsel %vm2216_vm3, %v2933_v8, 0 }
 0x1dd   :  { %6088 = vmatpush3.bf16.xpose.msra.mxu1 %v2257_v18  ;;  %v1603_v32 = vpop.f32.mrf.mxu1 }
 0x1de   :  { %6214 = vmatprep.subr.msk.bf16.mxu1 %vm2216_vm3, %v2209_v3 }
 0x1df   :  { %v2931_v58 = vpop.permute.xlu0 %2930  ;;  %v1605_v49 = vpop.f32.mrf.mxu1 }
 0x1e0   :  { %v2993_v26 = vsel %vm2216_vm3, %v2931_v58, 0 }
 0x1e1   :  { %v1607_v21 = vpop.f32.mrf.mxu1 }
 0x1e3   :  { %v2929_v51 = vpop.permute.xlu0 %2928  ;;  %v1611_v6 = vpop.f32.mrf.mxu1 }
 0x1e4   :  { %v2990_v53 = vsel %vm2216_vm3, %v2929_v51, 0 }
 0x1e5   :  { %6090 = vmatpush3.bf16.xpose.msra.mxu1 %v2254_v36 }
 0x1e6   :  { %6215 = vmatprep.subr.msk.bf16.mxu1 %vm2216_vm3, %v2207_v31 }
 0x1ed   :  { %6092 = vmatpush3.bf16.xpose.msra.mxu1 %v2251_v38 }
 0x1ee   :  { %6216 = vmatprep.subr.msk.bf16.mxu1 %vm2216_vm3, %v2205_v41  ;;  %v1613_v41 = vpop.f32.mrf.mxu1 }
 0x1f5   :  { %6094 = vmatpush3.bf16.xpose.msra.mxu1 %v2248_v42 }
 0x1f6   :  { %6217 = vmatprep.subr.msk.bf16.mxu1 %vm2216_vm3, %v2203_v5 }
 0x1fd   :  { %6096 = vmatpush3.bf16.xpose.msra.mxu1 %v2245_v54 }
 0x1fe   :  { %6218 = vmatprep.subr.msk.bf16.mxu1 %vm2216_vm3, %v2201_v50  ;;  %v1615_v50 = vpop.f32.mrf.mxu1 }
 0x200   :  { %v1228_v19 = vpop.f32.mrf.mxu0 }
 0x201   :  { %v1582_v13 = vadd.f32 %v1581_v63, %v1228_v19  ;;  %v2927_v63 = vpop.permute.xlu0 %2926 }
 0x202   :  { %v1230_v28 = vpop.f32.mrf.mxu0 }
 0x203   :  { %v1584_v29 = vadd.f32 %v1583_v61, %v1230_v28  ;;  %v1617_v61 = vpop.f32.mrf.mxu1  ;;  %v6866_v28 = vld [vmem:[#allocation2 + $0x70] ss:$8 sps:$4 sm:$0xff]  }
 0x204   :  { %v1232_v11 = vpop.f32.mrf.mxu0 }
 0x205   :  { %6098 = vmatpush3.bf16.xpose.msra.mxu1 %v2242_v46  ;;  %v1586_v40 = vadd.f32 %v1585_v14, %v1232_v11  ;;  %v5747_v35 = vpack.c.bf16 %v1584_v29, %v1582_v13  ;;  %v2987_v14 = vsel %vm2216_vm3, %v2927_v63, 0  ;;  %v1621_v8 = vpop.f32.mrf.mxu1 }
 0x206   :  { %v1234_v57 = vpop.f32.mrf.mxu0 }
 0x207   :  { %v1588_v55 = vadd.f32 %v1587_v0, %v1234_v57  ;;  %2095 = vst.msk [vmem:[#allocation2 + $0x180] sm:$0xff] %vm7107_vm2, %v5747_v35 }
 0x208   :  { %v1238_v10 = vpop.f32.mrf.mxu0 }
 0x209   :  { %v5748_v2 = vpack.c.bf16 %v1588_v55, %v1586_v40  ;;  %v1592_v47 = vadd.f32 %v1591_v37, %v1238_v10 }
 0x20a   :  { %v1240_v24 = vpop.f32.mrf.mxu0 }
 0x20b   :  { %v2949_v44 = vpop.permute.xlu1 %2948  ;;  %2096 = vst.msk [vmem:[#allocation2 + $0x188] sm:$0xff] %vm7107_vm2, %v5748_v2  ;;  %v1594_v39 = vadd.f32 %v1593_v12, %v1240_v24  ;;  %v2925_v12 = vpop.permute.xlu0 %2924 }
 0x20c   :  { %6219 = vmatprep.subr.msk.bf16.mxu1 %vm2216_vm3, %v2949_v44  ;;  %6100 = vmatmul.mubr.msk.bf16.vlgmr.msra.gmra.mxu1 %vm2216_vm3, %v9171_v33  ;;  %v1242_v45 = vpop.f32.mrf.mxu0  ;;  %v9175_v44 = vld [vmem:[#allocation26_spill] sm:$0xff] }
 0x20d   :  { %6103 = vmatprep.mubr.msk.bf16.mxu1 %vm2216_vm3, %v9172_v25  ;;  %5860 = vmatpush3.bf16.xpose.msra.mxu1 %v2996_v52  ;;  %v1596_v15 = vadd.f32 %v1595_v16, %v1242_v45  ;;  %v5749_v1 = vpack.c.bf16 %v1594_v39, %v1592_v47  ;;  %v1623_v25 = vpop.f32.mrf.mxu1  ;;  %v2984_v16 = vsel %vm2216_vm3, %v2925_v12, 0 }
 0x20e   :  { %v1244_v17 = vpop.f32.mrf.mxu0 }
 0x20f   :  { %v2947_v30 = vpop.permute.xlu1 %2946  ;;  %v1598_v20 = vadd.f32 %v1597_v34, %v1244_v17  ;;  %2097 = vst.msk [vmem:[#allocation2 + $0x190] sm:$0xff] %vm7107_vm2, %v5749_v1  ;;  %v1625_v57 = vpop.f32.mrf.mxu1 }
 0x210   :  { %6220 = vmatprep.subr.msk.bf16.mxu1 %vm2216_vm3, %v2947_v30  ;;  %v1248_v62 = vpop.f32.mrf.mxu0 }
 0x211   :  { %v5750_v4 = vpack.c.bf16 %v1598_v20, %v1596_v15  ;;  %v1602_v3 = vadd.f32 %v1601_v60, %v1248_v62  ;;  %v1627_v35 = vpop.f32.mrf.mxu1  ;;  %v2923_v15 = vpop.permute.xlu0 %2922 }
 0x212   :  { %v1250_v7 = vpop.f32.mrf.mxu0  ;;  %v2981_v1 = vsel %vm2216_vm3, %v2923_v15, 0 }
 0x213   :  { %v2945_v59 = vpop.permute.xlu1 %2944  ;;  %2098 = vst.msk [vmem:[#allocation2 + $0x198] sm:$0xff] %vm7107_vm2, %v5750_v4  ;;  %v1604_v36 = vadd.f32 %v1603_v32, %v1250_v7  ;;  %v1631_v2 = vpop.f32.mrf.mxu1 }
 0x214   :  { %6104 = vmatmul.mubr.msk.bf16.gmra.mxu1 %vm2216_vm3, %v9173_v48  ;;  %v1252_v23 = vpop.f32.mrf.mxu0 }
 0x215   :  { %6107 = vmatprep.mubr.msk.bf16.mxu1 %vm2216_vm3, %v6864_v56  ;;  %5862 = vmatpush3.bf16.xpose.msra.mxu1 %v2993_v26  ;;  %v1606_v31 = vadd.f32 %v1605_v49, %v1252_v23  ;;  %v5751_v5 = vpack.c.bf16 %v1604_v36, %v1602_v3  ;;  %v1633_v48 = vpop.f32.mrf.mxu1  ;;  %v2921_v3 = vpop.permute.xlu0 %2920 }
 0x216   :  { %6221 = vmatprep.subr.msk.bf16.mxu1 %vm2216_vm3, %v2945_v59  ;;  %v1254_v38 = vpop.f32.mrf.mxu0 }
 0x217   :  { %v2943_v18 = vpop.permute.xlu1 %2942  ;;  %v1608_v42 = vadd.f32 %v1607_v21, %v1254_v38  ;;  %2099 = vst.msk [vmem:[#allocation2 + $0x1a0] sm:$0xff] %vm7107_vm2, %v5751_v5  ;;  %v1635_v47 = vpop.f32.mrf.mxu1 }
 0x218   :  { %v1258_v54 = vpop.f32.mrf.mxu0 }
 0x219   :  { %v5752_v46 = vpack.c.bf16 %v1608_v42, %v1606_v31  ;;  %v1612_v11 = vadd.f32 %v1611_v6, %v1258_v54  ;;  %v1637_v32 = vpop.f32.mrf.mxu1 }
 0x21a   :  { %v1260_v27 = vpop.f32.mrf.mxu0 }
 0x21b   :  { %2100 = vst.msk [vmem:[#allocation2 + $0x1a8] sm:$0xff] %vm7107_vm2, %v5752_v46  ;;  %v2941_v0 = vpop.permute.xlu1 %2940  ;;  %v1614_v52 = vadd.f32 %v1613_v41, %v1260_v27  ;;  %v1641_v62 = vpop.f32.mrf.mxu1  ;;  %v2978_v41 = vsel %vm2216_vm3, %v2921_v3, 0 }
 0x21c   :  { %6108 = vmatmul.mubr.msk.bf16.gmra.mxu1 %vm2216_vm3, %v6865_v43  ;;  %v1262_v19 = vpop.f32.mrf.mxu0 }
 0x21d   :  { %6111 = vmatprep.mubr.msk.bf16.mxu1 %vm2216_vm3, %v9174_v9  ;;  %5864 = vmatpush3.bf16.xpose.msra.mxu1 %v2990_v53  ;;  %v1616_v33 = vadd.f32 %v1615_v50, %v1262_v19  ;;  %v5753_v29 = vpack.c.bf16 %v1614_v52, %v1612_v11  ;;  %v1643_v23 = vpop.f32.mrf.mxu1  ;;  %v6483_v52 = vld [vmem:[#allocation2 + $0x174] ss:$8 sps:$4 sm:$0xff]  }
 0x21e   :  { %6222 = vmatprep.subr.msk.bf16.mxu1 %vm2216_vm3, %v2943_v18  ;;  %v1264_v37 = vpop.f32.mrf.mxu0 }
 0x21f   :  { %v1618_v13 = vadd.f32 %v1617_v61, %v1264_v37  ;;  %2101 = vst.msk [vmem:[#allocation2 + $0x1b0] sm:$0xff] %vm7107_vm2, %v5753_v29  ;;  %v2939_v58 = vpop.permute.xlu1 %2938  ;;  %v1645_v9 = vpop.f32.mrf.mxu1 }
 0x220   :  { %v1268_v40 = vpop.f32.mrf.mxu0 }
 0x221   :  { %v5754_v30 = vpack.c.bf16 %v1618_v13, %v1616_v33  ;;  %v1622_v24 = vadd.f32 %v1621_v8, %v1268_v40  ;;  %v1647_v31 = vpop.f32.mrf.mxu1 }
 0x222   :  { %v1270_v55 = vpop.f32.mrf.mxu0 }
 0x223   :  { %2102 = vst.msk [vmem:[#allocation2 + $0x1b8] sm:$0xff] %vm7107_vm2, %v5754_v30  ;;  %v1624_v34 = vadd.f32 %v1623_v25, %v1270_v55  ;;  %v2937_v49 = vpop.permute.xlu1 %2936  ;;  %v1651_v42 = vpop.f32.mrf.mxu1 }
 0x224   :  { %6112 = vmatmul.mubr.msk.bf16.gmra.mxu1 %vm2216_vm3, %v6866_v28  ;;  %v1272_v10 = vpop.f32.mrf.mxu0 }
 0x225   :  { %5866 = vmatpush3.bf16.xpose.msra.mxu1 %v2987_v14  ;;  %5875 = vmatprep.mubr.msk.bf16.mxu1 %vm2216_vm3, %v9175_v44  ;;  %v1626_v45 = vadd.f32 %v1625_v57, %v1272_v10  ;;  %v5755_v56 = vpack.c.bf16 %v1624_v34, %v1622_v24  ;;  %v1653_v27 = vpop.f32.mrf.mxu1  ;;  %v9176_v10 = vld [vmem:[#allocation25_spill] sm:$0xff]  ;;  %v9178_v24 = vld [vmem:[#allocation23_spill] sm:$0xff] }
 0x226   :  { %6223 = vmatprep.subr.msk.bf16.mxu1 %vm2216_vm3, %v2941_v0  ;;  %v1274_v26 = vpop.f32.mrf.mxu0  ;;  %v2919_v0 = vpop.permute.xlu0 %2918  ;;  %v6490_v34 = vld [vmem:[#allocation2 + $0x114] ss:$8 sps:$4 sm:$0xff]  }
 0x227   :  { %v1628_v60 = vadd.f32 %v1627_v35, %v1274_v26  ;;  %2103 = vst.msk [vmem:[#allocation2 + $0x1c0] sm:$0xff] %vm7107_vm2, %v5755_v56  ;;  %v2935_v5 = vpop.permute.xlu1 %2934  ;;  %v1655_v28 = vpop.f32.mrf.mxu1  ;;  %v2975_v25 = vsel %vm2216_vm3, %v2919_v0, 0  ;;  %v6484_v35 = vld [vmem:[#allocation2 + $0x164] ss:$8 sps:$4 sm:$0xff]  }
 0x228   :  { %v1278_v59 = vpop.f32.mrf.mxu0  ;;  %v9179_v26 = vld [vmem:[#allocation22_spill] sm:$0xff]  ;;  %v9181_v56 = vld [vmem:[#allocation19_spill] sm:$0xff] }
 0x229   :  { %v5756_v39 = vpack.c.bf16 %v1628_v60, %v1626_v45  ;;  %v1632_v4 = vadd.f32 %v1631_v2, %v1278_v59  ;;  %v1657_v33 = vpop.f32.mrf.mxu1  ;;  %v6487_v2 = vld [vmem:[#allocation2 + $0x144] ss:$8 sps:$4 sm:$0xff]   ;;  %v9180_v60 = vld [vmem:[#allocation21_spill] sm:$0xff] }
 0x22a   :  { %v1280_v17 = vpop.f32.mrf.mxu0  ;;  %v6491_v45 = vld [vmem:[#allocation2 + $0x104] ss:$8 sps:$4 sm:$0xff]  }
 0x22b   :  { %2104 = vst.msk [vmem:[#allocation2 + $0x1c8] sm:$0xff] %vm7107_vm2, %v5756_v39  ;;  %v1634_v51 = vadd.f32 %v1633_v48, %v1280_v17  ;;  %v9182_v59 = vld [vmem:[#allocation15_spill] sm:$0xff] }
 0x22c   :  { %v1282_v20 = vpop.f32.mrf.mxu0 }
 0x22d   :  { %5868 = vmatpush3.bf16.xpose.msra.mxu1 %v2984_v16  ;;  %v1636_v7 = vadd.f32 %v1635_v47, %v1282_v20  ;;  %v5757_v43 = vpack.c.bf16 %v1634_v51, %v1632_v4  ;;  %v6486_v16 = vld [vmem:[#allocation2 + $0x154] ss:$8 sps:$4 sm:$0xff]   ;;  %v2111_v47 = vlaneseq }
 0x22e   :  { %6224 = vmatprep.subr.msk.bf16.mxu1 %vm2216_vm3, %v2939_v58  ;;  %v1284_v21 = vpop.f32.mrf.mxu0  ;;  %v9177_v58 = vld [vmem:[#allocation24_spill] sm:$0xff] }
 0x22f   :  { %v1638_v53 = vadd.f32 %v1637_v32, %v1284_v21  ;;  %2105 = vst.msk [vmem:[#allocation2 + $0x1d0] sm:$0xff] %vm7107_vm2, %v5757_v43  ;;  %v7616_v39 = vshrl.u32 %v2111_v47, 7  ;;  %v7618_v15 = vand.u32 127, %v2111_v47 }
 0x231   :  { %v5758_v18 = vpack.c.bf16 %v1638_v53, %v1636_v7  ;;  %9183 = vst [vmem:[#allocation16_spill] sm:$0xff] %v7616_v39  ;;  %9184 = vst [vmem:[#allocation14_spill] sm:$0xff] %v7618_v15  ;;  %v7621_v17 = vadd.s32 8, %v7616_v39  ;;  %v7624_v32 = vadd.s32 128, %v7618_v15  ;;  %vm2364_vm6 = vcmp.le.s32.totalorder %v7618_v15, %v7616_v39 }
 0x232   :  { %v7645_v51 = vadd.s32 24, %v7616_v39  ;;  %v7650_v21 = vadd.s32 48, %v7616_v39  ;;  %v7661_v43 = vadd.s32 56, %v7616_v39  ;;  %v7738_v0 = vadd.s32 112, %v7616_v39 }
 0x233   :  { %v1288_v6 = vpop.f32.mrf.mxu0  ;;  %2106 = vst.msk [vmem:[#allocation2 + $0x1d8] sm:$0xff] %vm7107_vm2, %v5758_v18  ;;  %9185 = vst [vmem:[#allocation10_spill] sm:$0xff] %v7621_v17  ;;  %v7627_v20 = vadd.s32 128, %v7621_v17  ;;  %vm2365_vm7 = vcmp.le.s32.totalorder %v7618_v15, %v7621_v17  ;;  %v7672_v18 = vadd.s32 32, %v7616_v39 }
 0x234   :  { %v1642_v54 = vadd.f32 %v1641_v62, %v1288_v6  ;;  %9188 = vst [vmem:[#allocation18_spill] sm:$0xff] %v7645_v51  ;;  %9189 = vst [vmem:[#allocation12_spill] sm:$0xff] %v7650_v21  ;;  %vm2367_vm8 = vcmp.le.s32.totalorder %v7618_v15, %v7645_v51  ;;  %vm2370_vm9 = vcmp.le.s32.totalorder %v7618_v15, %v7650_v21  ;;  %v7820_v47 = vadd.s32 128, %v7645_v51 }
 0x235   :  { %5870 = vmatpush3.bf16.xpose.msra.mxu1 %v2981_v1  ;;  %v1290_v36 = vpop.f32.mrf.mxu0  ;;  %9186 = vst [vmem:[#allocation17_spill] sm:$0xff] %v7627_v20  ;;  %vm9063_vm4 = vcmp.le.s32.totalorder %v7624_v32, %v7627_v20  ;;  %v7632_v1 = vadd.s32 16, %v7616_v39  ;;  %9190 = vst [vmem:[#allocation20_spill] sm:$0xff] %v7661_v43  ;;  %vm2371_vm10 = vcmp.le.s32.totalorder %v7618_v15, %v7661_v43 }
 0x236   :  { %6225 = vmatprep.subr.msk.bf16.mxu1 %vm2216_vm3, %v2937_v49  ;;  %v1644_v50 = vadd.f32 %v1643_v23, %v1290_v36  ;;  %9191 = vst [vmem:[#allocation13_spill] sm:$0xff] %v7672_v18  ;;  %vm2368_vm11 = vcmp.le.s32.totalorder %v7618_v15, %v7672_v18  ;;  %9197 = vst [vmem:[#allocation25_spill] sm:$0xff] %v7738_v0  ;;  %vm9061_vm1 = vcmp.le.s32.totalorder %v7618_v15, %v7738_v0 }
 0x237   :  { %v1292_v38 = vpop.f32.mrf.mxu0  ;;  %9187 = vst [vmem:[#allocation11_spill] sm:$0xff] %v7632_v1  ;;  %vm2366_vm5 = vcmp.le.s32.totalorder %v7618_v15, %v7632_v1  ;;  %9203 = vst [vmem:[#allocation15_spill] sm:$0xff] %v7820_v47 }
 0x238   :  { %v1646_v46 = vadd.f32 %v1645_v9, %v1292_v38  ;;  %v5759_v19 = vpack.c.bf16 %v1644_v50, %v1642_v54  ;;  %v7705_v50 = vadd.s32 88, %v7616_v39 }
 0x239   :  { %v1294_v63 = vpop.f32.mrf.mxu0 }
 0x23a   :  { %v1648_v61 = vadd.f32 %v1647_v31, %v1294_v63  ;;  %2107 = vst.msk [vmem:[#allocation2 + $0x1e0] sm:$0xff] %vm7107_vm2, %v5759_v19  ;;  %v7683_v31 = vadd.s32 40, %v7616_v39  ;;  %9194 = vst [vmem:[#allocation8_spill] sm:$0xff] %v7705_v50  ;;  %vm9058_vm14 = vcmp.le.s32.totalorder %v7618_v15, %v7705_v50 }
 0x23b   :  { %v1298_v14 = vpop.f32.mrf.mxu0 }
 0x23c   :  { %v5760_v8 = vpack.c.bf16 %v1648_v61, %v1646_v46  ;;  %v1652_v13 = vadd.f32 %v1651_v42, %v1298_v14  ;;  %9192 = vst [vmem:[#allocation9_spill] sm:$0xff] %v7683_v31  ;;  %v7694_v42 = vadd.s32 80, %v7616_v39  ;;  %vm2369_vm12 = vcmp.le.s32.totalorder %v7618_v15, %v7683_v31 }
 0x23d   :  { %5872 = vmatpush3.bf16.xpose.msra.mxu1 %v2978_v41  ;;  %v1300_v11 = vpop.f32.mrf.mxu0  ;;  %v7727_v14 = vadd.s32 72, %v7616_v39 }
 0x23e   :  { %6226 = vmatprep.subr.msk.bf16.mxu1 %vm2216_vm3, %v2935_v5  ;;  %2108 = vst.msk [vmem:[#allocation2 + $0x1e8] sm:$0xff] %vm7107_vm2, %v5760_v8  ;;  %v1654_v29 = vadd.f32 %v1653_v27, %v1300_v11  ;;  %9193 = vst [vmem:[#allocation6_spill] sm:$0xff] %v7694_v42  ;;  %vm9059_vm13 = vcmp.le.s32.totalorder %v7618_v15, %v7694_v42  ;;  %v7716_v27 = vadd.s32 64, %v7616_v39 }
 0x23f   :  { %v1302_v37 = vpop.f32.mrf.mxu0  ;;  %9196 = vst [vmem:[#allocation26_spill] sm:$0xff] %v7727_v14  ;;  %vm2373_vm0 = vcmp.le.s32.totalorder %v7618_v15, %v7727_v14 }
 0x240   :  { %v1656_v57 = vadd.f32 %v1655_v28, %v1302_v37  ;;  %v5761_v12 = vpack.c.bf16 %v1654_v29, %v1652_v13  ;;  %9195 = vst [vmem:[#allocation7_spill] sm:$0xff] %v7716_v27  ;;  %vm2372_vm15 = vcmp.le.s32.totalorder %v7618_v15, %v7716_v27  ;;  %v7760_v13 = vadd.s32 96, %v7616_v39 }
 0x241   :  { %v1304_v40 = vpop.f32.mrf.mxu0 }
 0x242   :  { %v1658_v30 = vadd.f32 %v1657_v33, %v1304_v40  ;;  %2109 = vst.msk [vmem:[#allocation2 + $0x1f0] sm:$0xff] %vm7107_vm2, %v5761_v12  ;;  %v7749_v33 = vadd.s32 120, %v7616_v39  ;;  %9199 = vst [vmem:[#allocation23_spill] sm:$0xff] %v7760_v13 }
 0x244   :  { %v5762_v55 = vpack.c.bf16 %v1658_v30, %v1656_v57  ;;  %9198 = vst [vmem:[#allocation24_spill] sm:$0xff] %v7749_v33  ;;  %v7771_v57 = vadd.s32 104, %v7616_v39 }
 0x245   :  { %5874 = vmatpush3.bf16.xpose.msra.mxu1 %v2975_v25 }
 0x246   :  { %6179 = vmatprep.subr.bf16.mxu1 %v6483_v52  ;;  %2110 = vst.msk [vmem:[#allocation2 + $0x1f8] sm:$0xff] %vm7107_vm2, %v5762_v55  ;;  %vm9060_vm2 = vcmp.le.s32.totalorder %v7618_v15, %v7749_v33  ;;  %9200 = vst [vmem:[#allocation22_spill] sm:$0xff] %v7771_v57 }
 0x24c   :  { %5876 = vmatmul.mubr.msk.bf16.vlgmr.msra.gmra.mxu1 %vm2216_vm3, %v9175_v44  ;;  %v6489_v44 = vld [vmem:[#allocation2 + $0x124] ss:$8 sps:$4 sm:$0xff]  }
 0x24d   :  { %5877 = vmatprep.mubr.msk.bf16.mxu1 %vm2216_vm3, %v9176_v10  ;;  %6180 = vmatpush3.bf16.msra.mxu1 %v6483_v52  ;;  %v6524_v48 = vld [vmem:[#allocation2 + $0x1f4] ss:$8 sps:$4 sm:$0xff]  }
 0x24e   :  { %6181 = vmatprep.subr.bf16.mxu1 %v6484_v35 }
 0x251   :  { %6182 = vmatpush3.bf16.msra.mxu1 %v6484_v35 }
 0x252   :  { %6183 = vmatprep.subr.bf16.mxu1 %v6486_v16 }
 0x254   :  { %5878 = vmatmul.mubr.msk.bf16.gmra.mxu1 %vm2216_vm3, %v9176_v10 }
 0x255   :  { %5879 = vmatprep.mubr.msk.bf16.mxu1 %vm2216_vm3, %v9177_v58  ;;  %6184 = vmatpush3.bf16.msra.mxu1 %v6486_v16 }
 0x256   :  { %6185 = vmatprep.subr.bf16.mxu1 %v6487_v2 }
 0x259   :  { %6186 = vmatpush3.bf16.msra.mxu1 %v6487_v2  ;;  %v6482_v2 = vld [vmem:[#allocation2 + $0x150] ss:$8 sps:$4 sm:$0xff]  }
 0x25a   :  { %6187 = vmatprep.subr.bf16.mxu1 %v6488_v22 }
 0x25c   :  { %5880 = vmatmul.mubr.msk.bf16.gmra.mxu1 %vm2216_vm3, %v9177_v58  ;;  %v6485_v58 = vld [vmem:[#allocation2 + $0x160] ss:$8 sps:$4 sm:$0xff]  }
 0x25d   :  { %5881 = vmatprep.mubr.msk.bf16.mxu1 %vm2216_vm3, %v9178_v24  ;;  %6188 = vmatpush3.bf16.msra.mxu1 %v6488_v22 }
 0x25e   :  { %6189 = vmatprep.subr.bf16.mxu1 %v6489_v44 }
 0x261   :  { %6190 = vmatpush3.bf16.msra.mxu1 %v6489_v44 }
 0x262   :  { %6191 = vmatprep.subr.bf16.mxu1 %v6490_v34 }
 0x264   :  { %5882 = vmatmul.mubr.msk.bf16.gmra.mxu1 %vm2216_vm3, %v9178_v24 }
 0x265   :  { %5883 = vmatprep.mubr.msk.bf16.mxu1 %vm2216_vm3, %v9179_v26  ;;  %6192 = vmatpush3.bf16.msra.mxu1 %v6490_v34 }
 0x266   :  { %6193 = vmatprep.subr.bf16.mxu1 %v6491_v45 }
 0x269   :  { %6194 = vmatpush3.bf16.msra.mxu1 %v6491_v45 }
 0x26a   :  { %6019 = vmatprep.subr.bf16.mxu1 %v6524_v48 }
 0x26c   :  { %5884 = vmatmul.mubr.msk.bf16.gmra.mxu1 %vm2216_vm3, %v9179_v26  ;;  %v7810_v26 = vadd.s32 128, %v7616_v39 }
 0x26d   :  { %5885 = vmatprep.mubr.msk.bf16.mxu1 %vm2216_vm3, %v9180_v60 }
 0x26e   :  { %9201 = vst [vmem:[#allocation21_spill] sm:$0xff] %v7810_v26 }
 0x274   :  { %5886 = vmatmul.mubr.msk.bf16.gmra.mxu1 %vm2216_vm3, %v9180_v60 }
 0x275   :  { %5887 = vmatprep.mubr.msk.bf16.mxu1 %vm2216_vm3, %v9181_v56 }
 0x27c   :  { %5888 = vmatmul.mubr.msk.bf16.gmra.mxu1 %vm2216_vm3, %v9181_v56  ;;  %v7817_v56 = vadd.s32 128, %v7632_v1 }
 0x27d   :  { %5889 = vmatprep.mubr.msk.bf16.mxu1 %vm2216_vm3, %v9182_v59 }
 0x27e   :  { %9202 = vst [vmem:[#allocation19_spill] sm:$0xff] %v7817_v56 }
 0x284   :  { %5890 = vmatmul.mubr.msk.bf16.gmra.mxu1 %vm2216_vm3, %v9182_v59 }
 0x2cc   :  { %v6101_v62 = vpop.f32.mrf.mxu1 }
 0x2cd   :  { %v7639_v49 = vsel %vm2366_vm5, %v6101_v62, -1e+30 }
 0x2ce   :  { %2400 = vmax.xlane.f32.xlu0 %v7639_v49  ;;  %v2299_v4 = vpop.f32.mrf.mxu1 }
 0x2cf   :  { %v7655_v23 = vsel %vm2364_vm6, %v2299_v4, -1e+30 }
 0x2d0   :  { %v6102_v7 = vpop.f32.mrf.mxu1 }
 0x2d1   :  { %v7677_v3 = vsel %vm2367_vm8, %v6102_v7, -1e+30  ;;  %v7832_v7 = vadd.s32 128, %v7672_v18  ;;  %v8005_v18 = vpop.permute.xlu1 %3815 }
 0x2d2   :  { %2396 = vmax.xlane.f32.xlu0 %v7655_v23  ;;  %v2302_v53 = vpop.f32.mrf.mxu1 }
 0x2d3   :  { %v7666_v6 = vsel %vm2365_vm7, %v2302_v53, -1e+30  ;;  %9204 = vst [vmem:[#allocation27_spill] sm:$0xff] %v7832_v7 }
 0x2d4   :  { %v6105_v9 = vpop.f32.mrf.mxu1  ;;  %2398 = vmax.xlane.f32.xlu1 %v7666_v6 }
 0x2d5   :  { %v7688_v38 = vsel %vm2370_vm9, %v6105_v9, -1e+30 }
 0x2d6   :  { %2402 = vmax.xlane.f32.xlu0 %v7677_v3  ;;  %v2315_v36 = vpop.f32.mrf.mxu1 }
 0x2d7   :  { %v7710_v46 = vsel %vm2368_vm11, %v2315_v36, -1e+30 }
 0x2d8   :  { %v6106_v41 = vpop.f32.mrf.mxu1  ;;  %2408 = vmax.xlane.f32.xlu1 %v7688_v38 }
 0x2d9   :  { %v7699_v5 = vsel %vm2371_vm10, %v6106_v41, -1e+30  ;;  %v7844_v41 = vadd.s32 128, %v7683_v31 }
 0x2da   :  { %2410 = vmax.xlane.f32.xlu0 %v7699_v5  ;;  %v2318_v54 = vpop.f32.mrf.mxu1 }
 0x2db   :  { %v7721_v61 = vsel %vm2369_vm12, %v2318_v54, -1e+30  ;;  %9205 = vst [vmem:[#allocation28_spill] sm:$0xff] %v7844_v41 }
 0x2dc   :  { %v6109_v63 = vpop.f32.mrf.mxu1  ;;  %2404 = vmax.xlane.f32.xlu1 %v7710_v46 }
 0x2dd   :  { %v7732_v28 = vsel %vm9059_vm13, %v6109_v63, -1e+30  ;;  %vm9062_vm13 = vcmp.le.s32.totalorder %v7618_v15, %v7771_v57 }
 0x2de   :  { %2406 = vmax.xlane.f32.xlu0 %v7721_v61  ;;  %v2331_v19 = vpop.f32.mrf.mxu1 }
 0x2df   :  { %v7754_v37 = vsel %vm2372_vm15, %v2331_v19, -1e+30 }
 0x2e0   :  { %v6110_v8 = vpop.f32.mrf.mxu1  ;;  %2416 = vmax.xlane.f32.xlu1 %v7732_v28 }
 0x2e1   :  { %v7743_v11 = vsel %vm9058_vm14, %v6110_v8, -1e+30  ;;  %vm2376_vm14 = vcmp.le.s32.totalorder %v7618_v15, %v7760_v13  ;;  %v7858_v8 = vadd.s32 128, %v7650_v21 }
 0x2e2   :  { %2418 = vmax.xlane.f32.xlu0 %v7743_v11  ;;  %v2334_v52 = vpop.f32.mrf.mxu1 }
 0x2e3   :  { %v7765_v29 = vsel %vm2373_vm0, %v2334_v52, -1e+30  ;;  %9206 = vst [vmem:[#allocation29_spill] sm:$0xff] %v7858_v8 }
 0x2e4   :  { %v6113_v25 = vpop.f32.mrf.mxu1  ;;  %2412 = vmax.xlane.f32.xlu1 %v7754_v37 }
 0x2e5   :  { %v7776_v30 = vsel %vm9061_vm1, %v6113_v25, -1e+30  ;;  %vm9064_vm1 = vcmp.le.s32.totalorder %v7624_v32, %v7817_v56 }
 0x2e6   :  { %2414 = vmax.xlane.f32.xlu0 %v7765_v29  ;;  %v2347_v40 = vpop.f32.mrf.mxu1 }
 0x2e7   :  { %v7792_v10 = vsel %vm2376_vm14, %v2347_v40, -1e+30 }
 0x2e8   :  { %v6114_v12 = vpop.f32.mrf.mxu1  ;;  %2424 = vmax.xlane.f32.xlu1 %v7776_v30 }
 0x2e9   :  { %v7784_v55 = vsel %vm9060_vm2, %v6114_v12, -1e+30  ;;  %vm3153_vm2 = vcmp.le.s32.totalorder %v7624_v32, %v7810_v26 }
 0x2ea   :  { %2426 = vmax.xlane.f32.xlu0 %v7784_v55  ;;  %v2350_v35 = vpop.f32.mrf.mxu1 }
 0x2eb   :  { %v7798_v16 = vsel %vm9062_vm13, %v2350_v35, -1e+30  ;;  %vm9065_vm13 = vcmp.le.s32.totalorder %v7624_v32, %v7820_v47 }
 0x2ec   :  { %2420 = vmax.xlane.f32.xlu1 %v7792_v10 }
 0x2ee   :  { %2422 = vmax.xlane.f32.xlu0 %v7798_v16 }
 0x2fd   :  { %3811 = vrot.lane.b32.xlu1 %v6482_v2, %s6896_s1  ;;  %v7877_v2 = vadd.s32 128, %v7661_v43  ;;  %v7982_v43 = vadd.s32 128, %v7749_v33 }
 0x2ff   :  { %9207 = vst [vmem:[#allocation30_spill] sm:$0xff] %v7877_v2  ;;  %9213 = vst [vmem:[#allocation36_spill] sm:$0xff] %v7982_v43 }
 0x304   :  { %3813 = vrot.lane.b32.xlu0 %v6485_v58, %s6896_s1 }
 0x30c   :  { %v7803_v22 = vpop.f32.mrf.mxu1 }
 0x30e   :  { %v3058_v44 = vpop.f32.mrf.mxu1 }
 0x30f   :  { %v7825_v62 = vsel %vm3153_vm2, %v3058_v44, -1e+30 }
 0x310   :  { %v7805_v24 = vpop.f32.mrf.mxu1  ;;  %v3216_v36 = vmax.f32 %v7803_v22, %v7825_v62 }
 0x312   :  { %v3062_v34 = vpop.f32.mrf.mxu1 }
 0x313   :  { %v7837_v53 = vsel %vm9063_vm4, %v3062_v34, -1e+30  ;;  %vm9066_vm4 = vcmp.le.s32.totalorder %v7624_v32, %v7832_v7 }
 0x314   :  { %v7807_v45 = vpop.f32.mrf.mxu1  ;;  %v3219_v19 = vmax.f32 %v7805_v24, %v7837_v53 }
 0x316   :  { %v3068_v48 = vpop.f32.mrf.mxu1 }
 0x317   :  { %v7849_v54 = vsel %vm9064_vm1, %v3068_v48, -1e+30  ;;  %vm3163_vm1 = vcmp.le.s32.totalorder %v7624_v32, %v7844_v41 }
 0x318   :  { %v7812_v60 = vpop.f32.mrf.mxu1  ;;  %v3222_v40 = vmax.f32 %v7807_v45, %v7849_v54 }
 0x31a   :  { %v3072_v59 = vpop.f32.mrf.mxu1 }
 0x31b   :  { %v7863_v52 = vsel %vm9065_vm13, %v3072_v59, -1e+30  ;;  %vm9072_vm13 = vcmp.le.s32.totalorder %v7624_v32, %v7858_v8 }
 0x31c   :  { %v7827_v4 = vpop.f32.mrf.mxu1  ;;  %v3225_v58 = vmax.f32 %v7812_v60, %v7863_v52 }
 0x31e   :  { %v3078_v9 = vpop.f32.mrf.mxu1 }
 0x31f   :  { %v7872_v12 = vsel %vm9066_vm4, %v3078_v9, -1e+30  ;;  %vm9069_vm4 = vcmp.le.s32.totalorder %v7624_v32, %v7877_v2 }
 0x320   :  { %v7851_v63 = vpop.f32.mrf.mxu1  ;;  %v3228_v48 = vmax.f32 %v7827_v4, %v7872_v12 }
 0x321   :  { %3217 = vmax.xlane.f32.xlu1 %v3216_v36 }
 0x322   :  { %v3082_v25 = vpop.f32.mrf.mxu1 }
 0x323   :  { %3220 = vmax.xlane.f32.xlu0 %v3219_v19  ;;  %v7886_v44 = vsel %vm3163_vm1, %v3082_v25, -1e+30 }
 0x324   :  { %v7874_v35 = vpop.f32.mrf.mxu1  ;;  %v3231_v36 = vmax.f32 %v7851_v63, %v7886_v44 }
 0x325   :  { %3223 = vmax.xlane.f32.xlu1 %v3222_v40 }
 0x326   :  { %v3088_v34 = vpop.f32.mrf.mxu1 }
 0x327   :  { %3226 = vmax.xlane.f32.xlu0 %v3225_v58  ;;  %v7893_v59 = vsel %vm9072_vm13, %v3088_v34, -1e+30 }
 0x328   :  { %v7895_v9 = vpop.f32.mrf.mxu1  ;;  %v3234_v40 = vmax.f32 %v7874_v35, %v7893_v59 }
 0x329   :  { %3229 = vmax.xlane.f32.xlu1 %v3228_v48  ;;  %v7913_v48 = vadd.s32 128, %v7727_v14 }
 0x32a   :  { %v3092_v19 = vpop.f32.mrf.mxu1 }
 0x32b   :  { %v7904_v25 = vsel %vm9069_vm4, %v3092_v19, -1e+30  ;;  %3232 = vmax.xlane.f32.xlu0 %v3231_v36  ;;  %9208 = vst [vmem:[#allocation31_spill] sm:$0xff] %v7913_v48  ;;  %vm9075_vm4 = vcmp.le.s32.totalorder %v7624_v32, %v7913_v48  ;;  %v7920_v36 = vadd.s32 128, %v7694_v42 }
 0x32c   :  { %v7908_v58 = vpop.f32.mrf.mxu1  ;;  %v3237_v34 = vmax.f32 %v7895_v9, %v7904_v25 }
 0x32d   :  { %3235 = vmax.xlane.f32.xlu1 %v3234_v40  ;;  %9209 = vst [vmem:[#allocation32_spill] sm:$0xff] %v7920_v36  ;;  %vm9086_vm13 = vcmp.le.s32.totalorder %v7624_v32, %v7920_v36  ;;  %v7956_v36 = vld [vmem:[#allocation2 + $0x140] ss:$8 sps:$4 sm:$0xff]  }
 0x32e   :  { %v3098_v8 = vpop.f32.mrf.mxu1 }
 0x32f   :  { %3238 = vmax.xlane.f32.xlu0 %v3237_v34  ;;  %v7934_v34 = vadd.s32 128, %v7705_v50  ;;  %v7959_v50 = vadd.s32 128, %v7771_v57 }
 0x330   :  { %v7915_v41 = vpop.f32.mrf.mxu1 }
 0x331   :  { %9210 = vst [vmem:[#allocation33_spill] sm:$0xff] %v7934_v34  ;;  %9211 = vst [vmem:[#allocation34_spill] sm:$0xff] %v7959_v50 }
 0x332   :  { %v3102_v19 = vpop.f32.mrf.mxu1 }
 0x333   :  { %v7925_v2 = vsel %vm9075_vm4, %v3102_v19, -1e+30  ;;  %vm9082_vm4 = vcmp.le.s32.totalorder %v7624_v32, %v7934_v34 }
 0x334   :  { %v7927_v7 = vpop.f32.mrf.mxu1  ;;  %v3243_v40 = vmax.f32 %v7915_v41, %v7925_v2 }
 0x336   :  { %v3108_v47 = vpop.f32.mrf.mxu1  ;;  %3244 = vmax.xlane.f32.xlu0 %v3243_v40 }
 0x337   :  { %v7939_v56 = vsel %vm9086_vm13, %v3108_v47, -1e+30 }
 0x338   :  { %v7941_v19 = vpop.f32.mrf.mxu1  ;;  %v3246_v48 = vmax.f32 %v7927_v7, %v7939_v56 }
 0x33a   :  { %v3112_v20 = vpop.f32.mrf.mxu1  ;;  %3247 = vmax.xlane.f32.xlu0 %v3246_v48 }
 0x33b   :  { %v7950_v26 = vsel %vm9082_vm4, %v3112_v20, -1e+30  ;;  %vm9090_vm4 = vcmp.le.s32.totalorder %v7624_v32, %v7959_v50  ;;  %v7968_v20 = vadd.s32 128, %v7738_v0 }
 0x33c   :  { %v7952_v40 = vpop.f32.mrf.mxu1  ;;  %v3249_v47 = vmax.f32 %v7941_v19, %v7950_v26 }
 0x33d   :  { %9212 = vst [vmem:[#allocation35_spill] sm:$0xff] %v7968_v20  ;;  %vm9096_vm13 = vcmp.le.s32.totalorder %v7624_v32, %v7968_v20 }
 0x33e   :  { %v3118_v42 = vpop.f32.mrf.mxu1  ;;  %3250 = vmax.xlane.f32.xlu0 %v3249_v47  ;;  %3809 = vrot.lane.b32.xlu1 %v7956_v36, %s6896_s1 }
 0x340   :  { %v7963_v48 = vpop.f32.mrf.mxu1 }
 0x342   :  { %v3122_v34 = vpop.f32.mrf.mxu1 }
 0x343   :  { %v7973_v14 = vsel %vm9090_vm4, %v3122_v34, -1e+30  ;;  %vm9100_vm4 = vcmp.le.s32.totalorder %v7624_v32, %v7982_v43 }
 0x344   :  { %v7975_v57 = vpop.f32.mrf.mxu1  ;;  %v3255_v47 = vmax.f32 %v7963_v48, %v7973_v14 }
 0x346   :  { %v3128_v21 = vpop.f32.mrf.mxu1  ;;  %3256 = vmax.xlane.f32.xlu0 %v3255_v47 }
 0x347   :  { %v7987_v0 = vsel %vm9096_vm13, %v3128_v21, -1e+30  ;;  %v8003_v21 = vadd.s32 128, %v7716_v27 }
 0x348   :  { %v7989_v34 = vpop.f32.mrf.mxu1  ;;  %v3258_v50 = vmax.f32 %v7975_v57, %v7987_v0 }
 0x349   :  { %vm3169_vm13 = vcmp.le.s32.totalorder %v7624_v32, %v8003_v21 }
 0x34a   :  { %v3132_v31 = vpop.f32.mrf.mxu1  ;;  %3259 = vmax.xlane.f32.xlu0 %v3258_v50  ;;  %v8010_v50 = vadd.s32 128, %v7760_v13 }
 0x34b   :  { %v7998_v33 = vsel %vm9100_vm4, %v3132_v31, -1e+30 }
 0x34c   :  { %v3261_v47 = vmax.f32 %v7989_v34, %v7998_v33  ;;  %9214 = vst [vmem:[#allocation37_spill] sm:$0xff] %v8010_v50  ;;  %vm3177_vm4 = vcmp.le.s32.totalorder %v7624_v32, %v8010_v50 }
 0x34e   :  { %3262 = vmax.xlane.f32.xlu0 %v3261_v47  ;;  %v8017_v47 = vsel %vm3169_vm13, %v3098_v8, -1e+30  ;;  %v8028_v8 = vsel %vm3177_vm4, %v3118_v42, -1e+30 }
 0x357   :  { %v2401_v20 = vpop.xlane.xlu0 %2400 }
 0x358   :  { %v2430_v43 = vsub.f32 %v7639_v49, %v2401_v20 }
 0x35a   :  { %v2448_v39 = vmul.f32 1.442695, %v2430_v43 }
 0x35b   :  { %v2397_v31 = vpop.xlane.xlu0 %2396 }
 0x35c   :  { %v2428_v51 = vsub.f32 %v7655_v23, %v2397_v31  ;;  %v3240_v23 = vmax.f32 %v7908_v58, %v8017_v47 }
 0x35d   :  { %v2399_v27 = vpop.xlane.xlu1 %2398 }
 0x35e   :  { %v2444_v17 = vmul.f32 1.442695, %v2428_v51  ;;  %v2429_v1 = vsub.f32 %v7666_v6, %v2399_v27  ;;  %v8030_v51 = vld [vmem:[#allocation2 + $0x130] ss:$8 sps:$4 sm:$0xff]   ;;  %v3252_v6 = vmax.f32 %v7952_v40, %v8028_v8  ;;  %v6494_v27 = vld [vmem:[#allocation2 + $0x160] ss:$8 sps:$4 sm:$0xff]  }
 0x35f   :  { %v2403_v13 = vpop.xlane.xlu0 %2402 }
 0x360   :  { %v2446_v15 = vmul.f32 1.442695, %v2429_v1  ;;  %v2431_v49 = vsub.f32 %v7677_v3, %v2403_v13  ;;  %6544 = vpow2.f32 %v2444_v17 }
 0x361   :  { %v2409_v20 = vpop.xlane.xlu1 %2408 }
 0x362   :  { %6546 = vpow2.f32 %v2446_v15  ;;  %v2450_v31 = vmul.f32 1.442695, %v2431_v49  ;;  %3241 = vmax.xlane.f32.xlu1 %v3240_v23  ;;  %v2434_v17 = vsub.f32 %v7688_v38, %v2409_v20 }
 0x363   :  { %6548 = vpow2.f32 %v2448_v39  ;;  %v2411_v43 = vpop.xlane.xlu0 %2410 }
 0x364   :  { %6550 = vpow2.f32 %v2450_v31  ;;  %v2435_v1 = vsub.f32 %v7699_v5, %v2411_v43  ;;  %3807 = vrot.lane.b32.xlu0 %v8030_v51, %s6896_s1  ;;  %v2456_v23 = vmul.f32 1.442695, %v2434_v17  ;;  %v6495_v43 = vld [vmem:[#allocation2 + $0x150] ss:$8 sps:$4 sm:$0xff]  }
 0x365   :  { %v2405_v3 = vpop.xlane.xlu1 %2404 }
 0x366   :  { %v2458_v42 = vmul.f32 1.442695, %v2435_v1  ;;  %v2432_v15 = vsub.f32 %v7710_v46, %v2405_v3  ;;  %3253 = vmax.xlane.f32.xlu1 %v3252_v6  ;;  %v6496_v3 = vld [vmem:[#allocation2 + $0x140] ss:$8 sps:$4 sm:$0xff]  }
 0x367   :  { %v2407_v13 = vpop.xlane.xlu0 %2406 }
 0x368   :  { %v2452_v39 = vmul.f32 1.442695, %v2432_v15  ;;  %v2433_v49 = vsub.f32 %v7721_v61, %v2407_v13  ;;  %4512 = vrot.lane.b32.xlu0 %v6494_v27, %s6896_s1  ;;  %6552 = vpow2.f32 %v2458_v42 }
 0x369   :  { %v2417_v5 = vpop.xlane.xlu1 %2416 }
 0x36a   :  { %v2454_v31 = vmul.f32 1.442695, %v2433_v49  ;;  %6554 = vpow2.f32 %v2452_v39  ;;  %v2438_v61 = vsub.f32 %v7732_v28, %v2417_v5  ;;  %v6497_v5 = vld [vmem:[#allocation2 + $0x130] ss:$8 sps:$4 sm:$0xff]  }
 0x36b   :  { %v2419_v50 = vpop.xlane.xlu0 %2418 }
 0x36c   :  { %6556 = vpow2.f32 %v2454_v31  ;;  %v2439_v38 = vsub.f32 %v7743_v11, %v2419_v50  ;;  %4510 = vrot.lane.b32.xlu0 %v6495_v43, %s6896_s1  ;;  %v2464_v39 = vmul.f32 1.442695, %v2438_v61  ;;  %v6498_v31 = vld [vmem:[#allocation2 + $0x74] ss:$8 sps:$4 sm:$0xff]   ;;  %v6499_v43 = vld [vmem:[#allocation2 + $0xe4] ss:$8 sps:$4 sm:$0xff]  }
 0x36d   :  { %v2413_v46 = vpop.xlane.xlu1 %2412  ;;  %v8043_v20 = vpop.eup %6544  ;;  %6558 = vpow2.f32 %v2456_v23 }
 0x36e   :  { %9215 = vst [vmem:[#allocation38_spill] sm:$0xff] %v8043_v20  ;;  %v2466_v1 = vmul.f32 1.442695, %v2439_v38  ;;  %v2436_v6 = vsub.f32 %v7754_v37, %v2413_v46  ;;  %v8061_v46 = vld [vmem:[#allocation2 + $0x120] ss:$8 sps:$4 sm:$0xff]  }
 0x36f   :  { %v8047_v17 = vpop.eup %6546  ;;  %v2415_v42 = vpop.xlane.xlu0 %2414 }
 0x370   :  { %9216 = vst [vmem:[#allocation39_spill] sm:$0xff] %v8047_v17  ;;  %v8049_v15 = vpop.eup %6548  ;;  %v2460_v27 = vmul.f32 1.442695, %v2436_v6  ;;  %v2437_v11 = vsub.f32 %v7765_v29, %v2415_v42  ;;  %4508 = vrot.lane.b32.xlu0 %v6496_v3, %s6896_s1  ;;  %v2508_v50 = vpack.c.bf16 %v8047_v17, %v8043_v20  ;;  %6560 = vpow2.f32 %v2466_v1  ;;  %v6501_v3 = vld [vmem:[#allocation2 + $0x120] ss:$8 sps:$4 sm:$0xff]  }
 0x371   :  { %9217 = vst [vmem:[#allocation40_spill] sm:$0xff] %v8049_v15  ;;  %v8055_v13 = vpop.eup %6550  ;;  %v2425_v28 = vpop.xlane.xlu1 %2424 }
 0x372   :  { %9218 = vst [vmem:[#allocation41_spill] sm:$0xff] %v8055_v13  ;;  %v2509_v37 = vpack.c.bf16 %v8055_v13, %v8049_v15  ;;  %v2462_v49 = vmul.f32 1.442695, %v2437_v11  ;;  %6131 = vmatprep.mubr.bf16.mxu0 %v2508_v50  ;;  %6562 = vpow2.f32 %v2460_v27  ;;  %v2442_v61 = vsub.f32 %v7776_v30, %v2425_v28  ;;  %v6503_v30 = vld [vmem:[#allocation2 + $0xd4] ss:$8 sps:$4 sm:$0xff]  }
 0x373   :  { %v2427_v23 = vpop.xlane.xlu0 %2426 }
 0x374   :  { %6564 = vpow2.f32 %v2462_v49  ;;  %v2443_v29 = vsub.f32 %v7784_v55, %v2427_v23  ;;  %4506 = vrot.lane.b32.xlu0 %v6497_v5, %s6896_s1  ;;  %6132 = vmatmul.mubr.bf16.vlgmr.msra.gmra.mxu0 %v2509_v37  ;;  %v6502_v55 = vld [vmem:[#allocation2 + $0x64] ss:$8 sps:$4 sm:$0xff]   ;;  %v6505_v5 = vld [vmem:[#allocation2 + $0x110] ss:$8 sps:$4 sm:$0xff]  }
 0x375   :  { %5892 = vmatpush3.bf16.msra.mxu0 %v6498_v31  ;;  %v2421_v38 = vpop.xlane.xlu1 %2420  ;;  %6566 = vpow2.f32 %v2464_v39  ;;  %v8065_v42 = vpop.eup %6552  ;;  %v2472_v39 = vmul.f32 1.442695, %v2442_v61  ;;  %v6509_v61 = vld [vmem:[#allocation2 + $0x100] ss:$8 sps:$4 sm:$0xff]  }
 0x376   :  { %v2474_v1 = vmul.f32 1.442695, %v2443_v29  ;;  %5893 = vmatprep.subr.bf16.mxu0 %v6499_v43  ;;  %v2440_v6 = vsub.f32 %v7792_v10, %v2421_v38  ;;  %9219 = vst [vmem:[#allocation42_spill] sm:$0xff] %v8065_v42  ;;  %v8075_v10 = vld [vmem:[#allocation2 + $0x110] ss:$8 sps:$4 sm:$0xff]  }
 0x377   :  { %v2423_v27 = vpop.xlane.xlu0 %2422  ;;  %3805 = vrot.lane.b32.xlu1 %v8061_v46, %s6896_s1  ;;  %v8069_v11 = vpop.eup %6554  ;;  %v6507_v43 = vld [vmem:[#allocation2 + $0xc4] ss:$8 sps:$4 sm:$0xff]   ;;  %v8086_v38 = vld [vmem:[#allocation2 + $0x100] ss:$8 sps:$4 sm:$0xff]  }
 0x378   :  { %9220 = vst [vmem:[#allocation43_spill] sm:$0xff] %v8069_v11  ;;  %v2468_v50 = vmul.f32 1.442695, %v2440_v6  ;;  %v2441_v37 = vsub.f32 %v7798_v16, %v2423_v27  ;;  %4504 = vrot.lane.b32.xlu0 %v6501_v3, %s6896_s1  ;;  %6568 = vpow2.f32 %v2474_v1  ;;  %v6506_v16 = vld [vmem:[#allocation2 + $0x54] ss:$8 sps:$4 sm:$0xff]  }
 0x379   :  { %v8073_v28 = vpop.eup %6556  ;;  %5894 = vmatpush3.bf16.msra.mxu0 %v6502_v55  ;;  %v6510_v6 = vld [vmem:[#allocation2 + $0x44] ss:$8 sps:$4 sm:$0xff]   ;;  %v6511_v27 = vld [vmem:[#allocation2 + $0xb4] ss:$8 sps:$4 sm:$0xff]  }
 0x37a   :  { %9221 = vst [vmem:[#allocation44_spill] sm:$0xff] %v8073_v28  ;;  %v2470_v49 = vmul.f32 1.442695, %v2441_v37  ;;  %5895 = vmatprep.subr.bf16.mxu0 %v6503_v30  ;;  %v2510_v23 = vpack.c.bf16 %v8073_v28, %v8069_v11  ;;  %v8079_v31 = vpop.eup %6558  ;;  %6570 = vpow2.f32 %v2468_v50  ;;  %v6512_v50 = vld [vmem:[#allocation2 + $0x170] ss:$8 sps:$4 sm:$0xff]  }
 0x37b   :  { %9222 = vst [vmem:[#allocation45_spill] sm:$0xff] %v8079_v31  ;;  %3803 = vrot.lane.b32.xlu1 %v8075_v10, %s6896_s1  ;;  %v2511_v29 = vpack.c.bf16 %v8065_v42, %v8079_v31 }
 0x37c   :  { %6572 = vpow2.f32 %v2470_v49  ;;  %4502 = vrot.lane.b32.xlu0 %v6505_v5, %s6896_s1  ;;  %6135 = vmatprep.mubr.bf16.mxu0 %v2510_v23  ;;  %v6514_v5 = vld [vmem:[#allocation2 + $0xa4] ss:$8 sps:$4 sm:$0xff]   ;;  %v8104_v23 = vld [vmem:[#allocation2 + $0x1f0] ss:$8 sps:$4 sm:$0xff]  }
 0x37d   :  { %5896 = vmatpush3.bf16.msra.mxu0 %v6506_v16  ;;  %6574 = vpow2.f32 %v2472_v39  ;;  %v8088_v1 = vpop.eup %6560  ;;  %v6513_v39 = vld [vmem:[#allocation2 + $0x34] ss:$8 sps:$4 sm:$0xff]  }
 0x37e   :  { %6136 = vmatmul.mubr.bf16.gmra.mxu0 %v2511_v29  ;;  %5897 = vmatprep.subr.bf16.mxu0 %v6507_v43  ;;  %9223 = vst [vmem:[#allocation46_spill] sm:$0xff] %v8088_v1  ;;  %v6516_v29 = vld [vmem:[#allocation2 + $0x24] ss:$8 sps:$4 sm:$0xff]  }
 0x37f   :  { %3801 = vrot.lane.b32.xlu1 %v8086_v38, %s6896_s1  ;;  %v8092_v3 = vpop.eup %6562 }
 0x380   :  { %9224 = vst [vmem:[#allocation47_spill] sm:$0xff] %v8092_v3  ;;  %4500 = vrot.lane.b32.xlu0 %v6509_v61, %s6896_s1  ;;  %v6517_v61 = vld [vmem:[#allocation2 + $0x94] ss:$8 sps:$4 sm:$0xff]  }
 0x381   :  { %v8095_v55 = vpop.eup %6564  ;;  %5898 = vmatpush3.bf16.msra.mxu0 %v6510_v6 }
 0x382   :  { %9225 = vst [vmem:[#allocation48_spill] sm:$0xff] %v8095_v55  ;;  %5899 = vmatprep.subr.bf16.mxu0 %v6511_v27  ;;  %v2512_v37 = vpack.c.bf16 %v8095_v55, %v8092_v3  ;;  %v8099_v30 = vpop.eup %6566  ;;  %v8114_v27 = vld [vmem:[#allocation2 + $0x1e0] ss:$8 sps:$4 sm:$0xff]  }
 0x383   :  { %9226 = vst [vmem:[#allocation49_spill] sm:$0xff] %v8099_v30  ;;  %4514 = vrot.lane.b32.xlu1 %v6512_v50, %s6896_s1  ;;  %v2513_v49 = vpack.c.bf16 %v8088_v1, %v8099_v30  ;;  %v8124_v1 = vld [vmem:[#allocation2 + $0x1d0] ss:$8 sps:$4 sm:$0xff]  }
 0x384   :  { %6139 = vmatprep.mubr.bf16.mxu0 %v2512_v37 }
 0x385   :  { %5900 = vmatpush3.bf16.msra.mxu0 %v6513_v39  ;;  %v8106_v16 = vpop.eup %6568  ;;  %v6519_v39 = vld [vmem:[#allocation2 + $0x14] ss:$8 sps:$4 sm:$0xff]  }
 0x386   :  { %6140 = vmatmul.mubr.bf16.gmra.mxu0 %v2513_v49  ;;  %5901 = vmatprep.subr.bf16.mxu0 %v6514_v5  ;;  %9227 = vst [vmem:[#allocation50_spill] sm:$0xff] %v8106_v16  ;;  %v6520_v5 = vld [vmem:[#allocation2 + $0x84] ss:$8 sps:$4 sm:$0xff]  }
 0x387   :  { %4530 = vrot.lane.b32.xlu1 %v8104_v23, %s6896_s1  ;;  %v8110_v43 = vpop.eup %6570 }
 0x388   :  { %9228 = vst [vmem:[#allocation51_spill] sm:$0xff] %v8110_v43 }
 0x389   :  { %v8112_v6 = vpop.eup %6572  ;;  %5902 = vmatpush3.bf16.msra.mxu0 %v6516_v29  ;;  %v6522_v29 = vld [vmem:[#allocation2 + $0x4] ss:$8 sps:$4 sm:$0xff]  }
 0x38a   :  { %9229 = vst [vmem:[#allocation52_spill] sm:$0xff] %v8112_v6  ;;  %5903 = vmatprep.subr.bf16.mxu0 %v6517_v61  ;;  %v2514_v50 = vpack.c.bf16 %v8112_v6, %v8110_v43  ;;  %v8118_v37 = vpop.eup %6574  ;;  %v8128_v61 = vld [vmem:[#allocation2 + $0x1c0] ss:$8 sps:$4 sm:$0xff]  }
 0x38b   :  { %9230 = vst [vmem:[#allocation53_spill] sm:$0xff] %v8118_v37  ;;  %4528 = vrot.lane.b32.xlu1 %v8114_v27, %s6896_s1  ;;  %v2515_v49 = vpack.c.bf16 %v8106_v16, %v8118_v37  ;;  %v8152_v16 = vpop.permute.xlu0 %3813 }
 0x38c   :  { %6143 = vmatprep.mubr.bf16.mxu0 %v2514_v50  ;;  %v8134_v50 = vld [vmem:[#allocation2 + $0x1b0] ss:$8 sps:$4 sm:$0xff]  }
 0x38d   :  { %5904 = vmatpush3.bf16.msra.mxu0 %v6519_v39  ;;  %v8138_v39 = vld [vmem:[#allocation2 + $0x1a0] ss:$8 sps:$4 sm:$0xff]  }
 0x38e   :  { %6144 = vmatmul.mubr.bf16.gmra.mxu0 %v2515_v49  ;;  %5905 = vmatprep.subr.bf16.mxu0 %v6520_v5  ;;  %v8142_v49 = vld [vmem:[#allocation2 + $0x190] ss:$8 sps:$4 sm:$0xff]   ;;  %v8146_v5 = vld [vmem:[#allocation2 + $0x180] ss:$8 sps:$4 sm:$0xff]  }
 0x38f   :  { %4526 = vrot.lane.b32.xlu1 %v8124_v1, %s6896_s1 }
 0x391   :  { %5906 = vmatpush3.bf16.msra.mxu0 %v6522_v29  ;;  %v8150_v29 = vpop.permute.xlu1 %3811 }
 0x392   :  { %6227 = vmatprep.subr.msk.bf16.mxu0 %vm2216_vm3, %v8005_v18 }
 0x393   :  { %4524 = vrot.lane.b32.xlu1 %v8128_v61, %s6896_s1 }
 0x397   :  { %4522 = vrot.lane.b32.xlu1 %v8134_v50, %s6896_s1 }
 0x39b   :  { %4520 = vrot.lane.b32.xlu1 %v8138_v39, %s6896_s1 }
 0x39f   :  { %4518 = vrot.lane.b32.xlu1 %v8142_v49, %s6896_s1 }
 0x3a3   :  { %4516 = vrot.lane.b32.xlu1 %v8146_v5, %s6896_s1 }
 0x3aa   :  { %v3218_v6 = vpop.xlane.xlu1 %3217 }
 0x3ab   :  { %v3264_v37 = vsub.f32 %v7803_v22, %v3218_v6  ;;  %v3265_v43 = vsub.f32 %v7825_v62, %v3218_v6 }
 0x3ac   :  { %v3221_v55 = vpop.xlane.xlu0 %3220 }
 0x3ad   :  { %v3296_v30 = vmul.f32 1.442695, %v3264_v37  ;;  %v3298_v42 = vmul.f32 1.442695, %v3265_v43  ;;  %v3266_v3 = vsub.f32 %v7805_v24, %v3221_v55  ;;  %v3267_v28 = vsub.f32 %v7837_v53, %v3221_v55 }
 0x3ae   :  { %v3224_v31 = vpop.xlane.xlu1 %3223 }
 0x3af   :  { %6576 = vpow2.f32 %v3296_v30  ;;  %v3300_v13 = vmul.f32 1.442695, %v3266_v3  ;;  %v3302_v11 = vmul.f32 1.442695, %v3267_v28  ;;  %v3268_v17 = vsub.f32 %v7807_v45, %v3224_v31 }
 0x3b0   :  { %6578 = vpow2.f32 %v3298_v42  ;;  %v3269_v15 = vsub.f32 %v7849_v54, %v3224_v31  ;;  %v3227_v20 = vpop.xlane.xlu0 %3226 }
 0x3b1   :  { %6580 = vpow2.f32 %v3300_v13  ;;  %v3304_v22 = vmul.f32 1.442695, %v3268_v17  ;;  %v3270_v62 = vsub.f32 %v7812_v60, %v3227_v20  ;;  %v3271_v43 = vsub.f32 %v7863_v52, %v3227_v20 }
 0x3b2   :  { %6582 = vpow2.f32 %v3302_v11  ;;  %v3306_v24 = vmul.f32 1.442695, %v3269_v15  ;;  %v3230_v6 = vpop.xlane.xlu1 %3229 }
 0x3b3   :  { %6584 = vpow2.f32 %v3304_v22  ;;  %v3308_v53 = vmul.f32 1.442695, %v3270_v62  ;;  %v3310_v55 = vmul.f32 1.442695, %v3271_v43  ;;  %v3272_v28 = vsub.f32 %v7827_v4, %v3230_v6 }
 0x3b4   :  { %6586 = vpow2.f32 %v3306_v24  ;;  %v3273_v45 = vsub.f32 %v7872_v12, %v3230_v6  ;;  %v3233_v42 = vpop.xlane.xlu0 %3232 }
 0x3b5   :  { %6588 = vpow2.f32 %v3308_v53  ;;  %v3312_v54 = vmul.f32 1.442695, %v3272_v28  ;;  %v3274_v17 = vsub.f32 %v7851_v63, %v3233_v42  ;;  %v3275_v60 = vsub.f32 %v7886_v44, %v3233_v42 }
 0x3b6   :  { %6590 = vpow2.f32 %v3310_v55  ;;  %v3314_v52 = vmul.f32 1.442695, %v3273_v45  ;;  %v3236_v20 = vpop.xlane.xlu1 %3235 }
 0x3b7   :  { %6592 = vpow2.f32 %v3312_v54  ;;  %v3316_v15 = vmul.f32 1.442695, %v3274_v17  ;;  %v3318_v13 = vmul.f32 1.442695, %v3275_v60  ;;  %v3276_v11 = vsub.f32 %v7874_v35, %v3236_v20 }
 0x3b8   :  { %6594 = vpow2.f32 %v3314_v52  ;;  %v3277_v4 = vsub.f32 %v7893_v59, %v3236_v20  ;;  %v3239_v31 = vpop.xlane.xlu0 %3238  ;;  %v3863_v20 = vsel %vm2216_vm3, %v8005_v18, 0 }
 0x3b9   :  { %6596 = vpow2.f32 %v3316_v15  ;;  %v3320_v12 = vmul.f32 1.442695, %v3276_v11  ;;  %v3278_v3 = vsub.f32 %v7895_v9, %v3239_v31  ;;  %v3279_v63 = vsub.f32 %v7904_v25, %v3239_v31 }
 0x3ba   :  { %6598 = vpow2.f32 %v3318_v13  ;;  %v3322_v44 = vmul.f32 1.442695, %v3277_v4 }
 0x3bb   :  { %6600 = vpow2.f32 %v3320_v12  ;;  %v3324_v30 = vmul.f32 1.442695, %v3278_v3  ;;  %v3326_v37 = vmul.f32 1.442695, %v3279_v63 }
 0x3bc   :  { %v6577_v22 = vpop.eup %6576  ;;  %6602 = vpow2.f32 %v3322_v44 }
 0x3bd   :  { %v6579_v62 = vpop.eup %6578  ;;  %6604 = vpow2.f32 %v3324_v30 }
 0x3be   :  { %v6581_v35 = vpop.eup %6580  ;;  %6606 = vpow2.f32 %v3326_v37  ;;  %v8170_v43 = vadd.f32 %v6579_v62, %v6577_v22 }
 0x3bf   :  { %v6583_v59 = vpop.eup %6582  ;;  %v3245_v24 = vpop.xlane.xlu0 %3244  ;;  %v3408_v6 = vpack.c.bf16 %v6581_v35, %v6577_v22 }
 0x3c0   :  { %v6585_v53 = vpop.eup %6584  ;;  %v3282_v9 = vsub.f32 %v7915_v41, %v3245_v24  ;;  %v3283_v25 = vsub.f32 %v7925_v2, %v3245_v24  ;;  %v3409_v55 = vpack.c.bf16 %v6583_v59, %v6579_v62  ;;  %v8174_v28 = vadd.f32 %v6583_v59, %v6581_v35 }
 0x3c1   :  { %v6587_v45 = vpop.eup %6586 }
 0x3c2   :  { %v6589_v42 = vpop.eup %6588  ;;  %v3332_v54 = vmul.f32 1.442695, %v3282_v9  ;;  %v3334_v17 = vmul.f32 1.442695, %v3283_v25  ;;  %3552 = vmatprep.mubr.bf16.mxu0 %v3409_v55  ;;  %v8176_v60 = vadd.f32 %v6587_v45, %v6585_v53 }
 0x3c3   :  { %v6591_v52 = vpop.eup %6590  ;;  %3553 = vmatmul.mubr.bf16.vlgmr.msra.gmra.mxu0 %v3408_v6  ;;  %v3248_v15 = vpop.xlane.xlu0 %3247  ;;  %v3410_v62 = vpack.c.bf16 %v6589_v42, %v6585_v53 }
 0x3c4   :  { %v6593_v13 = vpop.eup %6592  ;;  %6608 = vpow2.f32 %v3332_v54  ;;  %6148 = vmatpush3.bf16.xpose.msra.mxu0 %v3863_v20  ;;  %v3284_v41 = vsub.f32 %v7927_v7, %v3248_v15  ;;  %v3285_v2 = vsub.f32 %v7939_v56, %v3248_v15  ;;  %v3411_v11 = vpack.c.bf16 %v6591_v52, %v6587_v45 }
 0x3c5   :  { %v6595_v4 = vpop.eup %6594  ;;  %6610 = vpow2.f32 %v3334_v17  ;;  %6228 = vmatprep.subr.msk.bf16.mxu0 %vm2216_vm3, %v8152_v16  ;;  %v8184_v31 = vadd.f32 %v6591_v52, %v6589_v42  ;;  %v3860_v45 = vsel %vm2216_vm3, %v8152_v16, 0 }
 0x3c6   :  { %v6597_v12 = vpop.eup %6596  ;;  %v3336_v3 = vmul.f32 1.442695, %v3284_v41  ;;  %v3338_v63 = vmul.f32 1.442695, %v3285_v2  ;;  %3560 = vmatprep.mubr.bf16.mxu0 %v3411_v11  ;;  %v8186_v18 = vadd.f32 %v6595_v4, %v6593_v13  ;;  %v3857_v41 = vsel %vm2216_vm3, %v8150_v29, 0 }
 0x3c7   :  { %v6599_v44 = vpop.eup %6598  ;;  %v3251_v30 = vpop.xlane.xlu0 %3250  ;;  %v3412_v17 = vpack.c.bf16 %v6597_v12, %v6593_v13 }
 0x3c8   :  { %v6601_v37 = vpop.eup %6600  ;;  %6612 = vpow2.f32 %v3336_v3  ;;  %v3286_v56 = vsub.f32 %v7941_v19, %v3251_v30  ;;  %v3287_v7 = vsub.f32 %v7950_v26, %v3251_v30  ;;  %v8190_v35 = vadd.f32 %v6599_v44, %v6597_v12 }
 0x3c9   :  { %v6603_v22 = vpop.eup %6602  ;;  %6614 = vpow2.f32 %v3338_v63  ;;  %v3413_v9 = vpack.c.bf16 %v6599_v44, %v6595_v4 }
 0x3ca   :  { %v6605_v59 = vpop.eup %6604  ;;  %v3340_v24 = vmul.f32 1.442695, %v3286_v56  ;;  %v3342_v6 = vmul.f32 1.442695, %v3287_v7  ;;  %v8192_v25 = vadd.f32 %v6603_v22, %v6601_v37 }
 0x3cb   :  { %v6607_v55 = vpop.eup %6606  ;;  %3561 = vmatmul.mubr.bf16.gmra.mxu0 %v3410_v62  ;;  %v3414_v56 = vpack.c.bf16 %v6605_v59, %v6601_v37 }
 0x3cc   :  { %6616 = vpow2.f32 %v3340_v24  ;;  %6150 = vmatpush3.bf16.xpose.msra.mxu0 %v3860_v45  ;;  %3568 = vmatprep.mubr.bf16.mxu0 %v3413_v9  ;;  %v8196_v26 = vadd.f32 %v6607_v55, %v6605_v59  ;;  %v3415_v15 = vpack.c.bf16 %v6607_v55, %v6603_v22 }
 0x3cd   :  { %6618 = vpow2.f32 %v3342_v6  ;;  %6229 = vmatprep.subr.msk.bf16.mxu0 %vm2216_vm3, %v8150_v29 }
 0x3cf   :  { %v3257_v19 = vpop.xlane.xlu0 %3256 }
 0x3d0   :  { %v3290_v53 = vsub.f32 %v7963_v48, %v3257_v19  ;;  %v3291_v42 = vsub.f32 %v7973_v14, %v3257_v19  ;;  %v3810_v48 = vpop.permute.xlu1 %3809 }
 0x3d1   :  { %v8202_v54 = vpop.eup %6608  ;;  %v3854_v24 = vsel %vm2216_vm3, %v3810_v48, 0 }
 0x3d2   :  { %v8204_v52 = vpop.eup %6610  ;;  %v3348_v16 = vmul.f32 1.442695, %v3290_v53  ;;  %v3350_v20 = vmul.f32 1.442695, %v3291_v42 }
 0x3d3   :  { %3569 = vmatmul.mubr.bf16.gmra.mxu0 %v3412_v17  ;;  %v3260_v2 = vpop.xlane.xlu0 %3259  ;;  %v8210_v11 = vadd.f32 %v8204_v52, %v8202_v54 }
 0x3d4   :  { %6620 = vpow2.f32 %v3348_v16  ;;  %6152 = vmatpush3.bf16.xpose.msra.mxu0 %v3857_v41  ;;  %v3292_v14 = vsub.f32 %v7975_v57, %v3260_v2  ;;  %v3293_v13 = vsub.f32 %v7987_v0, %v3260_v2  ;;  %3576 = vmatprep.mubr.bf16.mxu0 %v3415_v15 }
 0x3d5   :  { %v8214_v4 = vpop.eup %6612  ;;  %6622 = vpow2.f32 %v3350_v20  ;;  %6230 = vmatprep.subr.msk.bf16.mxu0 %vm2216_vm3, %v3810_v48 }
 0x3d6   :  { %v8217_v12 = vpop.eup %6614  ;;  %v3352_v29 = vmul.f32 1.442695, %v3292_v14  ;;  %v3354_v3 = vmul.f32 1.442695, %v3293_v13 }
 0x3d7   :  { %v3263_v63 = vpop.xlane.xlu0 %3262  ;;  %v8221_v44 = vadd.f32 %v8217_v12, %v8214_v4 }
 0x3d8   :  { %6624 = vpow2.f32 %v3352_v29  ;;  %v3294_v57 = vsub.f32 %v7989_v34, %v3263_v63  ;;  %v3295_v0 = vsub.f32 %v7998_v33, %v3263_v63 }
 0x3d9   :  { %v8225_v30 = vpop.eup %6616  ;;  %6626 = vpow2.f32 %v3354_v3 }
 0x3da   :  { %v6619_v7 = vpop.eup %6618  ;;  %v3356_v22 = vmul.f32 1.442695, %v3294_v57  ;;  %v3358_v62 = vmul.f32 1.442695, %v3295_v0 }
 0x3db   :  { %3577 = vmatmul.mubr.bf16.gmra.mxu0 %v3414_v56  ;;  %v3808_v6 = vpop.permute.xlu0 %3807  ;;  %v8229_v9 = vadd.f32 %v6619_v7, %v8225_v30 }
 0x3dc   :  { %6628 = vpow2.f32 %v3356_v22  ;;  %6154 = vmatpush3.bf16.xpose.msra.mxu0 %v3854_v24  ;;  %v3851_v55 = vsel %vm2216_vm3, %v3808_v6, 0 }
 0x3dd   :  { %6630 = vpow2.f32 %v3358_v62  ;;  %6231 = vmatprep.subr.msk.bf16.mxu0 %vm2216_vm3, %v3808_v6 }
 0x3e1   :  { %v6621_v33 = vpop.eup %6620 }
 0x3e2   :  { %v6623_v34 = vpop.eup %6622 }
 0x3e3   :  { %v8233_v37 = vadd.f32 %v6623_v34, %v6621_v33 }
 0x3e4   :  { %6156 = vmatpush3.bf16.xpose.msra.mxu0 %v3851_v55  ;;  %v3419_v55 = vpack.c.bf16 %v6619_v7, %v8217_v12 }
 0x3e5   :  { %v6625_v59 = vpop.eup %6624 }
 0x3e6   :  { %v6627_v45 = vpop.eup %6626 }
 0x3e7   :  { %v8235_v19 = vadd.f32 %v6627_v45, %v6625_v59 }
 0x3e9   :  { %v6629_v53 = vpop.eup %6628 }
 0x3ea   :  { %v6631_v42 = vpop.eup %6630  ;;  %v3422_v12 = vpack.c.bf16 %v6629_v53, %v6625_v59  ;;  %v6868_v59 = vld [vmem:[#allocation2 + $0x160] ss:$8 sps:$4 sm:$0xff]  }
 0x3eb   :  { %v3242_v17 = vpop.xlane.xlu1 %3241  ;;  %v8237_v16 = vadd.f32 %v6631_v42, %v6629_v53  ;;  %v6869_v53 = vld [vmem:[#allocation2 + $0x170] ss:$8 sps:$4 sm:$0xff]  }
 0x3ec   :  { %v3280_v20 = vsub.f32 %v7908_v58, %v3242_v17  ;;  %v3281_v15 = vsub.f32 %v8017_v47, %v3242_v17 }
 0x3ee   :  { %v3328_v41 = vmul.f32 1.442695, %v3280_v20  ;;  %v3330_v2 = vmul.f32 1.442695, %v3281_v15 }
 0x3ef   :  { %v3254_v48 = vpop.xlane.xlu1 %3253 }
 0x3f0   :  { %6632 = vpow2.f32 %v3328_v41  ;;  %v3288_v14 = vsub.f32 %v7952_v40, %v3254_v48  ;;  %v3289_v13 = vsub.f32 %v8028_v8, %v3254_v48  ;;  %v3423_v48 = vpack.c.bf16 %v6631_v42, %v6627_v45 }
 0x3f1   :  { %6634 = vpow2.f32 %v3330_v2 }
 0x3f2   :  { %v3344_v29 = vmul.f32 1.442695, %v3288_v14  ;;  %v3346_v3 = vmul.f32 1.442695, %v3289_v13 }
 0x3f3   :  { %v3806_v63 = vpop.permute.xlu1 %3805 }
 0x3f4   :  { %6636 = vpow2.f32 %v3344_v29  ;;  %6232 = vmatprep.subr.msk.bf16.mxu0 %vm2216_vm3, %v3806_v63  ;;  %v3848_v57 = vsel %vm2216_vm3, %v3806_v63, 0 }
 0x3f5   :  { %6638 = vpow2.f32 %v3346_v3  ;;  %6158 = vmatpush3.bf16.xpose.msra.mxu0 %v3848_v57 }
 0x3f7   :  { %v3804_v58 = vpop.permute.xlu1 %3803 }
 0x3f8   :  { %6233 = vmatprep.subr.msk.bf16.mxu0 %vm2216_vm3, %v3804_v58  ;;  %v3845_v0 = vsel %vm2216_vm3, %v3804_v58, 0 }
 0x3fb   :  { %v3802_v47 = vpop.permute.xlu1 %3801 }
 0x3fc   :  { %v3842_v15 = vsel %vm2216_vm3, %v3802_v47, 0 }
 0x3fd   :  { %v6633_v40 = vpop.eup %6632  ;;  %6160 = vmatpush3.bf16.xpose.msra.mxu0 %v3845_v0 }
 0x3fe   :  { %v6635_v8 = vpop.eup %6634  ;;  %6234 = vmatprep.subr.msk.bf16.mxu0 %vm2216_vm3, %v3802_v47  ;;  %v3416_v56 = vpack.c.bf16 %v8202_v54, %v6633_v40  ;;  %v3418_v54 = vpack.c.bf16 %v8225_v30, %v8214_v4  ;;  %v4513_v4 = vpop.permute.xlu0 %4512 }
 0x3ff   :  { %v4515_v22 = vpop.permute.xlu1 %4514  ;;  %v3417_v62 = vpack.c.bf16 %v8204_v52, %v6635_v8  ;;  %v8250_v24 = vadd.f32 %v6635_v8, %v6633_v40  ;;  %v4575_v30 = vsel %vm2216_vm3, %v4513_v4, 0 }
 0x400   :  { %v4578_v7 = vsel %vm2216_vm3, %v4515_v22, 0 }
 0x401   :  { %v6637_v6 = vpop.eup %6636  ;;  %3584 = vmatprep.mubr.bf16.mxu0 %v3417_v62 }
 0x402   :  { %v6639_v17 = vpop.eup %6638  ;;  %3585 = vmatmul.mubr.bf16.gmra.mxu0 %v3416_v56  ;;  %v3420_v2 = vpack.c.bf16 %v6621_v33, %v6637_v6 }
 0x403   :  { %3592 = vmatprep.mubr.bf16.mxu0 %v3419_v55  ;;  %v8253_v20 = vadd.f32 %v6639_v17, %v6637_v6  ;;  %v4531_v41 = vpop.permute.xlu1 %4530  ;;  %v3421_v52 = vpack.c.bf16 %v6623_v34, %v6639_v17  ;;  %v6867_v34 = vld [vmem:[#allocation2 + $0x150] ss:$8 sps:$4 sm:$0xff]  }
 0x405   :  { %6162 = vmatpush3.bf16.xpose.msra.mxu0 %v3842_v15 }
 0x406   :  { %6235 = vmatprep.subr.msk.bf16.mxu0 %vm2216_vm3, %v4531_v41 }
 0x407   :  { %v4529_v14 = vpop.permute.xlu1 %4528 }
 0x40a   :  { %3593 = vmatmul.mubr.bf16.gmra.mxu0 %v3418_v54 }
 0x40b   :  { %3600 = vmatprep.mubr.bf16.mxu0 %v3421_v52  ;;  %v4527_v33 = vpop.permute.xlu1 %4526 }
 0x412   :  { %3601 = vmatmul.mubr.bf16.gmra.mxu0 %v3420_v2 }
 0x413   :  { %3608 = vmatprep.mubr.bf16.mxu0 %v3423_v48 }
 0x41a   :  { %3609 = vmatmul.mubr.bf16.gmra.mxu0 %v3422_v12 }
 0x41b   :  { %6163 = vmatprep.mubr.msk.bf16.mxu0 %vm2216_vm3, %v8086_v38 }
 0x422   :  { %6164 = vmatmul.mubr.msk.bf16.vlgmr.msra.gmra.mxu0 %vm2216_vm3, %v8075_v10  ;;  %v4511_v10 = vpop.permute.xlu0 %4510 }
 0x423   :  { %5988 = vmatpush3.bf16.xpose.msra.mxu0 %v4578_v7  ;;  %6167 = vmatprep.mubr.msk.bf16.mxu0 %vm2216_vm3, %v8061_v46  ;;  %v4572_v38 = vsel %vm2216_vm3, %v4511_v10, 0  ;;  %v4525_v46 = vpop.permute.xlu1 %4524 }
 0x424   :  { %6236 = vmatprep.subr.msk.bf16.mxu0 %vm2216_vm3, %v4529_v14 }
 0x42a   :  { %6168 = vmatmul.mubr.msk.bf16.gmra.mxu0 %vm2216_vm3, %v8030_v51  ;;  %v4509_v51 = vpop.permute.xlu0 %4508 }
 0x42b   :  { %5990 = vmatpush3.bf16.xpose.msra.mxu0 %v4575_v30  ;;  %6171 = vmatprep.mubr.msk.bf16.mxu0 %vm2216_vm3, %v7956_v36  ;;  %v4569_v45 = vsel %vm2216_vm3, %v4509_v51, 0  ;;  %v4523_v36 = vpop.permute.xlu1 %4522 }
 0x42c   :  { %6237 = vmatprep.subr.msk.bf16.mxu0 %vm2216_vm3, %v4527_v33 }
 0x42e   :  { %v4507_v42 = vpop.permute.xlu0 %4506 }
 0x42f   :  { %v4566_v13 = vsel %vm2216_vm3, %v4507_v42, 0  ;;  %v4521_v29 = vpop.permute.xlu1 %4520 }
 0x432   :  { %6172 = vmatmul.mubr.msk.bf16.gmra.mxu0 %vm2216_vm3, %v6867_v34  ;;  %v4505_v63 = vpop.permute.xlu0 %4504 }
 0x433   :  { %5992 = vmatpush3.bf16.xpose.msra.mxu0 %v4572_v38  ;;  %6175 = vmatprep.mubr.msk.bf16.mxu0 %vm2216_vm3, %v6868_v59  ;;  %v4563_v58 = vsel %vm2216_vm3, %v4505_v63, 0  ;;  %v4519_v47 = vpop.permute.xlu1 %4518 }
 0x434   :  { %6238 = vmatprep.subr.msk.bf16.mxu0 %vm2216_vm3, %v4525_v46  ;;  %v8284_v3 = vpop.f32.mrf.mxu0 }
 0x435   :  { %9231 = vst [vmem:[#allocation54_spill] sm:$0xff] %v8284_v3 }
 0x436   :  { %v8286_v57 = vpop.f32.mrf.mxu0  ;;  %v4503_v40 = vpop.permute.xlu0 %4502 }
 0x437   :  { %9232 = vst [vmem:[#allocation55_spill] sm:$0xff] %v8286_v57  ;;  %v4560_v56 = vsel %vm2216_vm3, %v4503_v40, 0  ;;  %v4517_v22 = vpop.permute.xlu1 %4516 }
 0x438   :  { %v8290_v0 = vpop.f32.mrf.mxu0 }
 0x439   :  { %9233 = vst [vmem:[#allocation56_spill] sm:$0xff] %v8290_v0 }
 0x43a   :  { %6176 = vmatmul.mubr.msk.bf16.gmra.mxu0 %vm2216_vm3, %v6869_v53  ;;  %v8292_v8 = vpop.f32.mrf.mxu0  ;;  %v4501_v6 = vpop.permute.xlu0 %4500 }
 0x43b   :  { %5994 = vmatpush3.bf16.xpose.msra.mxu0 %v4569_v45  ;;  %6003 = vmatprep.mubr.msk.bf16.mxu0 %vm2216_vm3, %v8146_v5  ;;  %9234 = vst [vmem:[#allocation57_spill] sm:$0xff] %v8292_v8  ;;  %v4557_v17 = vsel %vm2216_vm3, %v4501_v6, 0 }
 0x43c   :  { %6239 = vmatprep.subr.msk.bf16.mxu0 %vm2216_vm3, %v4523_v36 }
 0x43e   :  { %v8296_v62 = vpop.f32.mrf.mxu0 }
 0x43f   :  { %9235 = vst [vmem:[#allocation58_spill] sm:$0xff] %v8296_v62 }
 0x440   :  { %v8298_v55 = vpop.f32.mrf.mxu0 }
 0x441   :  { %9236 = vst [vmem:[#allocation59_spill] sm:$0xff] %v8298_v55 }
 0x442   :  { %v8301_v15 = vpop.f32.mrf.mxu0 }
 0x443   :  { %5996 = vmatpush3.bf16.xpose.msra.mxu0 %v4566_v13  ;;  %9237 = vst [vmem:[#allocation60_spill] sm:$0xff] %v8301_v15 }
 0x444   :  { %6240 = vmatprep.subr.msk.bf16.mxu0 %vm2216_vm3, %v4521_v29  ;;  %v8303_v41 = vpop.f32.mrf.mxu0 }
 0x445   :  { %9238 = vst [vmem:[#allocation61_spill] sm:$0xff] %v8303_v41 }
 0x446   :  { %v8309_v54 = vpop.f32.mrf.mxu0 }
 0x447   :  { %9239 = vst [vmem:[#allocation62_spill] sm:$0xff] %v8309_v54 }
 0x448   :  { %v8311_v52 = vpop.f32.mrf.mxu0 }
 0x449   :  { %9240 = vst [vmem:[#allocation63_spill] sm:$0xff] %v8311_v52 }
 0x44a   :  { %v8317_v2 = vpop.f32.mrf.mxu0 }
 0x44b   :  { %5998 = vmatpush3.bf16.xpose.msra.mxu0 %v4563_v58  ;;  %9241 = vst [vmem:[#allocation64_spill] sm:$0xff] %v8317_v2 }
 0x44c   :  { %6241 = vmatprep.subr.msk.bf16.mxu0 %vm2216_vm3, %v4519_v47  ;;  %v8319_v48 = vpop.f32.mrf.mxu0 }
 0x44d   :  { %9242 = vst [vmem:[#allocation65_spill] sm:$0xff] %v8319_v48 }
 0x453   :  { %6000 = vmatpush3.bf16.xpose.msra.mxu0 %v4560_v56 }
 0x454   :  { %6242 = vmatprep.subr.msk.bf16.mxu0 %vm2216_vm3, %v4517_v22 }
 0x45b   :  { %6002 = vmatpush3.bf16.xpose.msra.mxu0 %v4557_v17 }
 0x462   :  { %6004 = vmatmul.mubr.msk.bf16.vlgmr.msra.gmra.mxu0 %vm2216_vm3, %v8146_v5  ;;  %v8325_v5 = vpop.f32.mrf.mxu0 }
 0x463   :  { %6005 = vmatprep.mubr.msk.bf16.mxu0 %vm2216_vm3, %v8142_v49  ;;  %9243 = vst [vmem:[#allocation66_spill] sm:$0xff] %v8325_v5 }
 0x464   :  { %v8327_v12 = vpop.f32.mrf.mxu0 }
 0x465   :  { %9244 = vst [vmem:[#allocation67_spill] sm:$0xff] %v8327_v12 }
 0x46a   :  { %6006 = vmatmul.mubr.msk.bf16.gmra.mxu0 %vm2216_vm3, %v8142_v49  ;;  %v8333_v49 = vpop.f32.mrf.mxu0 }
 0x46b   :  { %6007 = vmatprep.mubr.msk.bf16.mxu0 %vm2216_vm3, %v8138_v39  ;;  %9245 = vst [vmem:[#allocation68_spill] sm:$0xff] %v8333_v49 }
 0x46c   :  { %v8335_v7 = vpop.f32.mrf.mxu0 }
 0x46d   :  { %9246 = vst [vmem:[#allocation69_spill] sm:$0xff] %v8335_v7 }
 0x472   :  { %6008 = vmatmul.mubr.msk.bf16.gmra.mxu0 %vm2216_vm3, %v8138_v39 }
 0x473   :  { %6009 = vmatprep.mubr.msk.bf16.mxu0 %vm2216_vm3, %v8134_v50 }
 0x47a   :  { %6010 = vmatmul.mubr.msk.bf16.gmra.mxu0 %vm2216_vm3, %v8134_v50 }
 0x47b   :  { %6011 = vmatprep.mubr.msk.bf16.mxu0 %vm2216_vm3, %v8128_v61 }
 0x482   :  { %6012 = vmatmul.mubr.msk.bf16.gmra.mxu0 %vm2216_vm3, %v8128_v61 }
 0x483   :  { %6013 = vmatprep.mubr.msk.bf16.mxu0 %vm2216_vm3, %v8124_v1  ;;  %v5907_v39 = vpop.f32.mrf.mxu0 }
 0x485   :  { %v5908_v14 = vpop.f32.mrf.mxu0 }
 0x486   :  { %v8341_v4 = vadd.f32 %v5908_v14, %v5907_v39 }
 0x487   :  { %v5910_v30 = vpop.f32.mrf.mxu0 }
 0x488   :  { %9247 = vst [vmem:[#allocation70_spill] sm:$0xff] %v8341_v4 }
 0x489   :  { %v5911_v33 = vpop.f32.mrf.mxu0 }
 0x48a   :  { %v8343_v50 = vadd.f32 %v5911_v33, %v5910_v30  ;;  %6014 = vmatmul.mubr.msk.bf16.gmra.mxu0 %vm2216_vm3, %v8124_v1 }
 0x48b   :  { %6015 = vmatprep.mubr.msk.bf16.mxu0 %vm2216_vm3, %v8114_v27  ;;  %v5913_v10 = vpop.f32.mrf.mxu0 }
 0x48c   :  { %9248 = vst [vmem:[#allocation71_spill] sm:$0xff] %v8343_v50 }
 0x48d   :  { %v5914_v38 = vpop.f32.mrf.mxu0 }
 0x48e   :  { %v8349_v61 = vadd.f32 %v5914_v38, %v5913_v10 }
 0x48f   :  { %v5916_v34 = vpop.f32.mrf.mxu0 }
 0x490   :  { %9249 = vst [vmem:[#allocation72_spill] sm:$0xff] %v8349_v61 }
 0x491   :  { %v5917_v46 = vpop.f32.mrf.mxu0 }
 0x492   :  { %v8351_v59 = vadd.f32 %v5917_v46, %v5916_v34  ;;  %6016 = vmatmul.mubr.msk.bf16.gmra.mxu0 %vm2216_vm3, %v8114_v27 }
 0x493   :  { %6017 = vmatprep.mubr.msk.bf16.mxu0 %vm2216_vm3, %v8104_v23  ;;  %v5919_v51 = vpop.f32.mrf.mxu0 }
 0x494   :  { %9250 = vst [vmem:[#allocation73_spill] sm:$0xff] %v8351_v59 }
 0x495   :  { %v5920_v45 = vpop.f32.mrf.mxu0 }
 0x496   :  { %v8357_v1 = vadd.f32 %v5920_v45, %v5919_v51 }
 0x497   :  { %v5922_v53 = vpop.f32.mrf.mxu0 }
 0x498   :  { %9251 = vst [vmem:[#allocation74_spill] sm:$0xff] %v8357_v1 }
 0x499   :  { %v5923_v36 = vpop.f32.mrf.mxu0 }
 0x49a   :  { %v8359_v42 = vadd.f32 %v5923_v36, %v5922_v53  ;;  %6018 = vmatmul.mubr.msk.bf16.gmra.mxu0 %vm2216_vm3, %v8104_v23 }
 0x49b   :  { %v5925_v13 = vpop.f32.mrf.mxu0 }
 0x49c   :  { %9252 = vst [vmem:[#allocation75_spill] sm:$0xff] %v8359_v42 }
 0x49d   :  { %v5926_v29 = vpop.f32.mrf.mxu0 }
 0x49e   :  { %v8363_v63 = vadd.f32 %v5926_v29, %v5925_v13 }
 0x49f   :  { %v5928_v58 = vpop.f32.mrf.mxu0 }
 0x4a0   :  { %9253 = vst [vmem:[#allocation76_spill] sm:$0xff] %v8363_v63 }
 0x4a1   :  { %v5929_v27 = vpop.f32.mrf.mxu0 }
 0x4a2   :  { %v8365_v47 = vadd.f32 %v5929_v27, %v5928_v58 }
 0x4a4   :  { %9254 = vst [vmem:[#allocation77_spill] sm:$0xff] %v8365_v47 }
 0x4c2   :  { %v5931_v40 = vpop.f32.mrf.mxu0 }
 0x4c4   :  { %v5932_v56 = vpop.f32.mrf.mxu0 }
 0x4c5   :  { %v8367_v22 = vadd.f32 %v5932_v56, %v5931_v40 }
 0x4c6   :  { %v5934_v6 = vpop.f32.mrf.mxu0 }
 0x4c7   :  { %9255 = vst [vmem:[#allocation78_spill] sm:$0xff] %v8367_v22  ;;  %v9279_v22 = vld [vmem:[#allocation22_spill] sm:$0xff] }
 0x4c8   :  { %v5935_v17 = vpop.f32.mrf.mxu0 }
 0x4c9   :  { %v8369_v39 = vadd.f32 %v5935_v17, %v5934_v6 }
 0x4ca   :  { %v5937_v14 = vpop.f32.mrf.mxu0 }
 0x4cb   :  { %9256 = vst [vmem:[#allocation79_spill] sm:$0xff] %v8369_v39 }
 0x4cc   :  { %v5938_v30 = vpop.f32.mrf.mxu0 }
 0x4cd   :  { %v8371_v33 = vadd.f32 %v5938_v30, %v5937_v14  ;;  %v9263_v14 = vld [vmem:[#allocation14_spill] sm:$0xff] }
 0x4ce   :  { %v5940_v23 = vpop.f32.mrf.mxu0 }
 0x4cf   :  { %9257 = vst [vmem:[#allocation80_spill] sm:$0xff] %v8371_v33  ;;  %v9276_v33 = vld [vmem:[#allocation8_spill] sm:$0xff] }
 0x4d0   :  { %v5941_v10 = vpop.f32.mrf.mxu0 }
 0x4d1   :  { %v8373_v38 = vadd.f32 %v5941_v10, %v5940_v23 }
 0x4d2   :  { %v5943_v34 = vpop.f32.mrf.mxu0 }
 0x4d3   :  { %9258 = vst [vmem:[#allocation81_spill] sm:$0xff] %v8373_v38 }
 0x4d4   :  { %v5944_v46 = vpop.f32.mrf.mxu0 }
 0x4d5   :  { %v8375_v51 = vadd.f32 %v5944_v46, %v5943_v34 }
 0x4d6   :  { %v5946_v45 = vpop.f32.mrf.mxu0 }
 0x4d7   :  { %9259 = vst [vmem:[#allocation82_spill] sm:$0xff] %v8375_v51 }
 0x4d8   :  { %v5947_v53 = vpop.f32.mrf.mxu0 }
 0x4d9   :  { %v8377_v36 = vadd.f32 %v5947_v53, %v5946_v45 }
 0x4da   :  { %v5949_v13 = vpop.f32.mrf.mxu0 }
 0x4db   :  { %9260 = vst [vmem:[#allocation83_spill] sm:$0xff] %v8377_v36 }
 0x4dc   :  { %v5950_v29 = vpop.f32.mrf.mxu0 }
 0x4dd   :  { %v8379_v58 = vadd.f32 %v5950_v29, %v5949_v13 }
 0x4de   :  { %v5952_v27 = vpop.f32.mrf.mxu0 }
 0x4df   :  { %9261 = vst [vmem:[#allocation84_spill] sm:$0xff] %v8379_v58  ;;  %v9274_v58 = vld [vmem:[#allocation6_spill] sm:$0xff] }
 0x4e0   :  { %v5953_v40 = vpop.f32.mrf.mxu0  ;;  %vm9275_vm3 = vcmp.le.s32.totalorder %v9263_v14, %v9274_v58 }
 0x4e1   :  { %v8381_v56 = vadd.f32 %v5953_v40, %v5952_v27 }
 0x4e2   :  { %v6165_v6 = vpop.f32.mrf.mxu0 }
 0x4e3   :  { %9262 = vst [vmem:[#allocation85_spill] sm:$0xff] %v8381_v56  ;;  %v8392_v45 = vsel %vm2366_vm5, %v6165_v6, -1e+30  ;;  %vm9277_vm5 = vcmp.le.s32.totalorder %v9263_v14, %v9276_v33  ;;  %v9281_v33 = vld [vmem:[#allocation25_spill] sm:$0xff] }
 0x4e4   :  { %v3899_v17 = vpop.f32.mrf.mxu0 }
 0x4e5   :  { %v8386_v23 = vsel %vm2364_vm6, %v3899_v17, -1e+30  ;;  %vm9280_vm6 = vcmp.le.s32.totalorder %v9263_v14, %v9279_v22 }
 0x4e6   :  { %3978 = vmax.xlane.f32.xlu0 %v8386_v23  ;;  %v6166_v10 = vpop.f32.mrf.mxu0 }
 0x4e7   :  { %v8404_v17 = vsel %vm2367_vm8, %v6166_v10, -1e+30 }
 0x4e8   :  { %v3902_v34 = vpop.f32.mrf.mxu0 }
 0x4e9   :  { %v8397_v13 = vsel %vm2365_vm7, %v3902_v34, -1e+30  ;;  %vm9282_vm7 = vcmp.le.s32.totalorder %v9263_v14, %v9281_v33 }
 0x4ea   :  { %3982 = vmax.xlane.f32.xlu0 %v8392_v45  ;;  %v6169_v29 = vpop.f32.mrf.mxu0  ;;  %3980 = vmax.xlane.f32.xlu1 %v8397_v13 }
 0x4eb   :  { %v8421_v10 = vsel %vm2370_vm9, %v6169_v29, -1e+30 }
 0x4ec   :  { %v3915_v27 = vpop.f32.mrf.mxu0 }
 0x4ed   :  { %v8409_v6 = vsel %vm2368_vm11, %v3915_v27, -1e+30 }
 0x4ee   :  { %3984 = vmax.xlane.f32.xlu0 %v8404_v17  ;;  %v6170_v34 = vpop.f32.mrf.mxu0  ;;  %3986 = vmax.xlane.f32.xlu1 %v8409_v6 }
 0x4ef   :  { %v8428_v36 = vsel %vm2371_vm10, %v6170_v34, -1e+30 }
 0x4f0   :  { %v3918_v46 = vpop.f32.mrf.mxu0 }
 0x4f1   :  { %v8416_v56 = vsel %vm2369_vm12, %v3918_v46, -1e+30 }
 0x4f2   :  { %3988 = vmax.xlane.f32.xlu0 %v8416_v56  ;;  %v6173_v27 = vpop.f32.mrf.mxu0  ;;  %3990 = vmax.xlane.f32.xlu1 %v8421_v10 }
 0x4f3   :  { %v8445_v34 = vsel %vm9275_vm3, %v6173_v27, -1e+30 }
 0x4f4   :  { %v3931_v30 = vpop.f32.mrf.mxu0 }
 0x4f5   :  { %v8433_v46 = vsel %vm2372_vm15, %v3931_v30, -1e+30 }
 0x4f6   :  { %3992 = vmax.xlane.f32.xlu0 %v8428_v36  ;;  %v6174_v29 = vpop.f32.mrf.mxu0  ;;  %3994 = vmax.xlane.f32.xlu1 %v8433_v46 }
 0x4f7   :  { %v8452_v39 = vsel %vm9277_vm5, %v6174_v29, -1e+30  ;;  %vm2757_vm5 = vcmask 519168  }
 0x4f8   :  { %v3934_v40 = vpop.f32.mrf.mxu0 }
 0x4f9   :  { %v8440_v38 = vsel %vm2373_vm0, %v3934_v40, -1e+30 }
 0x4fa   :  { %3996 = vmax.xlane.f32.xlu0 %v8440_v38  ;;  %v6177_v30 = vpop.f32.mrf.mxu0  ;;  %3998 = vmax.xlane.f32.xlu1 %v8445_v34 }
 0x4fb   :  { %v8469_v29 = vsel %vm9282_vm7, %v6177_v30, -1e+30 }
 0x4fc   :  { %v3947_v53 = vpop.f32.mrf.mxu0 }
 0x4fd   :  { %v8457_v40 = vsel %vm2376_vm14, %v3947_v53, -1e+30  ;;  %v9283_v53 = vld [vmem:[#allocation24_spill] sm:$0xff] }
 0x4fe   :  { %4000 = vmax.xlane.f32.xlu0 %v8452_v39  ;;  %v6178_v27 = vpop.f32.mrf.mxu0  ;;  %4002 = vmax.xlane.f32.xlu1 %v8457_v40  ;;  %vm9284_vm8 = vcmp.le.s32.totalorder %v9263_v14, %v9283_v53  ;;  %v9286_v14 = vld [vmem:[#allocation17_spill] sm:$0xff] }
 0x4ff   :  { %v8476_v51 = vsel %vm9284_vm8, %v6178_v27, -1e+30  ;;  %vm9287_vm9 = vcmp.le.s32.totalorder %v7624_v32, %v9286_v14  ;;  %v9290_v14 = vld [vmem:[#allocation15_spill] sm:$0xff] }
 0x500   :  { %v3950_v58 = vpop.f32.mrf.mxu0  ;;  %vm9291_vm11 = vcmp.le.s32.totalorder %v7624_v32, %v9290_v14  ;;  %v9297_v14 = vld [vmem:[#allocation30_spill] sm:$0xff] }
 0x501   :  { %v8464_v47 = vsel %vm9280_vm6, %v3950_v58, -1e+30  ;;  %v9288_v58 = vld [vmem:[#allocation19_spill] sm:$0xff]  ;;  %vm9298_vm15 = vcmp.le.s32.totalorder %v7624_v32, %v9297_v14 }
 0x502   :  { %4004 = vmax.xlane.f32.xlu0 %v8464_v47  ;;  %4006 = vmax.xlane.f32.xlu1 %v8469_v29  ;;  %vm9289_vm10 = vcmp.le.s32.totalorder %v7624_v32, %v9288_v58  ;;  %v9292_v58 = vld [vmem:[#allocation27_spill] sm:$0xff] }
 0x503   :  { %vm9293_vm12 = vcmp.le.s32.totalorder %v7624_v32, %v9292_v58  ;;  %v9295_v58 = vld [vmem:[#allocation29_spill] sm:$0xff]  ;;  %v9301_v14 = vld [vmem:[#allocation31_spill] sm:$0xff] }
 0x504   :  { %vm9296_vm14 = vcmp.le.s32.totalorder %v7624_v32, %v9295_v58  ;;  %vm9302_vm0 = vcmp.le.s32.totalorder %v7624_v32, %v9301_v14  ;;  %v9309_v14 = vld [vmem:[#allocation33_spill] sm:$0xff] }
 0x506   :  { %4008 = vmax.xlane.f32.xlu0 %v8476_v51 }
 0x522   :  { %v8479_v63 = vpop.f32.mrf.mxu0 }
 0x524   :  { %v4640_v22 = vpop.f32.mrf.mxu0 }
 0x525   :  { %v8484_v33 = vsel %vm3153_vm2, %v4640_v22, -1e+30 }
 0x526   :  { %v8486_v30 = vpop.f32.mrf.mxu0  ;;  %v4749_v42 = vmax.f32 %v8479_v63, %v8484_v33 }
 0x528   :  { %4750 = vmax.xlane.f32.xlu1 %v4749_v42  ;;  %v4644_v1 = vpop.f32.mrf.mxu0 }
 0x529   :  { %v8493_v27 = vsel %vm9287_vm9, %v4644_v1, -1e+30 }
 0x52a   :  { %v4752_v53 = vmax.f32 %v8486_v30, %v8493_v27  ;;  %v8497_v59 = vpop.f32.mrf.mxu0 }
 0x52c   :  { %4753 = vmax.xlane.f32.xlu0 %v4752_v53  ;;  %v4650_v22 = vpop.f32.mrf.mxu0 }
 0x52d   :  { %v8502_v61 = vsel %vm9289_vm10, %v4650_v22, -1e+30 }
 0x52e   :  { %v8504_v50 = vpop.f32.mrf.mxu0  ;;  %v4755_v42 = vmax.f32 %v8497_v59, %v8502_v61 }
 0x530   :  { %4756 = vmax.xlane.f32.xlu1 %v4755_v42  ;;  %v4654_v1 = vpop.f32.mrf.mxu0 }
 0x531   :  { %v8511_v4 = vsel %vm9291_vm11, %v4654_v1, -1e+30 }
 0x532   :  { %v4758_v53 = vmax.f32 %v8504_v50, %v8511_v4  ;;  %v8515_v49 = vpop.f32.mrf.mxu0 }
 0x534   :  { %4759 = vmax.xlane.f32.xlu0 %v4758_v53  ;;  %v4660_v22 = vpop.f32.mrf.mxu0 }
 0x535   :  { %v8520_v5 = vsel %vm9293_vm12, %v4660_v22, -1e+30 }
 0x536   :  { %v4761_v42 = vmax.f32 %v8515_v49, %v8520_v5  ;;  %v8524_v7 = vpop.f32.mrf.mxu0 }
 0x538   :  { %4762 = vmax.xlane.f32.xlu1 %v4761_v42  ;;  %v4664_v1 = vpop.f32.mrf.mxu0 }
 0x539   :  { %v8529_v12 = vsel %vm3163_vm1, %v4664_v1, -1e+30  ;;  %vm9310_vm1 = vcmp.le.s32.totalorder %v7624_v32, %v9309_v14  ;;  %v9316_v14 = vld [vmem:[#allocation34_spill] sm:$0xff] }
 0x53a   :  { %v4764_v53 = vmax.f32 %v8524_v7, %v8529_v12  ;;  %v8533_v2 = vpop.f32.mrf.mxu0  ;;  %vm9317_vm2 = vcmp.le.s32.totalorder %v7624_v32, %v9316_v14  ;;  %v9324_v14 = vld [vmem:[#allocation36_spill] sm:$0xff] }
 0x53b   :  { %vm9325_vm3 = vcmp.le.s32.totalorder %v7624_v32, %v9324_v14 }
 0x53c   :  { %4765 = vmax.xlane.f32.xlu0 %v4764_v53  ;;  %v4670_v22 = vpop.f32.mrf.mxu0 }
 0x53d   :  { %v8538_v54 = vsel %vm9296_vm14, %v4670_v22, -1e+30 }
 0x53e   :  { %v4767_v42 = vmax.f32 %v8533_v2, %v8538_v54  ;;  %v8542_v48 = vpop.f32.mrf.mxu0 }
 0x540   :  { %4768 = vmax.xlane.f32.xlu1 %v4767_v42  ;;  %v4674_v1 = vpop.f32.mrf.mxu0 }
 0x541   :  { %v8547_v52 = vsel %vm9298_vm15, %v4674_v1, -1e+30 }
 0x542   :  { %v4770_v53 = vmax.f32 %v8542_v48, %v8547_v52  ;;  %v8551_v15 = vpop.f32.mrf.mxu0 }
 0x544   :  { %4771 = vmax.xlane.f32.xlu0 %v4770_v53  ;;  %v4680_v22 = vpop.f32.mrf.mxu0 }
 0x545   :  { %v8556_v58 = vsel %vm3169_vm13, %v4680_v22, -1e+30  ;;  %v9305_v22 = vld [vmem:[#allocation32_spill] sm:$0xff] }
 0x546   :  { %9299 = vst [vmem:[#allocation14_spill] sm:$0xff] %v8556_v58  ;;  %v4773_v42 = vmax.f32 %v8551_v15, %v8556_v58  ;;  %v8560_v62 = vpop.f32.mrf.mxu0  ;;  %vm9306_vm13 = vcmp.le.s32.totalorder %v7624_v32, %v9305_v22  ;;  %v9320_v22 = vld [vmem:[#allocation35_spill] sm:$0xff] }
 0x547   :  { %9300 = vst [vmem:[#allocation16_spill] sm:$0xff] %v8560_v62 }
 0x548   :  { %4774 = vmax.xlane.f32.xlu1 %v4773_v42  ;;  %v4684_v1 = vpop.f32.mrf.mxu0 }
 0x549   :  { %v8565_v41 = vsel %vm9302_vm0, %v4684_v1, -1e+30 }
 0x54a   :  { %9303 = vst [vmem:[#allocation11_spill] sm:$0xff] %v8565_v41  ;;  %v4776_v53 = vmax.f32 %v8560_v62, %v8565_v41  ;;  %v8569_v55 = vpop.f32.mrf.mxu0 }
 0x54b   :  { %9304 = vst [vmem:[#allocation10_spill] sm:$0xff] %v8569_v55 }
 0x54c   :  { %4777 = vmax.xlane.f32.xlu0 %v4776_v53  ;;  %v4690_v21 = vpop.f32.mrf.mxu0 }
 0x54d   :  { %v8574_v0 = vsel %vm9306_vm13, %v4690_v21, -1e+30 }
 0x54e   :  { %9307 = vst [vmem:[#allocation18_spill] sm:$0xff] %v8574_v0  ;;  %v4779_v42 = vmax.f32 %v8569_v55, %v8574_v0  ;;  %v8578_v3 = vpop.f32.mrf.mxu0 }
 0x54f   :  { %9308 = vst [vmem:[#allocation13_spill] sm:$0xff] %v8578_v3 }
 0x550   :  { %4780 = vmax.xlane.f32.xlu1 %v4779_v42  ;;  %v4694_v1 = vpop.f32.mrf.mxu0 }
 0x551   :  { %v8583_v8 = vsel %vm9310_vm1, %v4694_v1, -1e+30 }
 0x552   :  { %9311 = vst [vmem:[#allocation9_spill] sm:$0xff] %v8583_v8  ;;  %v4782_v53 = vmax.f32 %v8578_v3, %v8583_v8  ;;  %v8587_v57 = vpop.f32.mrf.mxu0 }
 0x553   :  { %9312 = vst [vmem:[#allocation12_spill] sm:$0xff] %v8587_v57 }
 0x554   :  { %4783 = vmax.xlane.f32.xlu0 %v4782_v53  ;;  %v4700_v21 = vpop.f32.mrf.mxu0 }
 0x555   :  { %v8592_v0 = vsel %vm3177_vm4, %v4700_v21, -1e+30  ;;  %vm9321_vm4 = vcmp.le.s32.totalorder %v7624_v32, %v9320_v22  ;;  %v9329_v22 = vld [vmem:[#allocation39_spill] sm:$0xff]  ;;  %v9332_v32 = vld [vmem:[#allocation45_spill] sm:$0xff] }
 0x556   :  { %9314 = vst [vmem:[#allocation20_spill] sm:$0xff] %v8592_v0  ;;  %v4785_v42 = vmax.f32 %v8587_v57, %v8592_v0  ;;  %v8596_v55 = vpop.f32.mrf.mxu0 }
 0x557   :  { %9315 = vst [vmem:[#allocation7_spill] sm:$0xff] %v8596_v55 }
 0x558   :  { %4786 = vmax.xlane.f32.xlu1 %v4785_v42  ;;  %v4704_v1 = vpop.f32.mrf.mxu0 }
 0x559   :  { %v8601_v8 = vsel %vm9317_vm2, %v4704_v1, -1e+30 }
 0x55a   :  { %9318 = vst [vmem:[#allocation26_spill] sm:$0xff] %v8601_v8  ;;  %v4788_v53 = vmax.f32 %v8596_v55, %v8601_v8  ;;  %v8605_v3 = vpop.f32.mrf.mxu0  ;;  %v9327_v55 = vld [vmem:[#allocation38_spill] sm:$0xff] }
 0x55b   :  { %9319 = vst [vmem:[#allocation6_spill] sm:$0xff] %v8605_v3 }
 0x55c   :  { %4789 = vmax.xlane.f32.xlu0 %v4788_v53  ;;  %v4710_v21 = vpop.f32.mrf.mxu0 }
 0x55d   :  { %v8610_v0 = vsel %vm9321_vm4, %v4710_v21, -1e+30  ;;  %v9328_v21 = vld [vmem:[#allocation40_spill] sm:$0xff] }
 0x55e   :  { %9322 = vst [vmem:[#allocation8_spill] sm:$0xff] %v8610_v0  ;;  %v4791_v42 = vmax.f32 %v8605_v3, %v8610_v0  ;;  %v8614_v57 = vpop.f32.mrf.mxu0  ;;  %v9330_v0 = vld [vmem:[#allocation43_spill] sm:$0xff]  ;;  %v9331_v3 = vld [vmem:[#allocation41_spill] sm:$0xff] }
 0x55f   :  { %9323 = vst [vmem:[#allocation23_spill] sm:$0xff] %v8614_v57 }
 0x560   :  { %4792 = vmax.xlane.f32.xlu1 %v4791_v42  ;;  %v4714_v1 = vpop.f32.mrf.mxu0 }
 0x561   :  { %v8619_v8 = vsel %vm9325_vm3, %v4714_v1, -1e+30  ;;  %v9333_v1 = vld [vmem:[#allocation44_spill] sm:$0xff] }
 0x562   :  { %9326 = vst [vmem:[#allocation22_spill] sm:$0xff] %v8619_v8  ;;  %v4794_v53 = vmax.f32 %v8614_v57, %v8619_v8 }
 0x564   :  { %2476 = vadd.xlane.f32.xlu1 %v9327_v55  ;;  %4795 = vmax.xlane.f32.xlu0 %v4794_v53  ;;  %v9334_v53 = vld [vmem:[#allocation47_spill] sm:$0xff] }
 0x568   :  { %2480 = vadd.xlane.f32.xlu1 %v9328_v21  ;;  %2478 = vadd.xlane.f32.xlu0 %v9329_v22  ;;  %v9335_v21 = vld [vmem:[#allocation42_spill] sm:$0xff] }
 0x56c   :  { %2484 = vadd.xlane.f32.xlu1 %v9330_v0  ;;  %2482 = vadd.xlane.f32.xlu0 %v9331_v3 }
 0x56f   :  { %v3979_v42 = vpop.xlane.xlu0 %3978 }
 0x570   :  { %v4010_v41 = vsub.f32 %v8386_v23, %v3979_v42  ;;  %2488 = vadd.xlane.f32.xlu1 %v9332_v32  ;;  %2486 = vadd.xlane.f32.xlu0 %v9333_v1  ;;  %v9336_v42 = vld [vmem:[#allocation49_spill] sm:$0xff]  ;;  %v9337_v32 = vld [vmem:[#allocation48_spill] sm:$0xff] }
 0x572   :  { %v4026_v57 = vmul.f32 1.442695, %v4010_v41 }
 0x573   :  { %v3983_v14 = vpop.xlane.xlu0 %3982  ;;  %v3981_v8 = vpop.xlane.xlu1 %3980 }
 0x574   :  { %v4012_v55 = vsub.f32 %v8392_v45, %v3983_v14  ;;  %2492 = vadd.xlane.f32.xlu1 %v9334_v53  ;;  %2490 = vadd.xlane.f32.xlu0 %v9335_v21  ;;  %v4011_v0 = vsub.f32 %v8397_v13, %v3981_v8  ;;  %6640 = vpow2.f32 %v4026_v57  ;;  %v9338_v13 = vld [vmem:[#allocation51_spill] sm:$0xff]  ;;  %v9339_v57 = vld [vmem:[#allocation46_spill] sm:$0xff] }
 0x576   :  { %v4028_v22 = vmul.f32 1.442695, %v4011_v0  ;;  %v4030_v3 = vmul.f32 1.442695, %v4012_v55  ;;  %v9340_v0 = vld [vmem:[#allocation53_spill] sm:$0xff] }
 0x577   :  { %v3985_v62 = vpop.xlane.xlu0 %3984  ;;  %v3987_v58 = vpop.xlane.xlu1 %3986 }
 0x578   :  { %v4013_v23 = vsub.f32 %v8404_v17, %v3985_v62  ;;  %2496 = vadd.xlane.f32.xlu1 %v9336_v42  ;;  %2494 = vadd.xlane.f32.xlu0 %v9337_v32  ;;  %v4014_v41 = vsub.f32 %v8409_v6, %v3987_v58  ;;  %6642 = vpow2.f32 %v4028_v22  ;;  %v9341_v22 = vld [vmem:[#allocation52_spill] sm:$0xff] }
 0x579   :  { %6644 = vpow2.f32 %v4030_v3 }
 0x57a   :  { %v4032_v45 = vmul.f32 1.442695, %v4013_v23  ;;  %v4034_v1 = vmul.f32 1.442695, %v4014_v41  ;;  %v9342_v41 = vld [vmem:[#allocation50_spill] sm:$0xff] }
 0x57b   :  { %v3989_v14 = vpop.xlane.xlu0 %3988  ;;  %v3991_v53 = vpop.xlane.xlu1 %3990 }
 0x57c   :  { %6646 = vpow2.f32 %v4032_v45  ;;  %v4015_v8 = vsub.f32 %v8416_v56, %v3989_v14  ;;  %2500 = vadd.xlane.f32.xlu1 %v9338_v13  ;;  %2498 = vadd.xlane.f32.xlu0 %v9339_v57  ;;  %v4016_v62 = vsub.f32 %v8421_v10, %v3991_v53 }
 0x57d   :  { %6648 = vpow2.f32 %v4034_v1 }
 0x57e   :  { %v4036_v17 = vmul.f32 1.442695, %v4015_v8  ;;  %v4038_v55 = vmul.f32 1.442695, %v4016_v62 }
 0x57f   :  { %v3993_v21 = vpop.xlane.xlu0 %3992  ;;  %v3995_v6 = vpop.xlane.xlu1 %3994 }
 0x580   :  { %6650 = vpow2.f32 %v4036_v17  ;;  %v4017_v58 = vsub.f32 %v8428_v36, %v3993_v21  ;;  %2504 = vadd.xlane.f32.xlu1 %v9340_v0  ;;  %2502 = vadd.xlane.f32.xlu0 %v9341_v22  ;;  %v4018_v56 = vsub.f32 %v8433_v46, %v3995_v6  ;;  %v6530_v0 = vld [vmem:[#allocation2 + $0x1e4] ss:$8 sps:$4 sm:$0xff]  }
 0x581   :  { %6652 = vpow2.f32 %v4038_v55  ;;  %v8651_v45 = vpop.eup %6640 }
 0x582   :  { %v4040_v3 = vmul.f32 1.442695, %v4017_v58  ;;  %v4042_v23 = vmul.f32 1.442695, %v4018_v56 }
 0x583   :  { %v3997_v42 = vpop.xlane.xlu0 %3996  ;;  %v3999_v32 = vpop.xlane.xlu1 %3998 }
 0x584   :  { %6654 = vpow2.f32 %v4040_v3  ;;  %v4019_v10 = vsub.f32 %v8440_v38, %v3997_v42  ;;  %3361 = vadd.xlane.f32.xlu1 %v8170_v43  ;;  %2506 = vadd.xlane.f32.xlu0 %v9342_v41  ;;  %v4020_v36 = vsub.f32 %v8445_v34, %v3999_v32  ;;  %v6532_v42 = vld [vmem:[#allocation2 + $0x1d4] ss:$8 sps:$4 sm:$0xff]  }
 0x585   :  { %v8653_v1 = vpop.eup %6642  ;;  %6656 = vpow2.f32 %v4042_v23 }
 0x586   :  { %v4044_v14 = vmul.f32 1.442695, %v4019_v10  ;;  %v4046_v46 = vmul.f32 1.442695, %v4020_v36  ;;  %v4090_v13 = vpack.c.bf16 %v8653_v1, %v8651_v45  ;;  %v8657_v57 = vpop.eup %6644 }
 0x587   :  { %v4001_v53 = vpop.xlane.xlu0 %4000  ;;  %v4003_v8 = vpop.xlane.xlu1 %4002 }
 0x588   :  { %6658 = vpow2.f32 %v4044_v14  ;;  %v4021_v43 = vsub.f32 %v8452_v39, %v4001_v53  ;;  %3367 = vadd.xlane.f32.xlu1 %v8176_v60  ;;  %3364 = vadd.xlane.f32.xlu0 %v8174_v28  ;;  %v4022_v38 = vsub.f32 %v8457_v40, %v4003_v8  ;;  %v6529_v39 = vld [vmem:[#allocation2 + $0x174] ss:$8 sps:$4 sm:$0xff]  }
 0x589   :  { %v8663_v34 = vpop.eup %6646  ;;  %6195 = vmatprep.mubr.bf16.mxu1 %v4090_v13  ;;  %6660 = vpow2.f32 %v4046_v46  ;;  %v6535_v46 = vld [vmem:[#allocation2 + $0x144] ss:$8 sps:$4 sm:$0xff]   ;;  %v6537_v13 = vld [vmem:[#allocation2 + $0x134] ss:$8 sps:$4 sm:$0xff]  }
 0x58a   :  { %v4091_v62 = vpack.c.bf16 %v8663_v34, %v8657_v57  ;;  %v4048_v17 = vmul.f32 1.442695, %v4021_v43  ;;  %v4050_v55 = vmul.f32 1.442695, %v4022_v38  ;;  %v8667_v58 = vpop.eup %6648 }
 0x58b   :  { %v4005_v21 = vpop.xlane.xlu0 %4004  ;;  %v4007_v6 = vpop.xlane.xlu1 %4006 }
 0x58c   :  { %6662 = vpow2.f32 %v4048_v17  ;;  %v4023_v60 = vsub.f32 %v8464_v47, %v4005_v21  ;;  %3373 = vadd.xlane.f32.xlu1 %v8186_v18  ;;  %3370 = vadd.xlane.f32.xlu0 %v8184_v31  ;;  %v4024_v28 = vsub.f32 %v8469_v29, %v4007_v6  ;;  %v6531_v18 = vld [vmem:[#allocation2 + $0x164] ss:$8 sps:$4 sm:$0xff]  }
 0x58d   :  { %v8673_v40 = vpop.eup %6650  ;;  %6196 = vmatmul.mubr.bf16.vlgmr.msra.gmra.mxu1 %v4091_v62  ;;  %6664 = vpow2.f32 %v4050_v55  ;;  %v6539_v62 = vld [vmem:[#allocation2 + $0x124] ss:$8 sps:$4 sm:$0xff]   ;;  %v6541_v55 = vld [vmem:[#allocation2 + $0x114] ss:$8 sps:$4 sm:$0xff]  }
 0x58e   :  { %v4052_v22 = vmul.f32 1.442695, %v4023_v60  ;;  %6020 = vmatpush3.bf16.msra.mxu1 %v6529_v39  ;;  %v4092_v56 = vpack.c.bf16 %v8673_v40, %v8667_v58  ;;  %v4054_v3 = vmul.f32 1.442695, %v4024_v28  ;;  %v8677_v23 = vpop.eup %6652  ;;  %v6542_v21 = vld [vmem:[#allocation2 + $0x184] ss:$8 sps:$4 sm:$0xff]  }
 0x58f   :  { %6021 = vmatprep.subr.bf16.mxu1 %v6530_v0  ;;  %v4009_v47 = vpop.xlane.xlu0 %4008 }
 0x590   :  { %6666 = vpow2.f32 %v4052_v22  ;;  %v4025_v31 = vsub.f32 %v8476_v51, %v4009_v47  ;;  %3379 = vadd.xlane.f32.xlu1 %v8192_v25  ;;  %3376 = vadd.xlane.f32.xlu0 %v8190_v35  ;;  %v6533_v25 = vld [vmem:[#allocation2 + $0x154] ss:$8 sps:$4 sm:$0xff]   ;;  %v6534_v35 = vld [vmem:[#allocation2 + $0x1c4] ss:$8 sps:$4 sm:$0xff]  }
 0x591   :  { %v6655_v29 = vpop.eup %6654  ;;  %6199 = vmatprep.mubr.bf16.mxu1 %v4092_v56  ;;  %6668 = vpow2.f32 %v4054_v3 }
 0x592   :  { %v4056_v32 = vmul.f32 1.442695, %v4025_v31  ;;  %6022 = vmatpush3.bf16.msra.mxu1 %v6531_v18  ;;  %v4093_v10 = vpack.c.bf16 %v6655_v29, %v8677_v23  ;;  %v8683_v41 = vpop.eup %6656 }
 0x593   :  { %6023 = vmatprep.subr.bf16.mxu1 %v6532_v42 }
 0x594   :  { %6670 = vpow2.f32 %v4056_v32  ;;  %3385 = vadd.xlane.f32.xlu1 %v8250_v24  ;;  %3382 = vadd.xlane.f32.xlu0 %v8196_v26  ;;  %v6536_v24 = vld [vmem:[#allocation2 + $0x1b4] ss:$8 sps:$4 sm:$0xff]  }
 0x595   :  { %v8687_v51 = vpop.eup %6658  ;;  %6200 = vmatmul.mubr.bf16.gmra.mxu1 %v4093_v10 }
 0x596   :  { %6024 = vmatpush3.bf16.msra.mxu1 %v6533_v25  ;;  %v4094_v36 = vpack.c.bf16 %v8687_v51, %v8683_v41  ;;  %v6661_v14 = vpop.eup %6660 }
 0x597   :  { %6025 = vmatprep.subr.bf16.mxu1 %v6534_v35 }
 0x598   :  { %3391 = vadd.xlane.f32.xlu1 %v8221_v44  ;;  %3388 = vadd.xlane.f32.xlu0 %v8210_v11  ;;  %v6538_v44 = vld [vmem:[#allocation2 + $0x1a4] ss:$8 sps:$4 sm:$0xff]  }
 0x599   :  { %v6663_v53 = vpop.eup %6662  ;;  %6203 = vmatprep.mubr.bf16.mxu1 %v4094_v36 }
 0x59a   :  { %6026 = vmatpush3.bf16.msra.mxu1 %v6535_v46  ;;  %v4095_v26 = vpack.c.bf16 %v6663_v53, %v6661_v14  ;;  %v8693_v8 = vpop.eup %6664 }
 0x59b   :  { %6027 = vmatprep.subr.bf16.mxu1 %v6536_v24 }
 0x59c   :  { %3397 = vadd.xlane.f32.xlu1 %v8253_v20  ;;  %3394 = vadd.xlane.f32.xlu0 %v8229_v9  ;;  %v6540_v20 = vld [vmem:[#allocation2 + $0x194] ss:$8 sps:$4 sm:$0xff]  }
 0x59d   :  { %v8697_v43 = vpop.eup %6666  ;;  %6204 = vmatmul.mubr.bf16.gmra.mxu1 %v4095_v26 }
 0x59e   :  { %6028 = vmatpush3.bf16.msra.mxu1 %v6537_v13  ;;  %v4096_v11 = vpack.c.bf16 %v8697_v43, %v8693_v8  ;;  %v6669_v38 = vpop.eup %6668 }
 0x59f   :  { %6029 = vmatprep.subr.bf16.mxu1 %v6538_v44 }
 0x5a0   :  { %3403 = vadd.xlane.f32.xlu1 %v8235_v19  ;;  %3400 = vadd.xlane.f32.xlu0 %v8233_v37  ;;  %v6543_v37 = vld [vmem:[#allocation2 + $0x104] ss:$8 sps:$4 sm:$0xff]  }
 0x5a1   :  { %v6671_v17 = vpop.eup %6670  ;;  %6207 = vmatprep.mubr.bf16.mxu1 %v4096_v11 }
 0x5a2   :  { %6030 = vmatpush3.bf16.msra.mxu1 %v6539_v62  ;;  %v4097_v9 = vpack.c.bf16 %v6671_v17, %v6669_v38 }
 0x5a3   :  { %6031 = vmatprep.subr.bf16.mxu1 %v6540_v20 }
 0x5a4   :  { %4062 = vadd.xlane.f32.xlu1 %v8657_v57  ;;  %3406 = vadd.xlane.f32.xlu0 %v8237_v16 }
 0x5a5   :  { %6208 = vmatmul.mubr.bf16.gmra.mxu1 %v4097_v9 }
 0x5a6   :  { %6032 = vmatpush3.bf16.msra.mxu1 %v6541_v55  ;;  %v9343_v55 = vld [vmem:[#allocation14_spill] sm:$0xff] }
 0x5a7   :  { %6033 = vmatprep.subr.bf16.mxu1 %v6542_v21 }
 0x5a8   :  { %4058 = vadd.xlane.f32.xlu1 %v8651_v45  ;;  %4064 = vadd.xlane.f32.xlu0 %v8663_v34 }
 0x5aa   :  { %6034 = vmatpush3.bf16.msra.mxu1 %v6543_v37 }
 0x5ac   :  { %4060 = vadd.xlane.f32.xlu0 %v8653_v1  ;;  %4070 = vadd.xlane.f32.xlu1 %v8677_v23 }
 0x5b0   :  { %4072 = vadd.xlane.f32.xlu0 %v6655_v29  ;;  %4066 = vadd.xlane.f32.xlu1 %v8667_v58 }
 0x5b1   :  { %v4751_v19 = vpop.xlane.xlu1 %4750 }
 0x5b2   :  { %v4797_v16 = vsub.f32 %v8479_v63, %v4751_v19  ;;  %v4798_v57 = vsub.f32 %v8484_v33, %v4751_v19 }
 0x5b4   :  { %v4829_v6 = vmul.f32 1.442695, %v4797_v16  ;;  %v4831_v60 = vmul.f32 1.442695, %v4798_v57  ;;  %4068 = vadd.xlane.f32.xlu0 %v8673_v40  ;;  %4078 = vadd.xlane.f32.xlu1 %v6661_v14 }
 0x5b5   :  { %v4754_v45 = vpop.xlane.xlu0 %4753 }
 0x5b6   :  { %6672 = vpow2.f32 %v4829_v6  ;;  %v4799_v34 = vsub.f32 %v8486_v30, %v4754_v45  ;;  %v4800_v1 = vsub.f32 %v8493_v27, %v4754_v45  ;;  %v9344_v6 = vld [vmem:[#allocation16_spill] sm:$0xff]  ;;  %v9345_v45 = vld [vmem:[#allocation11_spill] sm:$0xff] }
 0x5b7   :  { %6674 = vpow2.f32 %v4831_v60 }
 0x5b8   :  { %v4833_v28 = vmul.f32 1.442695, %v4799_v34  ;;  %v4835_v39 = vmul.f32 1.442695, %v4800_v1  ;;  %4080 = vadd.xlane.f32.xlu0 %v6663_v53  ;;  %4074 = vadd.xlane.f32.xlu1 %v8683_v41 }
 0x5b9   :  { %v4757_v63 = vpop.xlane.xlu1 %4756 }
 0x5ba   :  { %6676 = vpow2.f32 %v4833_v28  ;;  %v4801_v33 = vsub.f32 %v8497_v59, %v4757_v63  ;;  %v4802_v58 = vsub.f32 %v8502_v61, %v4757_v63 }
 0x5bb   :  { %6678 = vpow2.f32 %v4835_v39 }
 0x5bc   :  { %v4837_v40 = vmul.f32 1.442695, %v4801_v33  ;;  %v4839_v0 = vmul.f32 1.442695, %v4802_v58  ;;  %4076 = vadd.xlane.f32.xlu0 %v8687_v51  ;;  %4086 = vadd.xlane.f32.xlu1 %v6669_v38 }
 0x5bd   :  { %v4760_v30 = vpop.xlane.xlu0 %4759 }
 0x5be   :  { %6680 = vpow2.f32 %v4837_v40  ;;  %v4803_v27 = vsub.f32 %v8504_v50, %v4760_v30  ;;  %v4804_v22 = vsub.f32 %v8511_v4, %v4760_v30 }
 0x5bf   :  { %6682 = vpow2.f32 %v4839_v0  ;;  %v9346_v0 = vld [vmem:[#allocation10_spill] sm:$0xff] }
 0x5c0   :  { %v4841_v56 = vmul.f32 1.442695, %v4803_v27  ;;  %v4843_v3 = vmul.f32 1.442695, %v4804_v22  ;;  %4088 = vadd.xlane.f32.xlu0 %v6671_v17  ;;  %4082 = vadd.xlane.f32.xlu1 %v8693_v8  ;;  %v9347_v27 = vld [vmem:[#allocation18_spill] sm:$0xff] }
 0x5c1   :  { %v4763_v59 = vpop.xlane.xlu1 %4762 }
 0x5c2   :  { %6684 = vpow2.f32 %v4841_v56  ;;  %v4805_v61 = vsub.f32 %v8515_v49, %v4763_v59  ;;  %v4806_v47 = vsub.f32 %v8520_v5, %v4763_v59 }
 0x5c3   :  { %v6673_v23 = vpop.eup %6672  ;;  %6686 = vpow2.f32 %v4843_v3 }
 0x5c4   :  { %v6675_v31 = vpop.eup %6674  ;;  %v4845_v18 = vmul.f32 1.442695, %v4805_v61  ;;  %v4847_v29 = vmul.f32 1.442695, %v4806_v47  ;;  %4084 = vadd.xlane.f32.xlu0 %v8697_v43 }
 0x5c5   :  { %v4766_v4 = vpop.xlane.xlu0 %4765  ;;  %v4893_v50 = vadd.f32 %v6675_v31, %v6673_v23 }
 0x5c6   :  { %6688 = vpow2.f32 %v4845_v18  ;;  %v4807_v42 = vsub.f32 %v8524_v7, %v4766_v4  ;;  %v4808_v32 = vsub.f32 %v8529_v12, %v4766_v4 }
 0x5c7   :  { %v6677_v10 = vpop.eup %6676  ;;  %6690 = vpow2.f32 %v4847_v29  ;;  %4894 = vadd.xlane.f32.xlu1 %v4893_v50  ;;  %v9349_v29 = vld [vmem:[#allocation9_spill] sm:$0xff] }
 0x5c8   :  { %v6679_v49 = vpop.eup %6678  ;;  %v4941_v41 = vpack.c.bf16 %v6677_v10, %v6673_v23  ;;  %v4849_v5 = vmul.f32 1.442695, %v4807_v42  ;;  %v4851_v25 = vmul.f32 1.442695, %v4808_v32 }
 0x5c9   :  { %v4769_v51 = vpop.xlane.xlu1 %4768  ;;  %v4896_v35 = vadd.f32 %v6679_v49, %v6677_v10  ;;  %v4942_v36 = vpack.c.bf16 %v6679_v49, %v6675_v31  ;;  %v9348_v31 = vld [vmem:[#allocation13_spill] sm:$0xff] }
 0x5ca   :  { %6692 = vpow2.f32 %v4849_v5  ;;  %v4809_v14 = vsub.f32 %v8533_v2, %v4769_v51  ;;  %v4810_v46 = vsub.f32 %v8538_v54, %v4769_v51  ;;  %v9350_v51 = vld [vmem:[#allocation12_spill] sm:$0xff] }
 0x5cb   :  { %v6681_v53 = vpop.eup %6680  ;;  %6694 = vpow2.f32 %v4851_v25  ;;  %4897 = vadd.xlane.f32.xlu0 %v4896_v35  ;;  %5085 = vmatprep.mubr.bf16.mxu1 %v4942_v36  ;;  %v9351_v36 = vld [vmem:[#allocation20_spill] sm:$0xff] }
 0x5cc   :  { %v6683_v12 = vpop.eup %6682  ;;  %v4853_v7 = vmul.f32 1.442695, %v4809_v14  ;;  %v4855_v24 = vmul.f32 1.442695, %v4810_v46  ;;  %5086 = vmatmul.mubr.bf16.vlgmr.msra.gmra.mxu1 %v4941_v41 }
 0x5cd   :  { %v4772_v26 = vpop.xlane.xlu0 %4771  ;;  %v4899_v8 = vadd.f32 %v6683_v12, %v6681_v53 }
 0x5ce   :  { %6696 = vpow2.f32 %v4853_v7  ;;  %v4811_v13 = vsub.f32 %v8542_v48, %v4772_v26  ;;  %v4812_v43 = vsub.f32 %v8547_v52, %v4772_v26 }
 0x5cf   :  { %v6685_v44 = vpop.eup %6684  ;;  %6698 = vpow2.f32 %v4855_v24  ;;  %4900 = vadd.xlane.f32.xlu1 %v4899_v8  ;;  %v9352_v8 = vld [vmem:[#allocation7_spill] sm:$0xff] }
 0x5d0   :  { %v6687_v2 = vpop.eup %6686  ;;  %v4857_v54 = vmul.f32 1.442695, %v4811_v13  ;;  %v4859_v11 = vmul.f32 1.442695, %v4812_v43  ;;  %v4943_v38 = vpack.c.bf16 %v6685_v44, %v6681_v53  ;;  %v9353_v43 = vld [vmem:[#allocation26_spill] sm:$0xff] }
 0x5d1   :  { %v4775_v62 = vpop.xlane.xlu1 %4774  ;;  %v4902_v17 = vadd.f32 %v6687_v2, %v6685_v44  ;;  %v4944_v20 = vpack.c.bf16 %v6687_v2, %v6683_v12 }
 0x5d2   :  { %6700 = vpow2.f32 %v4857_v54  ;;  %v4813_v9 = vsub.f32 %v8551_v15, %v4775_v62  ;;  %v4814_v21 = vsub.f32 %v9343_v55, %v4775_v62  ;;  %v9354_v55 = vld [vmem:[#allocation6_spill] sm:$0xff] }
 0x5d3   :  { %v6689_v37 = vpop.eup %6688  ;;  %6702 = vpow2.f32 %v4859_v11  ;;  %4903 = vadd.xlane.f32.xlu0 %v4902_v17  ;;  %5093 = vmatprep.mubr.bf16.mxu1 %v4944_v20 }
 0x5d4   :  { %v6691_v52 = vpop.eup %6690  ;;  %v4861_v48 = vmul.f32 1.442695, %v4813_v9  ;;  %v4863_v19 = vmul.f32 1.442695, %v4814_v21  ;;  %5094 = vmatmul.mubr.bf16.gmra.mxu1 %v4943_v38 }
 0x5d5   :  { %v4778_v16 = vpop.xlane.xlu0 %4777  ;;  %v4905_v57 = vadd.f32 %v6691_v52, %v6689_v37 }
 0x5d6   :  { %6704 = vpow2.f32 %v4861_v48  ;;  %v4815_v60 = vsub.f32 %v9344_v6, %v4778_v16  ;;  %v4816_v34 = vsub.f32 %v9345_v45, %v4778_v16 }
 0x5d7   :  { %v6693_v1 = vpop.eup %6692  ;;  %6706 = vpow2.f32 %v4863_v19  ;;  %4906 = vadd.xlane.f32.xlu1 %v4905_v57 }
 0x5d8   :  { %v6695_v15 = vpop.eup %6694  ;;  %v4865_v28 = vmul.f32 1.442695, %v4815_v60  ;;  %v4867_v39 = vmul.f32 1.442695, %v4816_v34  ;;  %v4945_v63 = vpack.c.bf16 %v6693_v1, %v6689_v37  ;;  %v9355_v37 = vld [vmem:[#allocation8_spill] sm:$0xff]  ;;  %v9356_v34 = vld [vmem:[#allocation23_spill] sm:$0xff] }
 0x5d9   :  { %v4781_v33 = vpop.xlane.xlu1 %4780  ;;  %v4908_v58 = vadd.f32 %v6695_v15, %v6693_v1  ;;  %v4946_v40 = vpack.c.bf16 %v6695_v15, %v6691_v52  ;;  %v9357_v15 = vld [vmem:[#allocation22_spill] sm:$0xff] }
 0x5da   :  { %6708 = vpow2.f32 %v4865_v28  ;;  %v4817_v30 = vsub.f32 %v9346_v0, %v4781_v33  ;;  %v4818_v22 = vsub.f32 %v9347_v27, %v4781_v33 }
 0x5db   :  { %v6697_v56 = vpop.eup %6696  ;;  %6710 = vpow2.f32 %v4867_v39  ;;  %4909 = vadd.xlane.f32.xlu0 %v4908_v58  ;;  %5101 = vmatprep.mubr.bf16.mxu1 %v4946_v40 }
 0x5dc   :  { %v6699_v3 = vpop.eup %6698  ;;  %v4869_v59 = vmul.f32 1.442695, %v4817_v30  ;;  %v4871_v61 = vmul.f32 1.442695, %v4818_v22  ;;  %5102 = vmatmul.mubr.bf16.gmra.mxu1 %v4945_v63 }
 0x5dd   :  { %v4784_v47 = vpop.xlane.xlu0 %4783  ;;  %v4911_v23 = vadd.f32 %v6699_v3, %v6697_v56 }
 0x5de   :  { %6712 = vpow2.f32 %v4869_v59  ;;  %v4819_v18 = vsub.f32 %v9348_v31, %v4784_v47  ;;  %v4820_v4 = vsub.f32 %v9349_v29, %v4784_v47 }
 0x5df   :  { %v6701_v50 = vpop.eup %6700  ;;  %6714 = vpow2.f32 %v4871_v61  ;;  %4912 = vadd.xlane.f32.xlu1 %v4911_v23 }
 0x5e0   :  { %v6703_v42 = vpop.eup %6702  ;;  %v4873_v32 = vmul.f32 1.442695, %v4819_v18  ;;  %v4875_v10 = vmul.f32 1.442695, %v4820_v4  ;;  %v4947_v49 = vpack.c.bf16 %v6701_v50, %v6697_v56 }
 0x5e1   :  { %v4787_v41 = vpop.xlane.xlu1 %4786  ;;  %v4914_v5 = vadd.f32 %v6703_v42, %v6701_v50  ;;  %v4948_v25 = vpack.c.bf16 %v6703_v42, %v6699_v3 }
 0x5e2   :  { %6716 = vpow2.f32 %v4873_v32  ;;  %v4821_v35 = vsub.f32 %v9350_v51, %v4787_v41  ;;  %v4822_v14 = vsub.f32 %v9351_v36, %v4787_v41  ;;  %v9358_v51 = vld [vmem:[#allocation55_spill] sm:$0xff] }
 0x5e3   :  { %v6705_v46 = vpop.eup %6704  ;;  %6718 = vpow2.f32 %v4875_v10  ;;  %4915 = vadd.xlane.f32.xlu0 %v4914_v5  ;;  %5109 = vmatprep.mubr.bf16.mxu1 %v4948_v25 }
 0x5e4   :  { %v6707_v53 = vpop.eup %6706  ;;  %v4877_v12 = vmul.f32 1.442695, %v4821_v35  ;;  %v4879_v7 = vmul.f32 1.442695, %v4822_v14  ;;  %5110 = vmatmul.mubr.bf16.gmra.mxu1 %v4947_v49 }
 0x5e5   :  { %v4790_v24 = vpop.xlane.xlu0 %4789  ;;  %v4917_v26 = vadd.f32 %v6707_v53, %v6705_v46 }
 0x5e6   :  { %6720 = vpow2.f32 %v4877_v12  ;;  %v4823_v13 = vsub.f32 %v9352_v8, %v4790_v24  ;;  %v4824_v44 = vsub.f32 %v9353_v43, %v4790_v24  ;;  %v9359_v43 = vld [vmem:[#allocation57_spill] sm:$0xff] }
 0x5e7   :  { %v6709_v2 = vpop.eup %6708  ;;  %6722 = vpow2.f32 %v4879_v7  ;;  %4918 = vadd.xlane.f32.xlu1 %v4917_v26 }
 0x5e8   :  { %v6711_v54 = vpop.eup %6710  ;;  %v4881_v11 = vmul.f32 1.442695, %v4823_v13  ;;  %v4883_v38 = vmul.f32 1.442695, %v4824_v44  ;;  %v4949_v62 = vpack.c.bf16 %v6709_v2, %v6705_v46 }
 0x5e9   :  { %v4793_v17 = vpop.xlane.xlu1 %4792  ;;  %v4920_v20 = vadd.f32 %v6711_v54, %v6709_v2  ;;  %v4950_v9 = vpack.c.bf16 %v6711_v54, %v6707_v53  ;;  %v9360_v54 = vld [vmem:[#allocation54_spill] sm:$0xff] }
 0x5ea   :  { %6724 = vpow2.f32 %v4881_v11  ;;  %v4825_v21 = vsub.f32 %v9354_v55, %v4793_v17  ;;  %v4826_v52 = vsub.f32 %v9355_v37, %v4793_v17  ;;  %v9361_v17 = vld [vmem:[#allocation56_spill] sm:$0xff]  ;;  %v9362_v55 = vld [vmem:[#allocation59_spill] sm:$0xff] }
 0x5eb   :  { %v6713_v48 = vpop.eup %6712  ;;  %6726 = vpow2.f32 %v4883_v38  ;;  %4921 = vadd.xlane.f32.xlu0 %v4920_v20  ;;  %5117 = vmatprep.mubr.bf16.mxu1 %v4950_v9 }
 0x5ec   :  { %v6715_v19 = vpop.eup %6714  ;;  %v4885_v16 = vmul.f32 1.442695, %v4825_v21  ;;  %v4887_v57 = vmul.f32 1.442695, %v4826_v52  ;;  %5118 = vmatmul.mubr.bf16.gmra.mxu1 %v4949_v62 }
 0x5ed   :  { %v4796_v6 = vpop.xlane.xlu0 %4795  ;;  %v2477_v60 = vpop.xlane.xlu1 %2476  ;;  %v4923_v45 = vadd.f32 %v6715_v19, %v6713_v48 }
 0x5ee   :  { %6728 = vpow2.f32 %v4885_v16  ;;  %v4827_v1 = vsub.f32 %v9356_v34, %v4796_v6  ;;  %v4828_v28 = vsub.f32 %v9357_v15, %v4796_v6  ;;  %v9363_v6 = vld [vmem:[#allocation61_spill] sm:$0xff] }
 0x5ef   :  { %v6717_v39 = vpop.eup %6716  ;;  %6730 = vpow2.f32 %v4887_v57  ;;  %4924 = vadd.xlane.f32.xlu1 %v4923_v45  ;;  %v9364_v45 = vld [vmem:[#allocation58_spill] sm:$0xff] }
 0x5f0   :  { %v6719_v63 = vpop.eup %6718  ;;  %v4889_v33 = vmul.f32 1.442695, %v4827_v1  ;;  %v4891_v58 = vmul.f32 1.442695, %v4828_v28  ;;  %6732 = vrcp.f32 %v2477_v60  ;;  %v4951_v40 = vpack.c.bf16 %v6717_v39, %v6713_v48 }
 0x5f1   :  { %v2479_v0 = vpop.xlane.xlu0 %2478  ;;  %v2481_v30 = vpop.xlane.xlu1 %2480  ;;  %v4926_v27 = vadd.f32 %v6719_v63, %v6717_v39  ;;  %v4952_v22 = vpack.c.bf16 %v6719_v63, %v6715_v19 }
 0x5f2   :  { %6734 = vpow2.f32 %v4889_v33 }
 0x5f3   :  { %v6721_v56 = vpop.eup %6720  ;;  %6736 = vpow2.f32 %v4891_v58  ;;  %4927 = vadd.xlane.f32.xlu0 %v4926_v27  ;;  %5125 = vmatprep.mubr.bf16.mxu1 %v4952_v22  ;;  %v9365_v58 = vld [vmem:[#allocation60_spill] sm:$0xff] }
 0x5f4   :  { %v6723_v3 = vpop.eup %6722  ;;  %6738 = vrcp.f32 %v2479_v0  ;;  %5126 = vmatmul.mubr.bf16.gmra.mxu1 %v4951_v40  ;;  %v9366_v0 = vld [vmem:[#allocation63_spill] sm:$0xff] }
 0x5f5   :  { %6740 = vrcp.f32 %v2481_v30  ;;  %v2483_v59 = vpop.xlane.xlu0 %2482  ;;  %v2485_v61 = vpop.xlane.xlu1 %2484  ;;  %v4929_v47 = vadd.f32 %v6723_v3, %v6721_v56 }
 0x5f6   :  { %6742 = vrcp.f32 %v2483_v59 }
 0x5f7   :  { %v6725_v23 = vpop.eup %6724  ;;  %6744 = vrcp.f32 %v2485_v61  ;;  %4930 = vadd.xlane.f32.xlu1 %v4929_v47  ;;  %v9367_v47 = vld [vmem:[#allocation65_spill] sm:$0xff] }
 0x5f8   :  { %v6727_v31 = vpop.eup %6726  ;;  %v4953_v18 = vpack.c.bf16 %v6725_v23, %v6721_v56 }
 0x5f9   :  { %v2487_v29 = vpop.xlane.xlu0 %2486  ;;  %v2489_v4 = vpop.xlane.xlu1 %2488  ;;  %v4932_v50 = vadd.f32 %v6727_v31, %v6725_v23  ;;  %v4954_v42 = vpack.c.bf16 %v6727_v31, %v6723_v3  ;;  %v9368_v31 = vld [vmem:[#allocation62_spill] sm:$0xff] }
 0x5fa   :  { %6746 = vrcp.f32 %v2487_v29 }
 0x5fb   :  { %v6729_v32 = vpop.eup %6728  ;;  %6748 = vrcp.f32 %v2489_v4  ;;  %4933 = vadd.xlane.f32.xlu0 %v4932_v50  ;;  %5133 = vmatprep.mubr.bf16.mxu1 %v4954_v42 }
 0x5fc   :  { %v6731_v10 = vpop.eup %6730  ;;  %5134 = vmatmul.mubr.bf16.gmra.mxu1 %v4953_v18 }
 0x5fd   :  { %v6733_v49 = vpop.eup %6732  ;;  %v2491_v41 = vpop.xlane.xlu0 %2490  ;;  %v4935_v25 = vadd.f32 %v6731_v10, %v6729_v32 }
 0x5fe   :  { %v2493_v5 = vpop.xlane.xlu1 %2492  ;;  %v2677_v35 = vmul.f32 %v6733_v49, %v9358_v51  ;;  %6750 = vrcp.f32 %v2491_v41  ;;  %v9369_v49 = vld [vmem:[#allocation64_spill] sm:$0xff] }
 0x5ff   :  { %v6735_v36 = vpop.eup %6734  ;;  %6752 = vrcp.f32 %v2493_v5  ;;  %4936 = vadd.xlane.f32.xlu1 %v4935_v25  ;;  %v9370_v5 = vld [vmem:[#allocation67_spill] sm:$0xff] }
 0x600   :  { %v6737_v14 = vpop.eup %6736  ;;  %v5763_v46 = vpack.c.bf16 %v2677_v35, %v2677_v35  ;;  %v4955_v53 = vpack.c.bf16 %v6735_v36, %v6729_v32 }
 0x601   :  { %v6739_v12 = vpop.eup %6738  ;;  %v2495_v7 = vpop.xlane.xlu0 %2494  ;;  %v4938_v26 = vadd.f32 %v6737_v14, %v6735_v36  ;;  %v4956_v8 = vpack.c.bf16 %v6737_v14, %v6731_v10 }
 0x602   :  { %v2497_v24 = vpop.xlane.xlu1 %2496  ;;  %v6741_v13 = vpop.eup %6740  ;;  %2758 = vst.msk [vmem:[%s9037_s2] sm:$0xf] %vm2757_vm5, %v5763_v46  ;;  %v2678_v44 = vmul.f32 %v6739_v12, %v9359_v43  ;;  %6754 = vrcp.f32 %v2495_v7  ;;  %v9371_v12 = vld [vmem:[#allocation69_spill] sm:$0xff] }
 0x603   :  { %v6743_v2 = vpop.eup %6742  ;;  %v2679_v11 = vmul.f32 %v6741_v13, %v9360_v54  ;;  %6756 = vrcp.f32 %v2497_v24  ;;  %4939 = vadd.xlane.f32.xlu0 %v4938_v26  ;;  %5141 = vmatprep.mubr.bf16.mxu1 %v4956_v8  ;;  %v9372_v24 = vld [vmem:[#allocation66_spill] sm:$0xff] }
 0x604   :  { %v6745_v38 = vpop.eup %6744  ;;  %v5764_v62 = vpack.c.bf16 %v2678_v44, %v2678_v44  ;;  %v2680_v20 = vmul.f32 %v6743_v2, %v9361_v17  ;;  %5142 = vmatmul.mubr.bf16.gmra.mxu1 %v4955_v53 }
 0x605   :  { %v5765_v9 = vpack.c.bf16 %v2679_v11, %v2679_v11  ;;  %v2681_v21 = vmul.f32 %v6745_v38, %v9362_v55  ;;  %v2499_v37 = vpop.xlane.xlu0 %2498  ;;  %v9373_v11 = vld [vmem:[#allocation68_spill] sm:$0xff] }
 0x606   :  { %v2501_v52 = vpop.xlane.xlu1 %2500  ;;  %2759 = vst.msk [vmem:[%s9037_s2 + $0x4] sm:$0xf] %vm2757_vm5, %v5764_v62  ;;  %v5766_v48 = vpack.c.bf16 %v2680_v20, %v2680_v20  ;;  %6758 = vrcp.f32 %v2499_v37  ;;  %v9374_v62 = vld [vmem:[#allocation70_spill] sm:$0xff] }
 0x607   :  { %v6747_v19 = vpop.eup %6746  ;;  %2760 = vst.msk [vmem:[%s9037_s2 + $0x8] sm:$0xf] %vm2757_vm5, %v5765_v9  ;;  %v5767_v16 = vpack.c.bf16 %v2681_v21, %v2681_v21  ;;  %6760 = vrcp.f32 %v2501_v52 }
 0x608   :  { %v6749_v57 = vpop.eup %6748  ;;  %2761 = vst.msk [vmem:[%s9037_s2 + $0xc] sm:$0xf] %vm2757_vm5, %v5766_v48  ;;  %v2682_v60 = vmul.f32 %v6747_v19, %v9363_v6  ;;  %v9375_v48 = vld [vmem:[#allocation71_spill] sm:$0xff] }
 0x609   :  { %2762 = vst.msk [vmem:[%s9037_s2 + $0x10] sm:$0xf] %vm2757_vm5, %v5767_v16  ;;  %v2683_v34 = vmul.f32 %v6749_v57, %v9364_v45  ;;  %v2503_v1 = vpop.xlane.xlu0 %2502  ;;  %v9376_v16 = vld [vmem:[#allocation72_spill] sm:$0xff] }
 0x60a   :  { %v2505_v15 = vpop.xlane.xlu1 %2504  ;;  %v5768_v28 = vpack.c.bf16 %v2682_v60, %v2682_v60  ;;  %6762 = vrcp.f32 %v2503_v1 }
 0x60b   :  { %v6751_v39 = vpop.eup %6750  ;;  %v5769_v63 = vpack.c.bf16 %v2683_v34, %v2683_v34  ;;  %6764 = vrcp.f32 %v2505_v15 }
 0x60c   :  { %v6753_v33 = vpop.eup %6752  ;;  %2763 = vst.msk [vmem:[%s9037_s2 + $0x14] sm:$0xf] %vm2757_vm5, %v5768_v28  ;;  %v2684_v40 = vmul.f32 %v6751_v39, %v9365_v58  ;;  %v9377_v28 = vld [vmem:[#allocation73_spill] sm:$0xff] }
 0x60d   :  { %2764 = vst.msk [vmem:[%s9037_s2 + $0x18] sm:$0xf] %vm2757_vm5, %v5769_v63  ;;  %v2685_v30 = vmul.f32 %v6753_v33, %v9366_v0  ;;  %v2507_v27 = vpop.xlane.xlu0 %2506  ;;  %v9378_v63 = vld [vmem:[#allocation74_spill] sm:$0xff] }
 0x60e   :  { %v3362_v22 = vpop.xlane.xlu1 %3361  ;;  %v5770_v56 = vpack.c.bf16 %v2684_v40, %v2684_v40  ;;  %6766 = vrcp.f32 %v2507_v27 }
 0x60f   :  { %v6755_v3 = vpop.eup %6754  ;;  %v5771_v59 = vpack.c.bf16 %v2685_v30, %v2685_v30  ;;  %6768 = vrcp.f32 %v3362_v22 }
 0x610   :  { %v6757_v61 = vpop.eup %6756  ;;  %2765 = vst.msk [vmem:[%s9037_s2 + $0x1c] sm:$0xf] %vm2757_vm5, %v5770_v56  ;;  %v2686_v23 = vmul.f32 %v6755_v3, %v9367_v47  ;;  %v9379_v56 = vld [vmem:[#allocation75_spill] sm:$0xff] }
 0x611   :  { %2766 = vst.msk [vmem:[%s9037_s2 + $0x20] sm:$0xf] %vm2757_vm5, %v5771_v59  ;;  %v2687_v18 = vmul.f32 %v6757_v61, %v9368_v31  ;;  %v3365_v29 = vpop.xlane.xlu0 %3364  ;;  %v9380_v59 = vld [vmem:[#allocation76_spill] sm:$0xff] }
 0x612   :  { %v3368_v4 = vpop.xlane.xlu1 %3367  ;;  %v5772_v50 = vpack.c.bf16 %v2686_v23, %v2686_v23  ;;  %6770 = vrcp.f32 %v3365_v29 }
 0x613   :  { %v6759_v42 = vpop.eup %6758  ;;  %v5773_v32 = vpack.c.bf16 %v2687_v18, %v2687_v18  ;;  %6772 = vrcp.f32 %v3368_v4 }
 0x614   :  { %v6761_v10 = vpop.eup %6760  ;;  %2767 = vst.msk [vmem:[%s9037_s2 + $0x24] sm:$0xf] %vm2757_vm5, %v5772_v50  ;;  %v2688_v41 = vmul.f32 %v6759_v42, %v9369_v49  ;;  %v9381_v50 = vld [vmem:[#allocation77_spill] sm:$0xff] }
 0x615   :  { %2768 = vst.msk [vmem:[%s9037_s2 + $0x28] sm:$0xf] %vm2757_vm5, %v5773_v32  ;;  %v2689_v25 = vmul.f32 %v6761_v10, %v9370_v5  ;;  %v3371_v51 = vpop.xlane.xlu0 %3370  ;;  %v9382_v32 = vld [vmem:[#allocation78_spill] sm:$0xff] }
 0x616   :  { %v3374_v35 = vpop.xlane.xlu1 %3373  ;;  %v5774_v36 = vpack.c.bf16 %v2688_v41, %v2688_v41  ;;  %6774 = vrcp.f32 %v3371_v51 }
 0x617   :  { %v6763_v14 = vpop.eup %6762  ;;  %v5775_v46 = vpack.c.bf16 %v2689_v25, %v2689_v25  ;;  %6776 = vrcp.f32 %v3374_v35 }
 0x618   :  { %v6765_v53 = vpop.eup %6764  ;;  %2769 = vst.msk [vmem:[%s9037_s2 + $0x2c] sm:$0xf] %vm2757_vm5, %v5774_v36  ;;  %v2690_v7 = vmul.f32 %v6763_v14, %v9371_v12  ;;  %v9383_v36 = vld [vmem:[#allocation79_spill] sm:$0xff] }
 0x619   :  { %2770 = vst.msk [vmem:[%s9037_s2 + $0x30] sm:$0xf] %vm2757_vm5, %v5775_v46  ;;  %v2691_v26 = vmul.f32 %v6765_v53, %v9372_v24  ;;  %v3377_v8 = vpop.xlane.xlu0 %3376  ;;  %v9384_v46 = vld [vmem:[#allocation80_spill] sm:$0xff] }
 0x61a   :  { %v3380_v13 = vpop.xlane.xlu1 %3379  ;;  %v5776_v43 = vpack.c.bf16 %v2690_v7, %v2690_v7  ;;  %6778 = vrcp.f32 %v3377_v8 }
 0x61b   :  { %v6767_v44 = vpop.eup %6766  ;;  %v5777_v2 = vpack.c.bf16 %v2691_v26, %v2691_v26  ;;  %6780 = vrcp.f32 %v3380_v13 }
 0x61c   :  { %v6769_v54 = vpop.eup %6768  ;;  %2771 = vst.msk [vmem:[%s9037_s2 + $0x34] sm:$0xf] %vm2757_vm5, %v5776_v43  ;;  %v2692_v38 = vmul.f32 %v6767_v44, %v9373_v11  ;;  %v9385_v43 = vld [vmem:[#allocation81_spill] sm:$0xff] }
 0x61d   :  { %2772 = vst.msk [vmem:[%s9037_s2 + $0x38] sm:$0xf] %vm2757_vm5, %v5777_v2  ;;  %v3633_v17 = vmul.f32 %v6769_v54, %v9374_v62  ;;  %v3383_v20 = vpop.xlane.xlu0 %3382  ;;  %v9386_v2 = vld [vmem:[#allocation82_spill] sm:$0xff] }
 0x61e   :  { %v3386_v9 = vpop.xlane.xlu1 %3385  ;;  %v5778_v55 = vpack.c.bf16 %v2692_v38, %v2692_v38  ;;  %6782 = vrcp.f32 %v3383_v20 }
 0x61f   :  { %v6771_v21 = vpop.eup %6770  ;;  %v5779_v37 = vpack.c.bf16 %v3633_v17, %v3633_v17  ;;  %6784 = vrcp.f32 %v3386_v9  ;;  %v9387_v9 = vld [vmem:[#allocation83_spill] sm:$0xff] }
 0x620   :  { %v6773_v52 = vpop.eup %6772  ;;  %2773 = vst.msk [vmem:[%s9037_s2 + $0x3c] sm:$0xf] %vm2757_vm5, %v5778_v55  ;;  %v3634_v19 = vmul.f32 %v6771_v21, %v9375_v48  ;;  %v9388_v21 = vld [vmem:[#allocation84_spill] sm:$0xff] }
 0x621   :  { %3713 = vst.msk [vmem:[%s9037_s2 + $0x40] sm:$0xf] %vm2757_vm5, %v5779_v37  ;;  %v3635_v57 = vmul.f32 %v6773_v52, %v9376_v16  ;;  %v3389_v6 = vpop.xlane.xlu0 %3388 }
 0x622   :  { %v3392_v60 = vpop.xlane.xlu1 %3391  ;;  %v5780_v45 = vpack.c.bf16 %v3634_v19, %v3634_v19  ;;  %6786 = vrcp.f32 %v3389_v6 }
 0x623   :  { %v6775_v34 = vpop.eup %6774  ;;  %v5781_v1 = vpack.c.bf16 %v3635_v57, %v3635_v57  ;;  %6788 = vrcp.f32 %v3392_v60  ;;  %v9389_v57 = vld [vmem:[#allocation85_spill] sm:$0xff] }
 0x624   :  { %v6777_v15 = vpop.eup %6776  ;;  %3714 = vst.msk [vmem:[%s9037_s2 + $0x44] sm:$0xf] %vm2757_vm5, %v5780_v45  ;;  %v3636_v39 = vmul.f32 %v6775_v34, %v9377_v28 }
 0x625   :  { %3715 = vst.msk [vmem:[%s9037_s2 + $0x48] sm:$0xf] %vm2757_vm5, %v5781_v1  ;;  %v3637_v33 = vmul.f32 %v6777_v15, %v9378_v63  ;;  %v3395_v58 = vpop.xlane.xlu0 %3394 }
 0x626   :  { %v3398_v40 = vpop.xlane.xlu1 %3397  ;;  %v5782_v0 = vpack.c.bf16 %v3636_v39, %v3636_v39  ;;  %6790 = vrcp.f32 %v3395_v58 }
 0x627   :  { %v6779_v30 = vpop.eup %6778  ;;  %v5783_v27 = vpack.c.bf16 %v3637_v33, %v3637_v33  ;;  %6792 = vrcp.f32 %v3398_v40 }
 0x628   :  { %v6781_v22 = vpop.eup %6780  ;;  %3716 = vst.msk [vmem:[%s9037_s2 + $0x4c] sm:$0xf] %vm2757_vm5, %v5782_v0  ;;  %v3638_v3 = vmul.f32 %v6779_v30, %v9379_v56 }
 0x629   :  { %3717 = vst.msk [vmem:[%s9037_s2 + $0x50] sm:$0xf] %vm2757_vm5, %v5783_v27  ;;  %v3639_v61 = vmul.f32 %v6781_v22, %v9380_v59  ;;  %v3401_v47 = vpop.xlane.xlu0 %3400 }
 0x62a   :  { %v3404_v23 = vpop.xlane.xlu1 %3403  ;;  %v5784_v31 = vpack.c.bf16 %v3638_v3, %v3638_v3  ;;  %6794 = vrcp.f32 %v3401_v47 }
 0x62b   :  { %v6783_v18 = vpop.eup %6782  ;;  %v5785_v29 = vpack.c.bf16 %v3639_v61, %v3639_v61  ;;  %6796 = vrcp.f32 %v3404_v23 }
 0x62c   :  { %v6785_v4 = vpop.eup %6784  ;;  %3718 = vst.msk [vmem:[%s9037_s2 + $0x54] sm:$0xf] %vm2757_vm5, %v5784_v31  ;;  %v3640_v42 = vmul.f32 %v6783_v18, %v9381_v50 }
 0x62d   :  { %3719 = vst.msk [vmem:[%s9037_s2 + $0x58] sm:$0xf] %vm2757_vm5, %v5785_v29  ;;  %v3641_v10 = vmul.f32 %v6785_v4, %v9382_v32  ;;  %v3407_v49 = vpop.xlane.xlu0 %3406 }
 0x62e   :  { %v4063_v41 = vpop.xlane.xlu1 %4062  ;;  %v5786_v5 = vpack.c.bf16 %v3640_v42, %v3640_v42  ;;  %6798 = vrcp.f32 %v3407_v49 }
 0x62f   :  { %v6787_v25 = vpop.eup %6786  ;;  %v5787_v51 = vpack.c.bf16 %v3641_v10, %v3641_v10  ;;  %6800 = vrcp.f32 %v4063_v41 }
 0x630   :  { %v6789_v35 = vpop.eup %6788  ;;  %3720 = vst.msk [vmem:[%s9037_s2 + $0x5c] sm:$0xf] %vm2757_vm5, %v5786_v5  ;;  %v3642_v14 = vmul.f32 %v6787_v25, %v9383_v36 }
 0x631   :  { %3721 = vst.msk [vmem:[%s9037_s2 + $0x60] sm:$0xf] %vm2757_vm5, %v5787_v51  ;;  %v3643_v53 = vmul.f32 %v6789_v35, %v9384_v46  ;;  %v4065_v12 = vpop.xlane.xlu0 %4064 }
 0x632   :  { %v5788_v7 = vpack.c.bf16 %v3642_v14, %v3642_v14  ;;  %v4059_v8 = vpop.xlane.xlu1 %4058 }
 0x633   :  { %v6791_v24 = vpop.eup %6790  ;;  %v5789_v26 = vpack.c.bf16 %v3643_v53, %v3643_v53  ;;  %6802 = vrcp.f32 %v4059_v8 }
 0x634   :  { %v6793_v13 = vpop.eup %6792  ;;  %3722 = vst.msk [vmem:[%s9037_s2 + $0x64] sm:$0xf] %vm2757_vm5, %v5788_v7  ;;  %v3644_v44 = vmul.f32 %v6791_v24, %v9385_v43  ;;  %6804 = vrcp.f32 %v4065_v12 }
 0x635   :  { %3723 = vst.msk [vmem:[%s9037_s2 + $0x68] sm:$0xf] %vm2757_vm5, %v5789_v26  ;;  %v3645_v54 = vmul.f32 %v6793_v13, %v9386_v2  ;;  %v4061_v17 = vpop.xlane.xlu0 %4060 }
 0x636   :  { %v5790_v11 = vpack.c.bf16 %v3644_v44, %v3644_v44  ;;  %v4071_v52 = vpop.xlane.xlu1 %4070  ;;  %6806 = vrcp.f32 %v4061_v17 }
 0x637   :  { %v6795_v38 = vpop.eup %6794  ;;  %v5791_v62 = vpack.c.bf16 %v3645_v54, %v3645_v54  ;;  %6808 = vrcp.f32 %v4071_v52 }
 0x638   :  { %v6797_v20 = vpop.eup %6796  ;;  %3724 = vst.msk [vmem:[%s9037_s2 + $0x6c] sm:$0xf] %vm2757_vm5, %v5790_v11  ;;  %v3646_v55 = vmul.f32 %v6795_v38, %v9387_v9 }
 0x639   :  { %3725 = vst.msk [vmem:[%s9037_s2 + $0x70] sm:$0xf] %vm2757_vm5, %v5791_v62  ;;  %v3647_v37 = vmul.f32 %v6797_v20, %v9388_v21  ;;  %v4073_v60 = vpop.xlane.xlu0 %4072 }
 0x63a   :  { %v5792_v48 = vpack.c.bf16 %v3646_v55, %v3646_v55  ;;  %v4067_v34 = vpop.xlane.xlu1 %4066 }
 0x63b   :  { %v6799_v19 = vpop.eup %6798  ;;  %v5793_v16 = vpack.c.bf16 %v3647_v37, %v3647_v37  ;;  %6810 = vrcp.f32 %v4067_v34 }
 0x63c   :  { %3726 = vst.msk [vmem:[%s9037_s2 + $0x74] sm:$0xf] %vm2757_vm5, %v5792_v48  ;;  %v3648_v6 = vmul.f32 %v6799_v19, %v9389_v57  ;;  %6812 = vrcp.f32 %v4073_v60  ;;  %v6801_v63 = vpop.eup %6800 }
 0x63d   :  { %3727 = vst.msk [vmem:[%s9037_s2 + $0x78] sm:$0xf] %vm2757_vm5, %v5793_v16  ;;  %v4069_v1 = vpop.xlane.xlu0 %4068 }
 0x63e   :  { %v5794_v45 = vpack.c.bf16 %v3648_v6, %v3648_v6  ;;  %v4079_v15 = vpop.xlane.xlu1 %4078  ;;  %6814 = vrcp.f32 %v4069_v1 }
 0x63f   :  { %6816 = vrcp.f32 %v4079_v15 }
 0x640   :  { %3728 = vst.msk [vmem:[%s9037_s2 + $0x7c] sm:$0xf] %vm2757_vm5, %v5794_v45  ;;  %v6803_v40 = vpop.eup %6802 }
 0x641   :  { %v4081_v28 = vpop.xlane.xlu0 %4080  ;;  %v6805_v56 = vpop.eup %6804 }
 0x642   :  { %v4075_v39 = vpop.xlane.xlu1 %4074 }
 0x643   :  { %6818 = vrcp.f32 %v4075_v39  ;;  %v6807_v23 = vpop.eup %6806 }
 0x644   :  { %6820 = vrcp.f32 %v4081_v28  ;;  %v6809_v4 = vpop.eup %6808 }
 0x645   :  { %v4077_v0 = vpop.xlane.xlu0 %4076 }
 0x646   :  { %v4087_v3 = vpop.xlane.xlu1 %4086  ;;  %6822 = vrcp.f32 %v4077_v0 }
 0x647   :  { %6824 = vrcp.f32 %v4087_v3 }
 0x648   :  { %v6811_v49 = vpop.eup %6810 }
 0x649   :  { %v4089_v50 = vpop.xlane.xlu0 %4088  ;;  %v6813_v35 = vpop.eup %6812 }
 0x64a   :  { %v4083_v41 = vpop.xlane.xlu1 %4082 }
 0x64b   :  { %6826 = vrcp.f32 %v4083_v41  ;;  %v6815_v53 = vpop.eup %6814 }
 0x64c   :  { %6828 = vrcp.f32 %v4089_v50  ;;  %v6817_v8 = vpop.eup %6816 }
 0x64d   :  { %v6197_v33 = vpop.f32.mrf.mxu1  ;;  %v4085_v12 = vpop.xlane.xlu0 %4084 }
 0x64e   :  { %v4261_v58 = vmul.f32 %v6801_v63, %v6197_v33  ;;  %6830 = vrcp.f32 %v4085_v12 }
 0x64f   :  { %v4180_v30 = vpop.f32.mrf.mxu1 }
 0x650   :  { %v5797_v27 = vpack.c.bf16 %v4261_v58, %v4261_v58  ;;  %v4259_v22 = vmul.f32 %v6803_v40, %v4180_v30  ;;  %v6819_v2 = vpop.eup %6818  ;;  %v4895_v30 = vpop.xlane.xlu1 %4894 }
 0x651   :  { %v6198_v59 = vpop.f32.mrf.mxu1  ;;  %v6821_v62 = vpop.eup %6820  ;;  %6832 = vrcp.f32 %v4895_v30 }
 0x652   :  { %5613 = vst.msk [vmem:[%s9037_s2 + $0x88] sm:$0xf] %vm2757_vm5, %v5797_v27  ;;  %v5795_v61 = vpack.c.bf16 %v4259_v22, %v4259_v22  ;;  %v4262_v47 = vmul.f32 %v6805_v56, %v6198_v59 }
 0x653   :  { %v4183_v31 = vpop.f32.mrf.mxu1  ;;  %v6823_v55 = vpop.eup %6822 }
 0x654   :  { %5611 = vst.msk [vmem:[%s9037_s2 + $0x80] sm:$0xf] %vm2757_vm5, %v5795_v61  ;;  %v5798_v18 = vpack.c.bf16 %v4262_v47, %v4262_v47  ;;  %v4260_v29 = vmul.f32 %v6807_v23, %v4183_v31  ;;  %v6825_v48 = vpop.eup %6824  ;;  %v4898_v27 = vpop.xlane.xlu0 %4897 }
 0x655   :  { %v6201_v42 = vpop.f32.mrf.mxu1  ;;  %6834 = vrcp.f32 %v4898_v27 }
 0x656   :  { %5614 = vst.msk [vmem:[%s9037_s2 + $0x8c] sm:$0xf] %vm2757_vm5, %v5798_v18  ;;  %v5796_v32 = vpack.c.bf16 %v4260_v29, %v4260_v29  ;;  %v4265_v10 = vmul.f32 %v6809_v4, %v6201_v42 }
 0x657   :  { %v4196_v5 = vpop.f32.mrf.mxu1 }
 0x658   :  { %5612 = vst.msk [vmem:[%s9037_s2 + $0x84] sm:$0xf] %vm2757_vm5, %v5796_v32  ;;  %v5801_v25 = vpack.c.bf16 %v4265_v10, %v4265_v10  ;;  %v4263_v51 = vmul.f32 %v6811_v49, %v4196_v5  ;;  %v6827_v6 = vpop.eup %6826  ;;  %v4901_v22 = vpop.xlane.xlu1 %4900 }
 0x659   :  { %v6202_v36 = vpop.f32.mrf.mxu1  ;;  %v6829_v1 = vpop.eup %6828  ;;  %6836 = vrcp.f32 %v4901_v22 }
 0x65a   :  { %5617 = vst.msk [vmem:[%s9037_s2 + $0x98] sm:$0xf] %vm2757_vm5, %v5801_v25  ;;  %v5799_v14 = vpack.c.bf16 %v4263_v51, %v4263_v51  ;;  %v4266_v46 = vmul.f32 %v6813_v35, %v6202_v36 }
 0x65b   :  { %v4199_v7 = vpop.f32.mrf.mxu1  ;;  %v6831_v63 = vpop.eup %6830 }
 0x65c   :  { %5615 = vst.msk [vmem:[%s9037_s2 + $0x90] sm:$0xf] %vm2757_vm5, %v5799_v14  ;;  %v5802_v24 = vpack.c.bf16 %v4266_v46, %v4266_v46  ;;  %v4264_v26 = vmul.f32 %v6815_v53, %v4199_v7  ;;  %v4904_v56 = vpop.xlane.xlu0 %4903 }
 0x65d   :  { %v6205_v13 = vpop.f32.mrf.mxu1  ;;  %6838 = vrcp.f32 %v4904_v56 }
 0x65e   :  { %5618 = vst.msk [vmem:[%s9037_s2 + $0x9c] sm:$0xf] %vm2757_vm5, %v5802_v24  ;;  %v5800_v43 = vpack.c.bf16 %v4264_v26, %v4264_v26  ;;  %v4269_v44 = vmul.f32 %v6817_v8, %v6205_v13  ;;  %v6833_v47 = vpop.eup %6832 }
 0x65f   :  { %v4212_v54 = vpop.f32.mrf.mxu1 }
 0x660   :  { %5616 = vst.msk [vmem:[%s9037_s2 + $0x94] sm:$0xf] %vm2757_vm5, %v5800_v43  ;;  %v5805_v11 = vpack.c.bf16 %v4269_v44, %v4269_v44  ;;  %v4267_v38 = vmul.f32 %v6819_v2, %v4212_v54  ;;  %v4907_v23 = vpop.xlane.xlu1 %4906 }
 0x661   :  { %v6206_v17 = vpop.f32.mrf.mxu1  ;;  %6840 = vrcp.f32 %v4907_v23 }
 0x662   :  { %5621 = vst.msk [vmem:[%s9037_s2 + $0xa8] sm:$0xf] %vm2757_vm5, %v5805_v11  ;;  %v5803_v20 = vpack.c.bf16 %v4267_v38, %v4267_v38  ;;  %v4270_v9 = vmul.f32 %v6821_v62, %v6206_v17  ;;  %v6835_v42 = vpop.eup %6834 }
 0x663   :  { %v4215_v21 = vpop.f32.mrf.mxu1 }
 0x664   :  { %5619 = vst.msk [vmem:[%s9037_s2 + $0xa0] sm:$0xf] %vm2757_vm5, %v5803_v20  ;;  %v5806_v37 = vpack.c.bf16 %v4270_v9, %v4270_v9  ;;  %v4268_v52 = vmul.f32 %v6823_v55, %v4215_v21  ;;  %v4910_v32 = vpop.xlane.xlu0 %4909 }
 0x665   :  { %v6209_v19 = vpop.f32.mrf.mxu1  ;;  %6842 = vrcp.f32 %v4910_v32 }
 0x666   :  { %5622 = vst.msk [vmem:[%s9037_s2 + $0xac] sm:$0xf] %vm2757_vm5, %v5806_v37  ;;  %v5804_v16 = vpack.c.bf16 %v4268_v52, %v4268_v52  ;;  %v4273_v57 = vmul.f32 %v6825_v48, %v6209_v19  ;;  %v6837_v51 = vpop.eup %6836 }
 0x667   :  { %v4228_v60 = vpop.f32.mrf.mxu1 }
 0x668   :  { %5620 = vst.msk [vmem:[%s9037_s2 + $0xa4] sm:$0xf] %vm2757_vm5, %v5804_v16  ;;  %v5809_v45 = vpack.c.bf16 %v4273_v57, %v4273_v57  ;;  %v4271_v34 = vmul.f32 %v6827_v6, %v4228_v60  ;;  %v4913_v35 = vpop.xlane.xlu1 %4912 }
 0x669   :  { %v6210_v15 = vpop.f32.mrf.mxu1  ;;  %6844 = vrcp.f32 %v4913_v35 }
 0x66a   :  { %5625 = vst.msk [vmem:[%s9037_s2 + $0xb8] sm:$0xf] %vm2757_vm5, %v5809_v45  ;;  %v5807_v28 = vpack.c.bf16 %v4271_v34, %v4271_v34  ;;  %v4274_v39 = vmul.f32 %v6829_v1, %v6210_v15  ;;  %v6839_v7 = vpop.eup %6838 }
 0x66b   :  { %v4231_v33 = vpop.f32.mrf.mxu1 }
 0x66c   :  { %5623 = vst.msk [vmem:[%s9037_s2 + $0xb0] sm:$0xf] %vm2757_vm5, %v5807_v28  ;;  %v5810_v58 = vpack.c.bf16 %v4274_v39, %v4274_v39  ;;  %v4272_v40 = vmul.f32 %v6831_v63, %v4231_v33  ;;  %v4916_v24 = vpop.xlane.xlu0 %4915 }
 0x66d   :  { %6846 = vrcp.f32 %v4916_v24 }
 0x66e   :  { %5626 = vst.msk [vmem:[%s9037_s2 + $0xbc] sm:$0xf] %vm2757_vm5, %v5810_v58  ;;  %v5808_v0 = vpack.c.bf16 %v4272_v40, %v4272_v40  ;;  %v6841_v2 = vpop.eup %6840 }
 0x670   :  { %5624 = vst.msk [vmem:[%s9037_s2 + $0xb4] sm:$0xf] %vm2757_vm5, %v5808_v0  ;;  %v4919_v54 = vpop.xlane.xlu1 %4918 }
 0x671   :  { %6848 = vrcp.f32 %v4919_v54 }
 0x672   :  { %v6843_v9 = vpop.eup %6842 }
 0x674   :  { %v4922_v55 = vpop.xlane.xlu0 %4921 }
 0x675   :  { %6850 = vrcp.f32 %v4922_v55 }
 0x676   :  { %v6845_v16 = vpop.eup %6844 }
 0x678   :  { %v4925_v57 = vpop.xlane.xlu1 %4924 }
 0x679   :  { %6852 = vrcp.f32 %v4925_v57 }
 0x67a   :  { %v6847_v15 = vpop.eup %6846 }
 0x67c   :  { %v4928_v28 = vpop.xlane.xlu0 %4927 }
 0x67d   :  { %6854 = vrcp.f32 %v4928_v28 }
 0x67e   :  { %v6849_v0 = vpop.eup %6848 }
 0x680   :  { %v4931_v30 = vpop.xlane.xlu1 %4930 }
 0x681   :  { %6856 = vrcp.f32 %v4931_v30 }
 0x68c   :  { %v6035_v3 = vpop.f32.mrf.mxu1 }
 0x68e   :  { %v6036_v59 = vpop.f32.mrf.mxu1 }
 0x68f   :  { %v6037_v61 = vadd.f32 %v6036_v59, %v6035_v3 }
 0x690   :  { %v6038_v31 = vpop.f32.mrf.mxu1 }
 0x691   :  { %v5166_v18 = vmul.f32 %v6833_v47, %v6037_v61  ;;  %v6851_v61 = vpop.eup %6850  ;;  %v4934_v47 = vpop.xlane.xlu0 %4933 }
 0x692   :  { %v6039_v29 = vpop.f32.mrf.mxu1  ;;  %6858 = vrcp.f32 %v4934_v47 }
 0x693   :  { %v5811_v4 = vpack.c.bf16 %v5166_v18, %v5166_v18  ;;  %v6040_v50 = vadd.f32 %v6039_v29, %v6038_v31 }
 0x694   :  { %v6041_v10 = vpop.f32.mrf.mxu1 }
 0x695   :  { %5683 = vst.msk [vmem:[%s9037_s2 + $0xc0] sm:$0xf] %vm2757_vm5, %v5811_v4  ;;  %v5167_v49 = vmul.f32 %v6835_v42, %v6040_v50  ;;  %v6853_v50 = vpop.eup %6852  ;;  %v4937_v42 = vpop.xlane.xlu1 %4936 }
 0x696   :  { %v6042_v41 = vpop.f32.mrf.mxu1  ;;  %6860 = vrcp.f32 %v4937_v42 }
 0x697   :  { %v5812_v5 = vpack.c.bf16 %v5167_v49, %v5167_v49  ;;  %v6043_v25 = vadd.f32 %v6042_v41, %v6041_v10 }
 0x698   :  { %v6044_v36 = vpop.f32.mrf.mxu1 }
 0x699   :  { %5684 = vst.msk [vmem:[%s9037_s2 + $0xc4] sm:$0xf] %vm2757_vm5, %v5812_v5  ;;  %v5168_v14 = vmul.f32 %v6837_v51, %v6043_v25  ;;  %v6855_v25 = vpop.eup %6854  ;;  %v4940_v51 = vpop.xlane.xlu0 %4939 }
 0x69a   :  { %v6045_v46 = vpop.f32.mrf.mxu1  ;;  %6862 = vrcp.f32 %v4940_v51 }
 0x69b   :  { %v5813_v53 = vpack.c.bf16 %v5168_v14, %v5168_v14  ;;  %v6046_v12 = vadd.f32 %v6045_v46, %v6044_v36 }
 0x69c   :  { %v6047_v26 = vpop.f32.mrf.mxu1 }
 0x69d   :  { %5685 = vst.msk [vmem:[%s9037_s2 + $0xc8] sm:$0xf] %vm2757_vm5, %v5813_v53  ;;  %v5169_v8 = vmul.f32 %v6839_v7, %v6046_v12  ;;  %v6857_v12 = vpop.eup %6856 }
 0x69e   :  { %v6048_v13 = vpop.f32.mrf.mxu1 }
 0x69f   :  { %v5814_v43 = vpack.c.bf16 %v5169_v8, %v5169_v8  ;;  %v6049_v44 = vadd.f32 %v6048_v13, %v6047_v26 }
 0x6a0   :  { %v6050_v11 = vpop.f32.mrf.mxu1 }
 0x6a1   :  { %5686 = vst.msk [vmem:[%s9037_s2 + $0xcc] sm:$0xf] %vm2757_vm5, %v5814_v43  ;;  %v5170_v38 = vmul.f32 %v6841_v2, %v6049_v44  ;;  %v6859_v43 = vpop.eup %6858 }
 0x6a2   :  { %v6051_v62 = vpop.f32.mrf.mxu1 }
 0x6a3   :  { %v5815_v17 = vpack.c.bf16 %v5170_v38, %v5170_v38  ;;  %v6052_v20 = vadd.f32 %v6051_v62, %v6050_v11  ;;  %v6861_v62 = vpop.eup %6860 }
 0x6a4   :  { %v6053_v21 = vpop.f32.mrf.mxu1 }
 0x6a5   :  { %5687 = vst.msk [vmem:[%s9037_s2 + $0xd0] sm:$0xf] %vm2757_vm5, %v5815_v17  ;;  %v5171_v37 = vmul.f32 %v6843_v9, %v6052_v20 }
 0x6a6   :  { %v6054_v52 = vpop.f32.mrf.mxu1 }
 0x6a7   :  { %v5816_v48 = vpack.c.bf16 %v5171_v37, %v5171_v37  ;;  %v6055_v19 = vadd.f32 %v6054_v52, %v6053_v21  ;;  %v6863_v37 = vpop.eup %6862 }
 0x6a8   :  { %v6056_v6 = vpop.f32.mrf.mxu1 }
 0x6a9   :  { %5688 = vst.msk [vmem:[%s9037_s2 + $0xd4] sm:$0xf] %vm2757_vm5, %v5816_v48  ;;  %v5172_v60 = vmul.f32 %v6845_v16, %v6055_v19 }
 0x6aa   :  { %v6057_v45 = vpop.f32.mrf.mxu1 }
 0x6ab   :  { %v5817_v34 = vpack.c.bf16 %v5172_v60, %v5172_v60  ;;  %v6058_v1 = vadd.f32 %v6057_v45, %v6056_v6 }
 0x6ac   :  { %v6059_v39 = vpop.f32.mrf.mxu1 }
 0x6ad   :  { %5689 = vst.msk [vmem:[%s9037_s2 + $0xd8] sm:$0xf] %vm2757_vm5, %v5817_v34  ;;  %v5173_v63 = vmul.f32 %v6847_v15, %v6058_v1 }
 0x6ae   :  { %v6060_v33 = vpop.f32.mrf.mxu1 }
 0x6af   :  { %v5818_v58 = vpack.c.bf16 %v5173_v63, %v5173_v63  ;;  %v6061_v40 = vadd.f32 %v6060_v33, %v6059_v39 }
 0x6b0   :  { %v6062_v27 = vpop.f32.mrf.mxu1 }
 0x6b1   :  { %5690 = vst.msk [vmem:[%s9037_s2 + $0xdc] sm:$0xf] %vm2757_vm5, %v5818_v58  ;;  %v5174_v22 = vmul.f32 %v6849_v0, %v6061_v40 }
 0x6b2   :  { %v6063_v56 = vpop.f32.mrf.mxu1 }
 0x6b3   :  { %v5819_v3 = vpack.c.bf16 %v5174_v22, %v5174_v22  ;;  %v6064_v59 = vadd.f32 %v6063_v56, %v6062_v27 }
 0x6b4   :  { %v6065_v23 = vpop.f32.mrf.mxu1 }
 0x6b5   :  { %5691 = vst.msk [vmem:[%s9037_s2 + $0xe0] sm:$0xf] %vm2757_vm5, %v5819_v3  ;;  %v5175_v31 = vmul.f32 %v6851_v61, %v6064_v59 }
 0x6b6   :  { %v6066_v18 = vpop.f32.mrf.mxu1 }
 0x6b7   :  { %v5820_v29 = vpack.c.bf16 %v5175_v31, %v5175_v31  ;;  %v6067_v4 = vadd.f32 %v6066_v18, %v6065_v23 }
 0x6b8   :  { %v6068_v32 = vpop.f32.mrf.mxu1 }
 0x6b9   :  { %5692 = vst.msk [vmem:[%s9037_s2 + $0xe4] sm:$0xf] %vm2757_vm5, %v5820_v29  ;;  %v5176_v10 = vmul.f32 %v6853_v50, %v6067_v4 }
 0x6ba   :  { %v6069_v49 = vpop.f32.mrf.mxu1 }
 0x6bb   :  { %v5821_v41 = vpack.c.bf16 %v5176_v10, %v5176_v10  ;;  %v6070_v5 = vadd.f32 %v6069_v49, %v6068_v32 }
 0x6bc   :  { %v6071_v35 = vpop.f32.mrf.mxu1 }
 0x6bd   :  { %5693 = vst.msk [vmem:[%s9037_s2 + $0xe8] sm:$0xf] %vm2757_vm5, %v5821_v41  ;;  %v5177_v36 = vmul.f32 %v6855_v25, %v6070_v5 }
 0x6be   :  { %v6072_v14 = vpop.f32.mrf.mxu1 }
 0x6bf   :  { %v5822_v46 = vpack.c.bf16 %v5177_v36, %v5177_v36  ;;  %v6073_v53 = vadd.f32 %v6072_v14, %v6071_v35 }
 0x6c0   :  { %v6074_v7 = vpop.f32.mrf.mxu1 }
 0x6c1   :  { %5694 = vst.msk [vmem:[%s9037_s2 + $0xec] sm:$0xf] %vm2757_vm5, %v5822_v46  ;;  %v5178_v24 = vmul.f32 %v6857_v12, %v6073_v53 }
 0x6c2   :  { %v6075_v26 = vpop.f32.mrf.mxu1 }
 0x6c3   :  { %v5823_v8 = vpack.c.bf16 %v5178_v24, %v5178_v24  ;;  %v6076_v13 = vadd.f32 %v6075_v26, %v6074_v7 }
 0x6c4   :  { %v6077_v44 = vpop.f32.mrf.mxu1 }
 0x6c5   :  { %5695 = vst.msk [vmem:[%s9037_s2 + $0xf0] sm:$0xf] %vm2757_vm5, %v5823_v8  ;;  %v5179_v2 = vmul.f32 %v6859_v43, %v6076_v13 }
 0x6c6   :  { %v6078_v54 = vpop.f32.mrf.mxu1 }
 0x6c7   :  { %v5824_v11 = vpack.c.bf16 %v5179_v2, %v5179_v2  ;;  %v6079_v38 = vadd.f32 %v6078_v54, %v6077_v44 }
 0x6c8   :  { %v6080_v17 = vpop.f32.mrf.mxu1 }
 0x6c9   :  { %5696 = vst.msk [vmem:[%s9037_s2 + $0xf4] sm:$0xf] %vm2757_vm5, %v5824_v11  ;;  %v5180_v20 = vmul.f32 %v6861_v62, %v6079_v38 }
 0x6ca   :  { %v6081_v9 = vpop.f32.mrf.mxu1 }
 0x6cb   :  { %v5825_v55 = vpack.c.bf16 %v5180_v20, %v5180_v20  ;;  %v6082_v21 = vadd.f32 %v6081_v9, %v6080_v17 }
 0x6cd   :  { %5697 = vst.msk [vmem:[%s9037_s2 + $0xf8] sm:$0xf] %vm2757_vm5, %v5825_v55  ;;  %v5181_v52 = vmul.f32 %v6863_v37, %v6082_v21 }
 0x6cf   :  { %v5826_v48 = vpack.c.bf16 %v5181_v52, %v5181_v52 }
 0x6d1   :  { %5698 = vst.msk [vmem:[%s9037_s2 + $0xfc] sm:$0xf] %vm2757_vm5, %v5826_v48 }
 0x6d2   :  { %5266 = vsyncpa [#allocation4], 1 }

</bundles_post_ra>
